<compile_context>
chip_gen: v5e
topology: v5e:2x2
jax: 0.10.0
libtpu: 0.0.40
codegen_flags: <defaults>
</compile_context>

<pallas_src>
import jax
import jax.numpy as jnp
import numpy as np
from jax import lax
from jax.experimental import pallas as pl
from jax.experimental.pallas import tpu as pltpu

B = 2        # batch
Q = 128      # number of decoder queries (DINO uses 900; small here, must be >= K)
D = 256      # hidden dim (hard-coded to 256 by the gather in the original forward)
C = 8        # class logits; last channel dropped like a background class
K = 50       # max_per_img
K_PAD = 64   # K padded to a sublane multiple for the merged selection matmul / store
C_PAD = 128  # cls weight lane-padded so it can be fused onto w1 (slice stays aligned)

_LOG2_KPAD = K_PAD.bit_length() - 1   # 6
_LOG2_Q = Q.bit_length() - 1          # 7


def dino_head_select_kernel(hs_ref, w1c_ref, b1c_ref, w2_ref, b2_ref, out_ref):
    hs = hs_ref[...]                                                    # (B*Q, D) bf16

    # Fused GEMM: [w1 | wc_pad] -> one MXU pass with N = D + C_PAD = 384 (M = B*Q = 256
    # fills the MXU rows). Bias (f32) is concatenated the same way in the wrapper.
    fused = jnp.dot(hs, w1c_ref[...],
                    preferred_element_type=jnp.float32) + b1c_ref[...]  # (B*Q, 384) f32
    h1 = jnp.maximum(fused[:, :D], 0.0)                                 # (B*Q, D)   f32
    logits = fused[:, D:]                                               # (B*Q, 128) f32; cols >= C are exactly 0 (masked below)

    # reg branch tail: Linear -> ReLU (hooked module [3] output).
    reg = jnp.dot(h1.astype(jnp.bfloat16), w2_ref[...],
                  preferred_element_type=jnp.float32) + b2_ref[...]
    reg = jnp.maximum(reg, 0.0)                                         # (B*Q, D) f32

    # scores = softmax(logits)[..., :C-1].max(-1); padded class lanes masked with -inf.
    cid = lax.broadcasted_iota(jnp.int32, logits.shape, 1)
    masked = jnp.where(cid < C, logits, -jnp.inf)
    m = jnp.max(masked, axis=-1, keepdims=True)                         # finite (C real lanes)
    e = jnp.exp(masked - m)                                             # padded lanes -> exp(-inf) = 0
    denom = jnp.sum(e, axis=-1, keepdims=True)                          # >= 1
    num = jnp.max(jnp.where(cid < C - 1, e, 0.0), axis=-1, keepdims=True)
    scores = num * pl.reciprocal(denom, approx=False)                   # (B*Q, 1) f32, EUP divide

    # Vectorized per-batch top-K via all-pairs ranking. Masks are hoisted (loop
    # invariant); the sublane->lane score relayout reuses the bit-exact mask+max
    # construction (see header note) so tie-breaking matches lax.top_k exactly.
    qi = lax.broadcasted_iota(jnp.int32, (Q, Q), 0)   # competitor q' (sublanes)
    qj = lax.broadcasted_iota(jnp.int32, (Q, Q), 1)   # query q (lanes)
    diag = qi == qj
    tri = qi < qj                                     # ties -> lower index wins

    rank_rows = []
    for b in range(B):                                # static unroll, B = 2
        s_col = scores[b * Q:(b + 1) * Q, :]          # (Q, 1)
        # Bit-exact copy of the scores into lane layout (scores >= 0, so 0 identity is safe).
        s_row = jnp.max(jnp.where(diag, s_col, 0.0), axis=0, keepdims=True)       # (1, Q)
        beats = (s_col > s_row) | ((s_col == s_row) & tri)                         # (Q, Q)
        rank_rows.append(jnp.sum(beats.astype(jnp.float32), axis=0, keepdims=True))  # (1, Q)

    rank = jnp.concatenate(rank_rows, axis=1).astype(jnp.int32)         # (1, B*Q), exact small ints

    # Block-diagonal one-hot selection matrix: sel[k_g, q_g] = 1 iff query q_g has rank
    # k_g within its own batch block. out = sel @ reg is an exact row gather (0/1 f32
    # coefficients), done in ONE MXU pass with ONE unmasked, lane-dense 128x256 store.
    kk = lax.broadcasted_iota(jnp.int32, (B * K_PAD, B * Q), 0)
    qq = lax.broadcasted_iota(jnp.int32, (B * K_PAD, B * Q), 1)
    k_local = jnp.bitwise_and(kk, K_PAD - 1)
    same_batch = jnp.right_shift(kk, _LOG2_KPAD) == jnp.right_shift(qq, _LOG2_Q)
    sel = ((k_local == rank) & same_batch).astype(jnp.float32)          # (B*K_PAD, B*Q)

    out_ref[...] = jnp.dot(sel, reg, preferred_element_type=jnp.float32)  # (B*K_PAD, D)


@jax.jit
def dino_encoder_forward(hs, params):
    """hs: (B, Q, D) decoder hidden state.  Returns (B, K, D)."""
    w1, b1, w2, b2, wc, bc = params

    # Fuse the cls Linear onto the first reg Linear: lane-pad wc/bc to 128 and concat.
    wc_pad = jnp.pad(wc, ((0, 0), (0, C_PAD - C)))
    bc_pad = jnp.pad(bc, ((0, 0), (0, C_PAD - C)))
    w1c = jnp.concatenate([w1, wc_pad], axis=1).astype(jnp.bfloat16)    # (D, D + C_PAD)
    b1c = jnp.concatenate([b1, bc_pad], axis=1)                         # (1, D + C_PAD) f32
    w2_b = w2.astype(jnp.bfloat16)
    hs_flat = hs.reshape(B * Q, D).astype(jnp.bfloat16)                 # batch-fused M = 256

    flops = (2 * (B * Q) * D * (D + C_PAD)        # fused reg1 + cls GEMM
             + 2 * (B * Q) * D * D                # reg2 GEMM
             + 2 * (B * K_PAD) * (B * Q) * D)     # selection GEMM
    bytes_accessed = (hs_flat.size + w1c.size + w2_b.size) * 2 \
        + (b1c.size + b2.size) * 4 + (B * K_PAD) * D * 4
    cost = pl.CostEstimate(flops=flops,
                           transcendentals=(B * Q) * (C_PAD + 1),
                           bytes_accessed=bytes_accessed)

    vmem = pl.BlockSpec(memory_space=pltpu.MemorySpace.VMEM)
    out_flat = pl.pallas_call(
        dino_head_select_kernel,
        out_shape=jax.ShapeDtypeStruct((B * K_PAD, D), jnp.float32),
        in_specs=[vmem] * 5,
        out_specs=vmem,
        cost_estimate=cost,
    )(hs_flat, w1c, b1c, w2_b, b2)

    # Padded (B*K_PAD, D) kernel output -> (B, K, D); slicing outside the kernel keeps
    # the in-kernel store unmasked and lane-dense.
    return out_flat.reshape(B, K_PAD, D)[:, :K, :]


def reference(hs, params):
    """Pure-JAX reference with the SAME bf16 GEMM casts as the kernel (f32 accum),
    so the top-k ordering and gathered values are directly comparable."""
    w1, b1, w2, b2, wc, bc = params
    hs_b = hs.astype(jnp.bfloat16)
    h1 = jax.nn.relu(jnp.dot(hs_b, w1.astype(jnp.bfloat16),
                             preferred_element_type=jnp.float32) + b1)
    reg = jax.nn.relu(jnp.dot(h1.astype(jnp.bfloat16), w2.astype(jnp.bfloat16),
                              preferred_element_type=jnp.float32) + b2)
    logits = jnp.dot(hs_b, wc.astype(jnp.bfloat16),
                     preferred_element_type=jnp.float32) + bc
    p = jax.nn.softmax(logits, axis=-1)[..., :-1]
    scores = p.max(-1)
    _, idx = jax.lax.top_k(scores, K)
    return jnp.take_along_axis(reg, idx[..., None], axis=1)


if __name__ == "__main__":
    key = jax.random.PRNGKey(0)
    k_hs, k1, k2, k3, k4, k5, k6 = jax.random.split(key, 7)

    # Synthetic decoder hidden state (stands in for the DINO transformer output).
    hs = jax.random.normal(k_hs, (B, Q, D), dtype=jnp.float32)

    scale = 0.05
    params = (
        scale * jax.random.normal(k1, (D, D), dtype=jnp.float32),
        scale * jax.random.normal(k2, (1, D), dtype=jnp.float32),
        scale * jax.random.normal(k3, (D, D), dtype=jnp.float32),
        scale * jax.random.normal(k4, (1, D), dtype=jnp.float32),
        scale * jax.random.normal(k5, (D, C), dtype=jnp.float32),
        scale * jax.random.normal(k6, (1, C), dtype=jnp.float32),
    )

    out = jax.block_until_ready(dino_encoder_forward(hs, params))
    ref = jax.block_until_ready(reference(hs, params))

    np.testing.assert_allclose(np.asarray(out), np.asarray(ref), rtol=1e-3, atol=1e-3)
    assert out.shape == (B, K, D)
    print("KERNEL_OK")
</pallas_src>

<mosaic_0001>
module attributes {stable_mosaic.version = 11 : i64} {
  func.func @dino_head_select_kernel(%arg0: memref<256x256xbf16, #tpu.memory_space<vmem>>, %arg1: memref<256x384xbf16, #tpu.memory_space<vmem>>, %arg2: memref<1x384xf32, #tpu.memory_space<vmem>>, %arg3: memref<256x256xbf16, #tpu.memory_space<vmem>>, %arg4: memref<1x256xf32, #tpu.memory_space<vmem>>, %arg5: memref<128x256xf32, #tpu.memory_space<vmem>>) attributes {dimension_semantics = [], scalar_prefetch = 0 : i64, scratch_operands = 0 : i64, tpu.core_type = #tpu.core_type<tc>} {
    %c0 = arith.constant 0 : index
    %c0_0 = arith.constant 0 : index
    %0 = vector.load %arg0[%c0, %c0_0] : memref<256x256xbf16, #tpu.memory_space<vmem>>, vector<256x256xbf16>
    %c0_1 = arith.constant 0 : index
    %c0_2 = arith.constant 0 : index
    %1 = vector.load %arg1[%c0_1, %c0_2] : memref<256x384xbf16, #tpu.memory_space<vmem>>, vector<256x384xbf16>
    %cst = arith.constant dense<0.000000e+00> : vector<256x384xf32>
    %2 = tpu.matmul %0, %1, %cst {dimension_numbers = #tpu.dot_dimension_numbers<[1], [0], [0], [1], [0, 0, 1, 1], [], []>} : vector<256x256xbf16>, vector<256x384xbf16>, vector<256x384xf32> -> vector<256x384xf32>
    %c0_3 = arith.constant 0 : index
    %c0_4 = arith.constant 0 : index
    %3 = vector.load %arg2[%c0_3, %c0_4] : memref<1x384xf32, #tpu.memory_space<vmem>>, vector<1x384xf32>
    %4 = vector.broadcast %3 : vector<1x384xf32> to vector<256x384xf32>
    %5 = arith.addf %2, %4 : vector<256x384xf32>
    %6 = vector.extract_strided_slice %5 {offsets = [0, 0], sizes = [256, 256], strides = [1, 1]} : vector<256x384xf32> to vector<256x256xf32>
    %cst_5 = arith.constant 0.000000e+00 : f32
    %7 = vector.broadcast %cst_5 : f32 to vector<256x256xf32>
    %8 = arith.maximumf %6, %7 : vector<256x256xf32>
    %9 = vector.extract_strided_slice %5 {offsets = [0, 256], sizes = [256, 128], strides = [1, 1]} : vector<256x384xf32> to vector<256x128xf32>
    %10 = arith.truncf %8 : vector<256x256xf32> to vector<256x256xbf16>
    %c0_6 = arith.constant 0 : index
    %c0_7 = arith.constant 0 : index
    %11 = vector.load %arg3[%c0_6, %c0_7] : memref<256x256xbf16, #tpu.memory_space<vmem>>, vector<256x256xbf16>
    %cst_8 = arith.constant dense<0.000000e+00> : vector<256x256xf32>
    %12 = tpu.matmul %10, %11, %cst_8 {dimension_numbers = #tpu.dot_dimension_numbers<[1], [0], [0], [1], [0, 0, 1, 1], [], []>} : vector<256x256xbf16>, vector<256x256xbf16>, vector<256x256xf32> -> vector<256x256xf32>
    %c0_9 = arith.constant 0 : index
    %c0_10 = arith.constant 0 : index
    %13 = vector.load %arg4[%c0_9, %c0_10] : memref<1x256xf32, #tpu.memory_space<vmem>>, vector<1x256xf32>
    %14 = vector.broadcast %13 : vector<1x256xf32> to vector<256x256xf32>
    %15 = arith.addf %12, %14 : vector<256x256xf32>
    %cst_11 = arith.constant 0.000000e+00 : f32
    %16 = vector.broadcast %cst_11 : f32 to vector<256x256xf32>
    %17 = arith.maximumf %15, %16 : vector<256x256xf32>
    %18 = tpu.iota {dimensions = array<i32: 1>} : vector<256x128xi32>
    %c8_i32 = arith.constant 8 : i32
    %19 = vector.broadcast %c8_i32 : i32 to vector<256x128xi32>
    %20 = arith.cmpi slt, %18, %19 : vector<256x128xi32>
    %cst_12 = arith.constant 0xFF800000 : f32
    %21 = vector.broadcast %cst_12 : f32 to vector<256x128xf32>
    %22 = arith.select %20, %9, %21 : vector<256x128xi1>, vector<256x128xf32>
    %cst_13 = arith.constant dense<0xFF800000> : vector<256xf32>
    %23 = vector.multi_reduction <maximumf>, %22, %cst_13 [1] : vector<256x128xf32> to vector<256xf32>
    %24 = vector.shape_cast %23 : vector<256xf32> to vector<256x1xf32>
    %25 = vector.broadcast %24 : vector<256x1xf32> to vector<256x128xf32>
    %26 = arith.subf %22, %25 : vector<256x128xf32>
    %27 = math.exp %26 : vector<256x128xf32>
    %cst_14 = arith.constant dense<0.000000e+00> : vector<256xf32>
    %28 = vector.multi_reduction <add>, %27, %cst_14 [1] : vector<256x128xf32> to vector<256xf32>
    %29 = vector.shape_cast %28 : vector<256xf32> to vector<256x1xf32>
    %c7_i32 = arith.constant 7 : i32
    %30 = vector.broadcast %c7_i32 : i32 to vector<256x128xi32>
    %31 = arith.cmpi slt, %18, %30 : vector<256x128xi32>
    %cst_15 = arith.constant 0.000000e+00 : f32
    %32 = vector.broadcast %cst_15 : f32 to vector<256x128xf32>
    %33 = arith.select %31, %27, %32 : vector<256x128xi1>, vector<256x128xf32>
    %cst_16 = arith.constant dense<0xFF800000> : vector<256xf32>
    %34 = vector.multi_reduction <maximumf>, %33, %cst_16 [1] : vector<256x128xf32> to vector<256xf32>
    %35 = vector.shape_cast %34 : vector<256xf32> to vector<256x1xf32>
    %36 = tpu.reciprocal %29 : vector<256x1xf32> -> vector<256x1xf32>
    %37 = arith.mulf %35, %36 : vector<256x1xf32>
    %38 = tpu.iota {dimensions = array<i32: 0>} : vector<128x128xi32>
    %39 = tpu.iota {dimensions = array<i32: 1>} : vector<128x128xi32>
    %40 = arith.cmpi eq, %38, %39 : vector<128x128xi32>
    %41 = arith.cmpi slt, %38, %39 : vector<128x128xi32>
    %42 = vector.extract_strided_slice %37 {offsets = [0, 0], sizes = [128, 1], strides = [1, 1]} : vector<256x1xf32> to vector<128x1xf32>
    %cst_17 = arith.constant 0.000000e+00 : f32
    %43 = vector.shape_cast %42 : vector<128x1xf32> to vector<128x1xf32>
    %44 = vector.broadcast %43 : vector<128x1xf32> to vector<128x128xf32>
    %45 = vector.broadcast %cst_17 : f32 to vector<128x128xf32>
    %46 = arith.select %40, %44, %45 : vector<128x128xi1>, vector<128x128xf32>
    %cst_18 = arith.constant dense<0xFF800000> : vector<128xf32>
    %47 = vector.multi_reduction <maximumf>, %46, %cst_18 [0] : vector<128x128xf32> to vector<128xf32>
    %48 = vector.shape_cast %47 : vector<128xf32> to vector<1x128xf32>
    %49 = vector.broadcast %42 : vector<128x1xf32> to vector<128x128xf32>
    %50 = vector.broadcast %48 : vector<1x128xf32> to vector<128x128xf32>
    %51 = arith.cmpf ogt, %49, %50 : vector<128x128xf32>
    %52 = vector.broadcast %42 : vector<128x1xf32> to vector<128x128xf32>
    %53 = vector.broadcast %48 : vector<1x128xf32> to vector<128x128xf32>
    %54 = arith.cmpf oeq, %52, %53 : vector<128x128xf32>
    %55 = arith.andi %54, %41 : vector<128x128xi1>
    %56 = arith.ori %51, %55 : vector<128x128xi1>
    %57 = arith.extui %56 : vector<128x128xi1> to vector<128x128xi32>
    %58 = arith.sitofp %57 : vector<128x128xi32> to vector<128x128xf32>
    %cst_19 = arith.constant dense<0.000000e+00> : vector<128xf32>
    %59 = vector.multi_reduction <add>, %58, %cst_19 [0] : vector<128x128xf32> to vector<128xf32>
    %60 = vector.shape_cast %59 : vector<128xf32> to vector<1x128xf32>
    %61 = vector.extract_strided_slice %37 {offsets = [128, 0], sizes = [128, 1], strides = [1, 1]} : vector<256x1xf32> to vector<128x1xf32>
    %cst_20 = arith.constant 0.000000e+00 : f32
    %62 = vector.shape_cast %61 : vector<128x1xf32> to vector<128x1xf32>
    %63 = vector.broadcast %62 : vector<128x1xf32> to vector<128x128xf32>
    %64 = vector.broadcast %cst_20 : f32 to vector<128x128xf32>
    %65 = arith.select %40, %63, %64 : vector<128x128xi1>, vector<128x128xf32>
    %cst_21 = arith.constant dense<0xFF800000> : vector<128xf32>
    %66 = vector.multi_reduction <maximumf>, %65, %cst_21 [0] : vector<128x128xf32> to vector<128xf32>
    %67 = vector.shape_cast %66 : vector<128xf32> to vector<1x128xf32>
    %68 = vector.broadcast %61 : vector<128x1xf32> to vector<128x128xf32>
    %69 = vector.broadcast %67 : vector<1x128xf32> to vector<128x128xf32>
    %70 = arith.cmpf ogt, %68, %69 : vector<128x128xf32>
    %71 = vector.broadcast %61 : vector<128x1xf32> to vector<128x128xf32>
    %72 = vector.broadcast %67 : vector<1x128xf32> to vector<128x128xf32>
    %73 = arith.cmpf oeq, %71, %72 : vector<128x128xf32>
    %74 = arith.andi %73, %41 : vector<128x128xi1>
    %75 = arith.ori %70, %74 : vector<128x128xi1>
    %76 = arith.extui %75 : vector<128x128xi1> to vector<128x128xi32>
    %77 = arith.sitofp %76 : vector<128x128xi32> to vector<128x128xf32>
    %cst_22 = arith.constant dense<0.000000e+00> : vector<128xf32>
    %78 = vector.multi_reduction <add>, %77, %cst_22 [0] : vector<128x128xf32> to vector<128xf32>
    %79 = vector.shape_cast %78 : vector<128xf32> to vector<1x128xf32>
    %80 = tpu.concatenate %60, %79 in 1 : vector<1x128xf32>, vector<1x128xf32> -> vector<1x256xf32>
    %81 = arith.fptosi %80 : vector<1x256xf32> to vector<1x256xi32>
    %82 = tpu.iota {dimensions = array<i32: 0>} : vector<128x256xi32>
    %83 = tpu.iota {dimensions = array<i32: 1>} : vector<128x256xi32>
    %c63_i32 = arith.constant 63 : i32
    %84 = vector.broadcast %c63_i32 : i32 to vector<128x256xi32>
    %85 = arith.andi %82, %84 : vector<128x256xi32>
    %c6_i32 = arith.constant 6 : i32
    %86 = vector.broadcast %c6_i32 : i32 to vector<128x256xi32>
    %87 = arith.shrsi %82, %86 : vector<128x256xi32>
    %c7_i32_23 = arith.constant 7 : i32
    %88 = vector.broadcast %c7_i32_23 : i32 to vector<128x256xi32>
    %89 = arith.shrsi %83, %88 : vector<128x256xi32>
    %90 = arith.cmpi eq, %87, %89 : vector<128x256xi32>
    %91 = vector.broadcast %81 : vector<1x256xi32> to vector<128x256xi32>
    %92 = arith.cmpi eq, %85, %91 : vector<128x256xi32>
    %93 = arith.andi %92, %90 : vector<128x256xi1>
    %94 = arith.extui %93 : vector<128x256xi1> to vector<128x256xi32>
    %95 = arith.sitofp %94 : vector<128x256xi32> to vector<128x256xf32>
    %cst_24 = arith.constant dense<0.000000e+00> : vector<128x256xf32>
    %96 = tpu.matmul %95, %17, %cst_24 {dimension_numbers = #tpu.dot_dimension_numbers<[1], [0], [0], [1], [0, 0, 1, 1], [], []>} : vector<128x256xf32>, vector<256x256xf32>, vector<128x256xf32> -> vector<128x256xf32>
    %c0_25 = arith.constant 0 : index
    %c0_26 = arith.constant 0 : index
    %97 = vector.load %arg5[%c0_25, %c0_26] : memref<128x256xf32, #tpu.memory_space<vmem>>, vector<128x256xf32>
    tpu.vector_store %arg5[%c0_25, %c0_26], %96 {strides = array<i32>} : memref<128x256xf32, #tpu.memory_space<vmem>>, vector<128x256xf32>,
    return
  }
}

</mosaic_0001>

<bundles_post_ra>
// kernel: dino_encoder_forward.1
= control target key start
LH: loop header
LB: loop body
LE: loop exit
PB: predicated region body
PF: predicated region fallthrough
CT: control target
= control target key end

     0   :  { %s8638_s1 = inlined_call_operand.vmem [shape: bf16[256,384], index: 1, kind: input, shape index: {}]   ;;  %s8639_s0 = inlined_call_operand.vmem [shape: bf16[256,256], index: 0, kind: input, shape index: {}]   ;;  %s8640_s2 = inlined_call_operand.vmem [shape: f32[1,384], index: 2, kind: input, shape index: {}]   ;;  %s8641_s3 = inlined_call_operand.vmem [shape: bf16[256,256], index: 3, kind: input, shape index: {}]   ;;  %s8642_s4 = inlined_call_operand.vmem [shape: f32[1,256], index: 4, kind: input, shape index: {}]   ;;  %s8643_s5 = inlined_call_operand.vmem [shape: f32[128,256], index: 5, kind: output, shape index: {}]  }
   0x1   :  { %v3690_v0 = vld [vmem:[%s8638_s1 + $0xa8] sm:$0xf]  ;;  %v4106_v1 = vld [vmem:[%s8638_s1 + $0xb0] sm:$0xf0]  ;;  %v4105_v5 = vld [vmem:[%s8638_s1 + $0xac] sm:$0xf] }
   0x2   :  { %v3786_v2 = vld [vmem:[%s8638_s1 + $0x168] sm:$0xf]  ;;  %v3691_v3 = vor.u32 %v4106_v1, %v3690_v0  ;;  %v4130_v4 = vld [vmem:[%s8638_s1 + $0x170] sm:$0xf0]  ;;  %v3692_v6 = vld [vmem:[%s8638_s1 + $0xb4] sm:$0xf0] }
   0x3   :  { %v3787_v7 = vor.u32 %v4130_v4, %v3786_v2  ;;  %v3695_v8 = vor.u32 %v4105_v5, %v3692_v6  ;;  %v4129_v9 = vld [vmem:[%s8638_s1 + $0x16c] sm:$0xf]  ;;  %v3788_v10 = vld [vmem:[%s8638_s1 + $0x174] sm:$0xf0]  ;;  %v3678_v11 = vld [vmem:[%s8638_s1 + $0x90] sm:$0xf] }
   0x4   :  { %540 = vmatpush.bf16.msra.mxu0 %v3691_v3  ;;  %v3791_v12 = vor.u32 %v4129_v9, %v3788_v10  ;;  %v4103_v13 = vld [vmem:[%s8638_s1 + $0x98] sm:$0xf0]  ;;  %v3774_v14 = vld [vmem:[%s8638_s1 + $0x150] sm:$0xf]  ;;  %v4102_v18 = vld [vmem:[%s8638_s1 + $0x94] sm:$0xf] }
   0x5   :  { %v4127_v15 = vld [vmem:[%s8638_s1 + $0x158] sm:$0xf0]  ;;  %629 = vmatpush.bf16.msra.mxu1 %v3787_v7  ;;  %718 = vmatpush.bf16.msra.mxu2 %v3695_v8  ;;  %v3679_v16 = vor.u32 %v4103_v13, %v3678_v11  ;;  %v3680_v19 = vld [vmem:[%s8638_s1 + $0x9c] sm:$0xf0]  ;;  %v4126_v20 = vld [vmem:[%s8638_s1 + $0x154] sm:$0xf] }
   0x6   :  { %v3775_v17 = vor.u32 %v4127_v15, %v3774_v14  ;;  %807 = vmatpush.bf16.msra.mxu3 %v3791_v12  ;;  %v3683_v21 = vor.u32 %v4102_v18, %v3680_v19  ;;  %v3776_v22 = vld [vmem:[%s8638_s1 + $0x15c] sm:$0xf0]  ;;  %v3666_v23 = vld [vmem:[%s8638_s1 + $0x78] sm:$0xf]  ;;  %v4100_v24 = vld [vmem:[%s8638_s1 + $0x80] sm:$0xf0] }
   0x7   :  { %v3779_v25 = vor.u32 %v4126_v20, %v3776_v22  ;;  %v3762_v26 = vld [vmem:[%s8638_s1 + $0x138] sm:$0xf]  ;;  %v4124_v27 = vld [vmem:[%s8638_s1 + $0x140] sm:$0xf0]  ;;  %v4099_v28 = vld [vmem:[%s8638_s1 + $0x7c] sm:$0xf]  ;;  %v3667_v29 = vor.u32 %v4100_v24, %v3666_v23 }
   0x8   :  { %541 = vmatpush.bf16.msra.mxu0 %v3679_v16  ;;  %v3668_v30 = vld [vmem:[%s8638_s1 + $0x84] sm:$0xf0]  ;;  %v4123_v31 = vld [vmem:[%s8638_s1 + $0x13c] sm:$0xf]  ;;  %v3763_v33 = vor.u32 %v4124_v27, %v3762_v26  ;;  %v3654_v35 = vld [vmem:[%s8638_s1 + $0x60] sm:$0xf] }
   0x9   :  { %v3764_v32 = vld [vmem:[%s8638_s1 + $0x144] sm:$0xf0]  ;;  %630 = vmatpush.bf16.msra.mxu1 %v3775_v17  ;;  %719 = vmatpush.bf16.msra.mxu2 %v3683_v21  ;;  %v3671_v34 = vor.u32 %v4099_v28, %v3668_v30  ;;  %v4097_v36 = vld [vmem:[%s8638_s1 + $0x68] sm:$0xf0]  ;;  %v3750_v37 = vld [vmem:[%s8638_s1 + $0x120] sm:$0xf] }
   0xa   :  { %808 = vmatpush.bf16.msra.mxu3 %v3779_v25  ;;  %v3767_v38 = vor.u32 %v4123_v31, %v3764_v32  ;;  %v4121_v39 = vld [vmem:[%s8638_s1 + $0x128] sm:$0xf0]  ;;  %v4096_v40 = vld [vmem:[%s8638_s1 + $0x64] sm:$0xf]  ;;  %v3656_v41 = vld [vmem:[%s8638_s1 + $0x6c] sm:$0xf0]  ;;  %v3655_v44 = vor.u32 %v4097_v36, %v3654_v35 }
   0xb   :  { %v4120_v42 = vld [vmem:[%s8638_s1 + $0x124] sm:$0xf]  ;;  %v3752_v43 = vld [vmem:[%s8638_s1 + $0x12c] sm:$0xf0]  ;;  %v3751_v45 = vor.u32 %v4121_v39, %v3750_v37  ;;  %v3659_v46 = vor.u32 %v4096_v40, %v3656_v41  ;;  %v3642_v47 = vld [vmem:[%s8638_s1 + $0x48] sm:$0xf] }
   0xc   :  { %542 = vmatpush.bf16.msra.mxu0 %v3667_v29  ;;  %v4094_v48 = vld [vmem:[%s8638_s1 + $0x50] sm:$0xf0]  ;;  %v3738_v49 = vld [vmem:[%s8638_s1 + $0x108] sm:$0xf]  ;;  %v3755_v50 = vor.u32 %v4120_v42, %v3752_v43  ;;  %v4093_v52 = vld [vmem:[%s8638_s1 + $0x4c] sm:$0xf] }
   0xd   :  { %631 = vmatpush.bf16.msra.mxu1 %v3763_v33  ;;  %720 = vmatpush.bf16.msra.mxu2 %v3671_v34  ;;  %v4118_v51 = vld [vmem:[%s8638_s1 + $0x110] sm:$0xf0]  ;;  %v3644_v53 = vld [vmem:[%s8638_s1 + $0x54] sm:$0xf0]  ;;  %v4117_v54 = vld [vmem:[%s8638_s1 + $0x10c] sm:$0xf]  ;;  %v3643_v56 = vor.u32 %v4094_v48, %v3642_v47 }
   0xe   :  { %809 = vmatpush.bf16.msra.mxu3 %v3767_v38  ;;  %v3740_v55 = vld [vmem:[%s8638_s1 + $0x114] sm:$0xf0]  ;;  %v3739_v57 = vor.u32 %v4118_v51, %v3738_v49  ;;  %v3647_v58 = vor.u32 %v4093_v52, %v3644_v53  ;;  %v3630_v59 = vld [vmem:[%s8638_s1 + $0x30] sm:$0xf]  ;;  %v4091_v60 = vld [vmem:[%s8638_s1 + $0x38] sm:$0xf0] }
   0xf   :  { %v3726_v61 = vld [vmem:[%s8638_s1 + $0xf0] sm:$0xf]  ;;  %v3743_v62 = vor.u32 %v4117_v54, %v3740_v55  ;;  %v4115_v63 = vld [vmem:[%s8638_s1 + $0xf8] sm:$0xf0]  ;;  %v4090_v0 = vld [vmem:[%s8638_s1 + $0x34] sm:$0xf]  ;;  %v3631_v4 = vor.u32 %v4091_v60, %v3630_v59 }
  0x10   :  { %543 = vmatpush.bf16.msra.mxu0 %v3655_v44  ;;  %v3632_v1 = vld [vmem:[%s8638_s1 + $0x3c] sm:$0xf0]  ;;  %v4114_v2 = vld [vmem:[%s8638_s1 + $0xf4] sm:$0xf]  ;;  %v3727_v5 = vor.u32 %v4115_v63, %v3726_v61  ;;  %v3618_v7 = vld [vmem:[%s8638_s1 + $0x18] sm:$0xf] }
  0x11   :  { %632 = vmatpush.bf16.msra.mxu1 %v3751_v45  ;;  %721 = vmatpush.bf16.msra.mxu2 %v3659_v46  ;;  %v3728_v3 = vld [vmem:[%s8638_s1 + $0xfc] sm:$0xf0]  ;;  %v3635_v6 = vor.u32 %v4090_v0, %v3632_v1  ;;  %v4088_v8 = vld [vmem:[%s8638_s1 + $0x20] sm:$0xf0]  ;;  %v3714_v9 = vld [vmem:[%s8638_s1 + $0xd8] sm:$0xf] }
  0x12   :  { %810 = vmatpush.bf16.msra.mxu3 %v3755_v50  ;;  %v3731_v10 = vor.u32 %v4114_v2, %v3728_v3  ;;  %v4112_v11 = vld [vmem:[%s8638_s1 + $0xe0] sm:$0xf0]  ;;  %v4087_v12 = vld [vmem:[%s8638_s1 + $0x1c] sm:$0xf]  ;;  %v3620_v13 = vld [vmem:[%s8638_s1 + $0x24] sm:$0xf0]  ;;  %v3619_v16 = vor.u32 %v4088_v8, %v3618_v7 }
  0x13   :  { %v4111_v14 = vld [vmem:[%s8638_s1 + $0xdc] sm:$0xf]  ;;  %v3716_v15 = vld [vmem:[%s8638_s1 + $0xe4] sm:$0xf0]  ;;  %v3606_v17 = vld [vmem:[%s8638_s1] sm:$0xf]  ;;  %v3715_v19 = vor.u32 %v4112_v11, %v3714_v9  ;;  %v3623_v20 = vor.u32 %v4087_v12, %v3620_v13 }
  0x14   :  { %544 = vmatpush.bf16.msra.mxu0 %v3643_v56  ;;  %v4085_v18 = vld [vmem:[%s8638_s1 + $0x8] sm:$0xf0]  ;;  %v3702_v21 = vld [vmem:[%s8638_s1 + $0xc0] sm:$0xf]  ;;  %v4084_v23 = vld [vmem:[%s8638_s1 + $0x4] sm:$0xf]  ;;  %v3719_v24 = vor.u32 %v4111_v14, %v3716_v15 }
  0x15   :  { %633 = vmatpush.bf16.msra.mxu1 %v3739_v57  ;;  %722 = vmatpush.bf16.msra.mxu2 %v3647_v58  ;;  %v4109_v22 = vld [vmem:[%s8638_s1 + $0xc8] sm:$0xf0]  ;;  %v3608_v25 = vld [vmem:[%s8638_s1 + $0xc] sm:$0xf0]  ;;  %v4108_v26 = vld [vmem:[%s8638_s1 + $0xc4] sm:$0xf]  ;;  %v3607_v31 = vor.u32 %v4085_v18, %v3606_v17 }
  0x16   :  { %811 = vmatpush.bf16.msra.mxu3 %v3743_v62  ;;  %v3704_v27 = vld [vmem:[%s8638_s1 + $0xcc] sm:$0xf0]  ;;  %v3478_v28 = vld [vmem:[%s8639_s0] sm:$0xf]  ;;  %v4107_v30 = vld [vmem:[%s8638_s1 + $0xb8] sm:$0xf0]  ;;  %v3703_v35 = vor.u32 %v4109_v22, %v3702_v21  ;;  %v3611_v36 = vor.u32 %v4084_v23, %v3608_v25 }
  0x17   :  { %v3698_v29 = vld [vmem:[%s8638_s1 + $0xb0] sm:$0xf]  ;;  %v4053_v32 = vld [vmem:[%s8639_s0 + $0x4] sm:$0xf0]  ;;  %v4131_v34 = vld [vmem:[%s8638_s1 + $0x178] sm:$0xf0]  ;;  %v3707_v39 = vor.u32 %v4108_v26, %v3704_v27 }
  0x18   :  { %545 = vmatpush.bf16.msra.mxu0 %v3631_v4  ;;  %v3794_v33 = vld [vmem:[%s8638_s1 + $0x170] sm:$0xf]  ;;  %v4052_v37 = vld [vmem:[%s8639_s0 + $0x4] sm:$0xf]  ;;  %v3480_v38 = vld [vmem:[%s8639_s0 + $0x8] sm:$0xf0]  ;;  %v3699_v40 = vor.u32 %v4107_v30, %v3698_v29  ;;  %v4554_v41 = vor.u32 %v4053_v32, %v3478_v28 }
  0x19   :  { %634 = vmatpush.bf16.msra.mxu1 %v3727_v5  ;;  %723 = vmatpush.bf16.msra.mxu2 %v3635_v6  ;;  %v3795_v42 = vor.u32 %v4131_v34, %v3794_v33  ;;  %v4556_v43 = vor.u32 %v4052_v37, %v3480_v38  ;;  %v3686_v44 = vld [vmem:[%s8638_s1 + $0x98] sm:$0xf]  ;;  %v4104_v45 = vld [vmem:[%s8638_s1 + $0xa0] sm:$0xf0]  ;;  %v3486_v50 = vld [vmem:[%s8639_s0 + $0x10] sm:$0xf] }
  0x1a   :  { %812 = vmatpush.bf16.msra.mxu3 %v3731_v10  ;;  %v3782_v46 = vld [vmem:[%s8638_s1 + $0x158] sm:$0xf]  ;;  %v3687_v47 = vor.u32 %v4104_v45, %v3686_v44  ;;  %v4128_v48 = vld [vmem:[%s8638_s1 + $0x160] sm:$0xf0]  ;;  %v4054_v52 = vld [vmem:[%s8639_s0 + $0x14] sm:$0xf] }
  0x1b   :  { %v3783_v49 = vor.u32 %v4128_v48, %v3782_v46  ;;  %v4055_v51 = vld [vmem:[%s8639_s0 + $0x14] sm:$0xf0]  ;;  %v3488_v53 = vld [vmem:[%s8639_s0 + $0x18] sm:$0xf0]  ;;  %v3494_v56 = vld [vmem:[%s8639_s0 + $0x20] sm:$0xf] }
  0x1c   :  { %546 = vmatpush.bf16.msra.mxu0 %v3619_v16  ;;  %v4586_v54 = vor.u32 %v4055_v51, %v3486_v50  ;;  %v4588_v55 = vor.u32 %v4054_v52, %v3488_v53  ;;  %v4057_v57 = vld [vmem:[%s8639_s0 + $0x24] sm:$0xf0]  ;;  %v4056_v58 = vld [vmem:[%s8639_s0 + $0x24] sm:$0xf]  ;;  %v3496_v59 = vld [vmem:[%s8639_s0 + $0x28] sm:$0xf0] }
  0x1d   :  { %635 = vmatpush.bf16.msra.mxu1 %v3715_v19  ;;  %724 = vmatpush.bf16.msra.mxu2 %v3623_v20  ;;  %v4606_v60 = vor.u32 %v4057_v57, %v3494_v56  ;;  %v4608_v61 = vor.u32 %v4056_v58, %v3496_v59  ;;  %v3674_v62 = vld [vmem:[%s8638_s1 + $0x80] sm:$0xf]  ;;  %v4101_v63 = vld [vmem:[%s8638_s1 + $0x88] sm:$0xf0]  ;;  %v3502_v4 = vld [vmem:[%s8639_s0 + $0x30] sm:$0xf] }
  0x1e   :  { %813 = vmatpush.bf16.msra.mxu3 %v3719_v24  ;;  %v3770_v0 = vld [vmem:[%s8638_s1 + $0x140] sm:$0xf]  ;;  %v3675_v1 = vor.u32 %v4101_v63, %v3674_v62  ;;  %v4125_v2 = vld [vmem:[%s8638_s1 + $0x148] sm:$0xf0]  ;;  %v4059_v5 = vld [vmem:[%s8639_s0 + $0x34] sm:$0xf0] }
  0x1f   :  { %v3771_v3 = vor.u32 %v4125_v2, %v3770_v0  ;;  %v4058_v6 = vld [vmem:[%s8639_s0 + $0x34] sm:$0xf]  ;;  %v3504_v7 = vld [vmem:[%s8639_s0 + $0x38] sm:$0xf0]  ;;  %v4638_v8 = vor.u32 %v4059_v5, %v3502_v4  ;;  %v3510_v10 = vld [vmem:[%s8639_s0 + $0x40] sm:$0xf] }
  0x20   :  { %547 = vmatpush.bf16.msra.mxu0 %v3607_v31  ;;  %v4640_v9 = vor.u32 %v4058_v6, %v3504_v7  ;;  %v4061_v11 = vld [vmem:[%s8639_s0 + $0x44] sm:$0xf0]  ;;  %v4060_v12 = vld [vmem:[%s8639_s0 + $0x44] sm:$0xf]  ;;  %v3512_v13 = vld [vmem:[%s8639_s0 + $0x48] sm:$0xf0] }
  0x21   :  { %636 = vmatpush.bf16.msra.mxu1 %v3703_v35  ;;  %725 = vmatpush.bf16.msra.mxu2 %v3611_v36  ;;  %v4658_v14 = vor.u32 %v4061_v11, %v3510_v10  ;;  %v4660_v15 = vor.u32 %v4060_v12, %v3512_v13  ;;  %v3662_v16 = vld [vmem:[%s8638_s1 + $0x68] sm:$0xf]  ;;  %v4098_v17 = vld [vmem:[%s8638_s1 + $0x70] sm:$0xf0]  ;;  %v3518_v22 = vld [vmem:[%s8639_s0 + $0x50] sm:$0xf] }
  0x22   :  { %814 = vmatpush.bf16.msra.mxu3 %v3707_v39  ;;  %v3758_v18 = vld [vmem:[%s8638_s1 + $0x128] sm:$0xf]  ;;  %v3663_v19 = vor.u32 %v4098_v17, %v3662_v16  ;;  %v4122_v20 = vld [vmem:[%s8638_s1 + $0x130] sm:$0xf0]  ;;  %v4063_v23 = vld [vmem:[%s8639_s0 + $0x54] sm:$0xf0] }
  0x23   :  { %548 = vmatmul.bf16.vlgmr.msra.gmra.mxu0 %v4554_v41  ;;  %v3759_v21 = vor.u32 %v4122_v20, %v3758_v18  ;;  %v4062_v24 = vld [vmem:[%s8639_s0 + $0x54] sm:$0xf]  ;;  %v3520_v25 = vld [vmem:[%s8639_s0 + $0x58] sm:$0xf0]  ;;  %v4690_v26 = vor.u32 %v4063_v23, %v3518_v22  ;;  %v3526_v28 = vld [vmem:[%s8639_s0 + $0x60] sm:$0xf] }
  0x24   :  { %896 = vmatpush.bf16.msrb.mxu0 %v3699_v40  ;;  %637 = vmatmul.bf16.vlgmr.msra.gmra.mxu1 %v4556_v43  ;;  %v4692_v27 = vor.u32 %v4062_v24, %v3520_v25  ;;  %v4065_v29 = vld [vmem:[%s8639_s0 + $0x64] sm:$0xf0]  ;;  %v4064_v30 = vld [vmem:[%s8639_s0 + $0x64] sm:$0xf]  ;;  %v3528_v31 = vld [vmem:[%s8639_s0 + $0x68] sm:$0xf0] }
  0x25   :  { %985 = vmatpush.bf16.msrb.mxu1 %v3795_v42  ;;  %726 = vmatmul.bf16.vlgmr.msra.gmra.mxu2 %v4554_v41  ;;  %v4710_v32 = vor.u32 %v4065_v29, %v3526_v28  ;;  %v4712_v33 = vor.u32 %v4064_v30, %v3528_v31  ;;  %v3650_v34 = vld [vmem:[%s8638_s1 + $0x50] sm:$0xf]  ;;  %v4095_v35 = vld [vmem:[%s8638_s1 + $0x58] sm:$0xf0]  ;;  %v4067_v42 = vld [vmem:[%s8639_s0 + $0x74] sm:$0xf0] }
  0x26   :  { %815 = vmatmul.bf16.vlgmr.msra.gmra.mxu3 %v4556_v43  ;;  %v3746_v36 = vld [vmem:[%s8638_s1 + $0x110] sm:$0xf]  ;;  %v3651_v37 = vor.u32 %v4095_v35, %v3650_v34  ;;  %v4119_v38 = vld [vmem:[%s8638_s1 + $0x118] sm:$0xf0]  ;;  %v4066_v44 = vld [vmem:[%s8639_s0 + $0x74] sm:$0xf] }
  0x27   :  { %v3747_v39 = vor.u32 %v4119_v38, %v3746_v36  ;;  %v3534_v40 = vld [vmem:[%s8639_s0 + $0x70] sm:$0xf]  ;;  %v3536_v45 = vld [vmem:[%s8639_s0 + $0x78] sm:$0xf0]  ;;  %v116_v48 = vld [vmem:[%s8640_s2] sm:$0x7] }
  0x28   :  { %897 = vmatpush.bf16.msrb.mxu0 %v3687_v47  ;;  %v4742_v46 = vor.u32 %v4067_v42, %v3534_v40  ;;  %v4744_v47 = vor.u32 %v4066_v44, %v3536_v45  ;;  %v4069_v50 = vld [vmem:[%s8639_s0 + $0x84] sm:$0xf0]  ;;  %v4759_v51 = vperm.slane %v116_v48, 0  ;;  %v4068_v52 = vld [vmem:[%s8639_s0 + $0x84] sm:$0xf]  ;;  %v4775_v0 = vperm.slane %v116_v48, 1 }
  0x29   :  { %986 = vmatpush.bf16.msrb.mxu1 %v3783_v49  ;;  %v3542_v49 = vld [vmem:[%s8639_s0 + $0x80] sm:$0xf]  ;;  %v3544_v53 = vld [vmem:[%s8639_s0 + $0x88] sm:$0xf0]  ;;  %v4092_v2 = vld [vmem:[%s8638_s1 + $0x40] sm:$0xf0] }
  0x2a   :  { %v4767_v56 = vor.u32 %v4069_v50, %v3542_v49  ;;  %v4769_v58 = vor.u32 %v4068_v52, %v3544_v53  ;;  %v3734_v4 = vld [vmem:[%s8638_s1 + $0xf8] sm:$0xf]  ;;  %v4116_v5 = vld [vmem:[%s8638_s1 + $0x100] sm:$0xf0]  ;;  %v4070_v23 = vld [vmem:[%s8639_s0 + $0x94] sm:$0xf] }
  0x2b   :  { %v3735_v7 = vor.u32 %v4116_v5, %v3734_v4  ;;  %v4071_v20 = vld [vmem:[%s8639_s0 + $0x94] sm:$0xf0]  ;;  %v3552_v24 = vld [vmem:[%s8639_s0 + $0x98] sm:$0xf0]  ;;  %v3560_v4 = vld [vmem:[%s8639_s0 + $0xa8] sm:$0xf0] }
  0x2c   :  { %898 = vmatpush.bf16.msrb.mxu0 %v3675_v1  ;;  %v3638_v1 = vld [vmem:[%s8638_s1 + $0x38] sm:$0xf]  ;;  %v4809_v35 = vor.u32 %v4070_v23, %v3552_v24  ;;  %v3722_v23 = vld [vmem:[%s8638_s1 + $0xe0] sm:$0xf]  ;;  %v4113_v24 = vld [vmem:[%s8638_s1 + $0xe8] sm:$0xf0] }
  0x2d   :  { %987 = vmatpush.bf16.msrb.mxu1 %v3771_v3  ;;  %v3639_v3 = vor.u32 %v4092_v2, %v3638_v1 }
  0x30   :  { %899 = vmatpush.bf16.msrb.mxu0 %v3663_v19  ;;  %v3550_v19 = vld [vmem:[%s8639_s0 + $0x90] sm:$0xf] }
  0x31   :  { %988 = vmatpush.bf16.msrb.mxu1 %v3759_v21  ;;  %v4806_v29 = vor.u32 %v4071_v20, %v3550_v19  ;;  %v3626_v20 = vld [vmem:[%s8638_s1 + $0x20] sm:$0xf] }
  0x33   :  { %553 = vmatmul.bf16.gmra.mxu0 %v4586_v54 }
  0x34   :  { %642 = vmatmul.bf16.gmra.mxu1 %v4588_v55  ;;  %900 = vmatpush.bf16.msrb.mxu0 %v3651_v37 }
  0x35   :  { %731 = vmatmul.bf16.gmra.mxu2 %v4586_v54  ;;  %989 = vmatpush.bf16.msrb.mxu1 %v3747_v39 }
  0x36   :  { %820 = vmatmul.bf16.gmra.mxu3 %v4588_v55 }
  0x38   :  { %901 = vmatpush.bf16.msrb.mxu0 %v3639_v3  ;;  %v4072_v3 = vld [vmem:[%s8639_s0 + $0xa4] sm:$0xf] }
  0x39   :  { %990 = vmatpush.bf16.msrb.mxu1 %v3735_v7 }
  0x43   :  { %558 = vmatmul.bf16.gmra.mxu0 %v4606_v60 }
  0x44   :  { %647 = vmatmul.bf16.gmra.mxu1 %v4608_v61 }
  0x45   :  { %736 = vmatmul.bf16.gmra.mxu2 %v4606_v60 }
  0x46   :  { %825 = vmatmul.bf16.gmra.mxu3 %v4608_v61 }
  0x53   :  { %563 = vmatmul.bf16.gmra.mxu0 %v4638_v8 }
  0x54   :  { %652 = vmatmul.bf16.gmra.mxu1 %v4640_v9 }
  0x55   :  { %741 = vmatmul.bf16.gmra.mxu2 %v4638_v8 }
  0x56   :  { %830 = vmatmul.bf16.gmra.mxu3 %v4640_v9 }
  0x63   :  { %568 = vmatmul.bf16.gmra.mxu0 %v4658_v14 }
  0x64   :  { %657 = vmatmul.bf16.gmra.mxu1 %v4660_v15 }
  0x65   :  { %746 = vmatmul.bf16.gmra.mxu2 %v4658_v14 }
  0x66   :  { %835 = vmatmul.bf16.gmra.mxu3 %v4660_v15 }
  0x73   :  { %573 = vmatmul.bf16.gmra.mxu0 %v4690_v26 }
  0x74   :  { %662 = vmatmul.bf16.gmra.mxu1 %v4692_v27 }
  0x75   :  { %751 = vmatmul.bf16.gmra.mxu2 %v4690_v26 }
  0x76   :  { %840 = vmatmul.bf16.gmra.mxu3 %v4692_v27 }
  0x83   :  { %578 = vmatmul.bf16.gmra.mxu0 %v4710_v32 }
  0x84   :  { %667 = vmatmul.bf16.gmra.mxu1 %v4712_v33 }
  0x85   :  { %756 = vmatmul.bf16.gmra.mxu2 %v4710_v32 }
  0x86   :  { %845 = vmatmul.bf16.gmra.mxu3 %v4712_v33 }
  0x93   :  { %583 = vmatmul.bf16.gmra.mxu0 %v4742_v46 }
  0x94   :  { %672 = vmatmul.bf16.gmra.mxu1 %v4744_v47 }
  0x95   :  { %761 = vmatmul.bf16.gmra.mxu2 %v4742_v46 }
  0x96   :  { %850 = vmatmul.bf16.gmra.mxu3 %v4744_v47 }
  0xa0   :  { %v549_v57 = vpop.f32.mrf.mxu0 }
  0xa1   :  { %v550_v59 = vadd.f32 %v549_v57, %v4759_v51  ;;  %v638_v62 = vpop.f32.mrf.mxu1 }
  0xa3   :  { %v639_v63 = vadd.f32 %v638_v62, %v550_v59  ;;  %588 = vmatmul.bf16.gmra.mxu0 %v4767_v56  ;;  %v3558_v62 = vld [vmem:[%s8639_s0 + $0xa0] sm:$0xf] }
  0xa4   :  { %677 = vmatmul.bf16.gmra.mxu1 %v4769_v58 }
  0xa5   :  { %766 = vmatmul.bf16.gmra.mxu2 %v4767_v56  ;;  %v1074_v21 = vmax.f32 %v639_v63, 0.0  ;;  %v4073_v63 = vld [vmem:[%s8639_s0 + $0xa4] sm:$0xf0] }
  0xa6   :  { %855 = vmatmul.bf16.gmra.mxu3 %v4769_v58 }
  0xa8   :  { %v727_v6 = vpop.f32.mrf.mxu2  ;;  %v551_v12 = vpop.f32.mrf.mxu0 }
  0xa9   :  { %v728_v10 = vadd.f32 %v727_v6, %v4775_v0  ;;  %v816_v11 = vpop.f32.mrf.mxu3  ;;  %v552_v13 = vadd.f32 %v551_v12, %v4759_v51  ;;  %v640_v16 = vpop.f32.mrf.mxu1  ;;  %v4834_v6 = vor.u32 %v4073_v63, %v3558_v62 }
  0xab   :  { %v817_v17 = vadd.f32 %v816_v11, %v728_v10  ;;  %v641_v18 = vadd.f32 %v640_v16, %v552_v13  ;;  %v4839_v13 = vor.u32 %v4072_v3, %v3560_v4 }
  0xad   :  { %v1076_v22 = vmax.f32 %v641_v18, 0.0  ;;  %v1075_v38 = vmax.f32 %v817_v17, 0.0 }
  0xaf   :  { %v4804_v25 = vpack.c.bf16 %v1076_v22, %v1074_v21  ;;  %v4089_v21 = vld [vmem:[%s8638_s1 + $0x28] sm:$0xf0] }
  0xb0   :  { %v729_v28 = vpop.f32.mrf.mxu2  ;;  %v554_v34 = vpop.f32.mrf.mxu0  ;;  %v3627_v22 = vor.u32 %v4089_v21, %v3626_v20 }
  0xb1   :  { %v730_v30 = vadd.f32 %v729_v28, %v4775_v0  ;;  %v818_v31 = vpop.f32.mrf.mxu3  ;;  %v555_v36 = vadd.f32 %v554_v34, %v4759_v51  ;;  %v643_v37 = vpop.f32.mrf.mxu1 }
  0xb2   :  { %902 = vmatpush.bf16.msrb.mxu0 %v3627_v22 }
  0xb3   :  { %v819_v39 = vadd.f32 %v818_v31, %v730_v30  ;;  %v644_v40 = vadd.f32 %v643_v37, %v555_v36  ;;  %593 = vmatmul.bf16.gmra.mxu0 %v4806_v29  ;;  %v3723_v30 = vor.u32 %v4113_v24, %v3722_v23  ;;  %v3574_v24 = vld [vmem:[%s8639_s0 + $0xc0] sm:$0xf] }
  0xb4   :  { %682 = vmatmul.bf16.gmra.mxu1 %v4809_v35 }
  0xb5   :  { %v1077_v42 = vmax.f32 %v819_v39, 0.0  ;;  %771 = vmatmul.bf16.gmra.mxu2 %v4806_v29  ;;  %v1078_v1 = vmax.f32 %v644_v40, 0.0  ;;  %991 = vmatpush.bf16.msrb.mxu1 %v3723_v30 }
  0xb6   :  { %860 = vmatmul.bf16.gmra.mxu3 %v4809_v35 }
  0xb7   :  { %v4816_v44 = vpack.c.bf16 %v1077_v42, %v1075_v38  ;;  %v3566_v42 = vld [vmem:[%s8639_s0 + $0xb0] sm:$0xf] }
  0xb8   :  { %v732_v45 = vpop.f32.mrf.mxu2  ;;  %v556_v50 = vpop.f32.mrf.mxu0 }
  0xb9   :  { %v733_v48 = vadd.f32 %v732_v45, %v4775_v0  ;;  %v821_v49 = vpop.f32.mrf.mxu3  ;;  %v557_v52 = vadd.f32 %v556_v50, %v4759_v51  ;;  %v645_v53 = vpop.f32.mrf.mxu1  ;;  %v4075_v45 = vld [vmem:[%s8639_s0 + $0xb4] sm:$0xf0]  ;;  %v4074_v50 = vld [vmem:[%s8639_s0 + $0xb4] sm:$0xf] }
  0xbb   :  { %v4820_v57 = vadd.f32 %v821_v49, %v733_v48  ;;  %v646_v59 = vadd.f32 %v645_v53, %v557_v52  ;;  %v3568_v52 = vld [vmem:[%s8639_s0 + $0xb8] sm:$0xf0] }
  0xbc   :  { %v4881_v3 = vor.u32 %v4074_v50, %v3568_v52 }
  0xbd   :  { %v1080_v2 = vmax.f32 %v646_v59, 0.0  ;;  %v4876_v59 = vor.u32 %v4075_v45, %v3566_v42 }
  0xbf   :  { %v4836_v7 = vpack.c.bf16 %v1080_v2, %v1078_v1 }
  0xc0   :  { %v734_v5 = vpop.f32.mrf.mxu2  ;;  %v559_v12 = vpop.f32.mrf.mxu0 }
  0xc1   :  { %v735_v10 = vadd.f32 %v734_v5, %v4775_v0  ;;  %v823_v11 = vpop.f32.mrf.mxu3  ;;  %v560_v16 = vadd.f32 %v559_v12, %v4759_v51  ;;  %v648_v17 = vpop.f32.mrf.mxu1 }
  0xc3   :  { %v4842_v18 = vadd.f32 %v823_v11, %v735_v10  ;;  %v649_v19 = vadd.f32 %v648_v17, %v560_v16  ;;  %598 = vmatmul.bf16.gmra.mxu0 %v4834_v6 }
  0xc4   :  { %687 = vmatmul.bf16.gmra.mxu1 %v4839_v13 }
  0xc5   :  { %776 = vmatmul.bf16.gmra.mxu2 %v4834_v6  ;;  %v1082_v48 = vmax.f32 %v649_v19, 0.0 }
  0xc6   :  { %865 = vmatmul.bf16.gmra.mxu3 %v4839_v13 }
  0xc8   :  { %v737_v28 = vpop.f32.mrf.mxu2  ;;  %v561_v36 = vpop.f32.mrf.mxu0 }
  0xc9   :  { %v738_v31 = vadd.f32 %v737_v28, %v4775_v0  ;;  %v826_v34 = vpop.f32.mrf.mxu3  ;;  %v562_v37 = vadd.f32 %v561_v36, %v4759_v51  ;;  %v650_v38 = vpop.f32.mrf.mxu1  ;;  %v4077_v28 = vld [vmem:[%s8639_s0 + $0xc4] sm:$0xf0]  ;;  %v3576_v36 = vld [vmem:[%s8639_s0 + $0xc8] sm:$0xf0] }
  0xcb   :  { %v4862_v39 = vadd.f32 %v826_v34, %v738_v31  ;;  %v651_v40 = vadd.f32 %v650_v38, %v562_v37  ;;  %v4076_v34 = vld [vmem:[%s8639_s0 + $0xc4] sm:$0xf]  ;;  %v4906_v38 = vor.u32 %v4077_v28, %v3574_v24 }
  0xcd   :  { %v1084_v49 = vmax.f32 %v651_v40, 0.0  ;;  %8877 = vst [vmem:[#allocation2_spill] sm:$0xff] %v4906_v38 }
  0xcf   :  { %v4878_v62 = vpack.c.bf16 %v1084_v49, %v1082_v48  ;;  %v4911_v49 = vor.u32 %v4076_v34, %v3576_v36 }
  0xd0   :  { %v739_v53 = vpop.f32.mrf.mxu2  ;;  %v564_v2 = vpop.f32.mrf.mxu0 }
  0xd1   :  { %v740_v63 = vadd.f32 %v739_v53, %v4775_v0  ;;  %v828_v1 = vpop.f32.mrf.mxu3  ;;  %v565_v4 = vadd.f32 %v564_v2, %v4759_v51  ;;  %v653_v5 = vpop.f32.mrf.mxu1  ;;  %8878 = vst [vmem:[#allocation3_spill] sm:$0xff] %v4911_v49 }
  0xd3   :  { %v4884_v10 = vadd.f32 %v828_v1, %v740_v63  ;;  %v654_v11 = vadd.f32 %v653_v5, %v565_v4  ;;  %603 = vmatmul.bf16.gmra.mxu0 %v4876_v59  ;;  %v3854_v63 = vld [vmem:[%s8641_s3 + $0x70] sm:$0xf]  ;;  %v4147_v1 = vld [vmem:[%s8641_s3 + $0x74] sm:$0xf0] }
  0xd4   :  { %692 = vmatmul.bf16.gmra.mxu1 %v4881_v3  ;;  %v3855_v4 = vor.u32 %v4147_v1, %v3854_v63  ;;  %v3918_v5 = vld [vmem:[%s8641_s3 + $0xf0] sm:$0xf] }
  0xd5   :  { %781 = vmatmul.bf16.gmra.mxu2 %v4876_v59  ;;  %v1086_v30 = vmax.f32 %v654_v11, 0.0  ;;  %v4163_v11 = vld [vmem:[%s8641_s3 + $0xf4] sm:$0xf0]  ;;  %v3838_v1 = vld [vmem:[%s8641_s3 + $0x50] sm:$0xf] }
  0xd6   :  { %870 = vmatmul.bf16.gmra.mxu3 %v4881_v3  ;;  %1368 = vmatpush.bf16.msrb.mxu2 %v3855_v4  ;;  %v4143_v4 = vld [vmem:[%s8641_s3 + $0x54] sm:$0xf0] }
  0xd8   :  { %v742_v12 = vpop.f32.mrf.mxu2  ;;  %v566_v19 = vpop.f32.mrf.mxu0 }
  0xd9   :  { %v743_v16 = vadd.f32 %v742_v12, %v4775_v0  ;;  %v831_v17 = vpop.f32.mrf.mxu3  ;;  %v567_v20 = vadd.f32 %v566_v19, %v4759_v51  ;;  %v655_v21 = vpop.f32.mrf.mxu1  ;;  %v3614_v12 = vld [vmem:[%s8638_s1 + $0x8] sm:$0xf] }
  0xdb   :  { %v4892_v22 = vadd.f32 %v831_v17, %v743_v16  ;;  %v656_v23 = vadd.f32 %v655_v21, %v567_v20  ;;  %v4086_v16 = vld [vmem:[%s8638_s1 + $0x10] sm:$0xf0]  ;;  %v3919_v17 = vor.u32 %v4163_v11, %v3918_v5  ;;  %v3710_v20 = vld [vmem:[%s8638_s1 + $0xc8] sm:$0xf]  ;;  %v3582_v11 = vld [vmem:[%s8639_s0 + $0xd0] sm:$0xf] }
  0xdc   :  { %v3615_v19 = vor.u32 %v4086_v16, %v3614_v12  ;;  %v4110_v21 = vld [vmem:[%s8638_s1 + $0xd0] sm:$0xf0]  ;;  %v3839_v12 = vor.u32 %v4143_v4, %v3838_v1  ;;  %v4079_v16 = vld [vmem:[%s8639_s0 + $0xd4] sm:$0xf0]  ;;  %v4157_v1 = vld [vmem:[%s8641_s3 + $0xc4] sm:$0xf0] }
  0xdd   :  { %v1088_v31 = vmax.f32 %v656_v23, 0.0  ;;  %v3846_v23 = vld [vmem:[%s8641_s3 + $0x60] sm:$0xf]  ;;  %1457 = vmatpush.bf16.msrb.mxu3 %v3919_v17  ;;  %v3711_v28 = vor.u32 %v4110_v21, %v3710_v20  ;;  %v3902_v17 = vld [vmem:[%s8641_s3 + $0xd0] sm:$0xf] }
  0xde   :  { %903 = vmatpush.bf16.msrb.mxu0 %v3615_v19  ;;  %v4159_v19 = vld [vmem:[%s8641_s3 + $0xd4] sm:$0xf0] }
  0xdf   :  { %v4908_v40 = vpack.c.bf16 %v1088_v31, %v1086_v30  ;;  %v4145_v30 = vld [vmem:[%s8641_s3 + $0x64] sm:$0xf0]  ;;  %992 = vmatpush.bf16.msrb.mxu1 %v3711_v28  ;;  %v3903_v28 = vor.u32 %v4159_v19, %v3902_v17  ;;  %v4139_v17 = vld [vmem:[%s8641_s3 + $0x34] sm:$0xf0] }
  0xe0   :  { %v744_v37 = vpop.f32.mrf.mxu2  ;;  %v569_v48 = vpop.f32.mrf.mxu0 }
  0xe1   :  { %v745_v42 = vadd.f32 %v744_v37, %v4775_v0  ;;  %v833_v45 = vpop.f32.mrf.mxu3  ;;  %v570_v50 = vadd.f32 %v569_v48, %v4759_v51  ;;  %v658_v52 = vpop.f32.mrf.mxu1  ;;  %v3847_v37 = vor.u32 %v4145_v30, %v3846_v23  ;;  %v4078_v23 = vld [vmem:[%s8639_s0 + $0xd4] sm:$0xf]  ;;  %v3830_v30 = vld [vmem:[%s8641_s3 + $0x40] sm:$0xf] }
  0xe3   :  { %v4914_v53 = vadd.f32 %v833_v45, %v745_v42  ;;  %v659_v2 = vadd.f32 %v658_v52, %v570_v50  ;;  %608 = vmatmul.bf16.gmra.mxu0 %v4906_v38  ;;  %v3910_v42 = vld [vmem:[%s8641_s3 + $0xe0] sm:$0xf]  ;;  %v4161_v45 = vld [vmem:[%s8641_s3 + $0xe4] sm:$0xf0]  ;;  %1369 = vmatpush.bf16.msrb.mxu2 %v3847_v37 }
  0xe4   :  { %697 = vmatmul.bf16.gmra.mxu1 %v4911_v49  ;;  %v3911_v52 = vor.u32 %v4161_v45, %v3910_v42 }
  0xe5   :  { %786 = vmatmul.bf16.gmra.mxu2 %v4906_v38  ;;  %v1090_v20 = vmax.f32 %v659_v2, 0.0 }
  0xe6   :  { %875 = vmatmul.bf16.gmra.mxu3 %v4911_v49 }
  0xe7   :  { %1458 = vmatpush.bf16.msrb.mxu3 %v3911_v52  ;;  %1370 = vmatpush.bf16.msrb.mxu2 %v3839_v12  ;;  %v3894_v52 = vld [vmem:[%s8641_s3 + $0xc0] sm:$0xf] }
  0xe8   :  { %v747_v24 = vpop.f32.mrf.mxu2  ;;  %v571_v36 = vpop.f32.mrf.mxu0 }
  0xe9   :  { %v748_v31 = vadd.f32 %v747_v24, %v4775_v0  ;;  %v836_v34 = vpop.f32.mrf.mxu3  ;;  %v572_v48 = vadd.f32 %v571_v36, %v4759_v51  ;;  %v660_v50 = vpop.f32.mrf.mxu1  ;;  %v3584_v24 = vld [vmem:[%s8639_s0 + $0xd8] sm:$0xf0] }
  0xeb   :  { %v4958_v63 = vadd.f32 %v836_v34, %v748_v31  ;;  %v661_v5 = vadd.f32 %v660_v50, %v572_v48  ;;  %v4141_v31 = vld [vmem:[%s8641_s3 + $0x44] sm:$0xf0]  ;;  %v4990_v34 = vor.u32 %v4079_v16, %v3582_v11  ;;  %1459 = vmatpush.bf16.msrb.mxu3 %v3903_v28  ;;  %v4995_v50 = vor.u32 %v4078_v23, %v3584_v24  ;;  %v3822_v16 = vld [vmem:[%s8641_s3 + $0x30] sm:$0xf]  ;;  %v4155_v23 = vld [vmem:[%s8641_s3 + $0xb4] sm:$0xf0] }
  0xec   :  { %v3831_v36 = vor.u32 %v4141_v31, %v3830_v30  ;;  %v3895_v11 = vor.u32 %v4157_v1, %v3894_v52  ;;  %v3814_v28 = vld [vmem:[%s8641_s3 + $0x20] sm:$0xf]  ;;  %v4137_v30 = vld [vmem:[%s8641_s3 + $0x24] sm:$0xf0] }
  0xed   :  { %v1092_v21 = vmax.f32 %v661_v5, 0.0  ;;  %8879 = vst [vmem:[#allocation4_spill] sm:$0xff] %v4990_v34  ;;  %v4153_v52 = vld [vmem:[%s8641_s3 + $0xa4] sm:$0xf0] }
  0xee   :  { %8880 = vst [vmem:[#allocation5_spill] sm:$0xff] %v4995_v50  ;;  %1371 = vmatpush.bf16.msrb.mxu2 %v3831_v36 }
  0xef   :  { %v4992_v37 = vpack.c.bf16 %v1092_v21, %v1090_v20  ;;  %1460 = vmatpush.bf16.msrb.mxu3 %v3895_v11  ;;  %v3823_v20 = vor.u32 %v4139_v17, %v3822_v16  ;;  %v3886_v21 = vld [vmem:[%s8641_s3 + $0xb0] sm:$0xf]  ;;  %v4135_v17 = vld [vmem:[%s8641_s3 + $0x14] sm:$0xf0] }
  0xf0   :  { %v749_v2 = vpop.f32.mrf.mxu2  ;;  %v574_v48 = vpop.f32.mrf.mxu0  ;;  %v3887_v24 = vor.u32 %v4155_v23, %v3886_v21  ;;  %v3806_v16 = vld [vmem:[%s8641_s3 + $0x10] sm:$0xf]  ;;  %v3590_v21 = vld [vmem:[%s8639_s0 + $0xe0] sm:$0xf] }
  0xf1   :  { %v750_v42 = vadd.f32 %v749_v2, %v4775_v0  ;;  %v838_v45 = vpop.f32.mrf.mxu3  ;;  %v575_v4 = vadd.f32 %v574_v48, %v4759_v51  ;;  %v663_v5 = vpop.f32.mrf.mxu1  ;;  %v3815_v2 = vor.u32 %v4137_v30, %v3814_v28  ;;  %v3878_v48 = vld [vmem:[%s8641_s3 + $0xa0] sm:$0xf]  ;;  %v3807_v23 = vor.u32 %v4135_v17, %v3806_v16  ;;  %v3870_v28 = vld [vmem:[%s8641_s3 + $0x90] sm:$0xf]  ;;  %v4151_v30 = vld [vmem:[%s8641_s3 + $0x94] sm:$0xf0] }
  0xf2   :  { %1372 = vmatpush.bf16.msrb.mxu2 %v3823_v20 }
  0xf3   :  { %v5004_v12 = vadd.f32 %v838_v45, %v750_v42  ;;  %v664_v19 = vadd.f32 %v663_v5, %v575_v4  ;;  %613 = vmatmul.bf16.gmra.mxu0 %v4990_v34  ;;  %1461 = vmatpush.bf16.msrb.mxu3 %v3887_v24  ;;  %v3879_v5 = vor.u32 %v4153_v52, %v3878_v48  ;;  %v4081_v24 = vld [vmem:[%s8639_s0 + $0xe4] sm:$0xf0]  ;;  %v3798_v48 = vld [vmem:[%s8641_s3] sm:$0xf] }
  0xf4   :  { %702 = vmatmul.bf16.gmra.mxu1 %v4995_v50  ;;  %v4133_v52 = vld [vmem:[%s8641_s3 + $0x4] sm:$0xf0] }
  0xf5   :  { %791 = vmatmul.bf16.gmra.mxu2 %v4990_v34 }
  0xf6   :  { %880 = vmatmul.bf16.gmra.mxu3 %v4995_v50  ;;  %1373 = vmatpush.bf16.msrb.mxu2 %v3815_v2 }
  0xf7   :  { %1462 = vmatpush.bf16.msrb.mxu3 %v3879_v5 }
  0xf8   :  { %v752_v31 = vpop.f32.mrf.mxu2  ;;  %v576_v45 = vpop.f32.mrf.mxu0 }
  0xf9   :  { %v753_v36 = vadd.f32 %v752_v31, %v4775_v0  ;;  %v841_v42 = vpop.f32.mrf.mxu3  ;;  %v577_v1 = vadd.f32 %v576_v45, %v4759_v51  ;;  %v665_v4 = vpop.f32.mrf.mxu1  ;;  %v1094_v31 = vmax.f32 %v664_v19, 0.0  ;;  %v3871_v45 = vor.u32 %v4151_v30, %v3870_v28  ;;  %v3862_v28 = vld [vmem:[%s8641_s3 + $0x80] sm:$0xf]  ;;  %v4149_v30 = vld [vmem:[%s8641_s3 + $0x84] sm:$0xf0] }
  0xfa   :  { %1374 = vmatpush.bf16.msrb.mxu2 %v3807_v23 }
  0xfb   :  { %v5036_v11 = vadd.f32 %v841_v42, %v753_v36  ;;  %v666_v20 = vadd.f32 %v665_v4, %v577_v1  ;;  %v4080_v36 = vld [vmem:[%s8639_s0 + $0xe4] sm:$0xf]  ;;  %v3592_v42 = vld [vmem:[%s8639_s0 + $0xe8] sm:$0xf0]  ;;  %v5068_v1 = vor.u32 %v4081_v24, %v3590_v21  ;;  %1463 = vmatpush.bf16.msrb.mxu3 %v3871_v45  ;;  %v3799_v4 = vor.u32 %v4133_v52, %v3798_v48 }
  0xfc   :  { %v5073_v23 = vor.u32 %v4080_v36, %v3592_v42  ;;  %v3863_v45 = vor.u32 %v4149_v30, %v3862_v28  ;;  %v4083_v28 = vld [vmem:[%s8639_s0 + $0xf4] sm:$0xf0] }
  0xfd   :  { %v1096_v2 = vmax.f32 %v666_v20, 0.0  ;;  %8881 = vst [vmem:[#allocation6_spill] sm:$0xff] %v5068_v1 }
  0xfe   :  { %8882 = vst [vmem:[#allocation7_spill] sm:$0xff] %v5073_v23  ;;  %1375 = vmatpush.bf16.msrb.mxu2 %v3799_v4 }
  0xff   :  { %v5070_v5 = vpack.c.bf16 %v1096_v2, %v1094_v31  ;;  %1464 = vmatpush.bf16.msrb.mxu3 %v3863_v45  ;;  %v3600_v45 = vld [vmem:[%s8639_s0 + $0xf8] sm:$0xf0] }
 0x100   :  { %v754_v19 = vpop.f32.mrf.mxu2  ;;  %v579_v20 = vpop.f32.mrf.mxu0 }
 0x101   :  { %v755_v16 = vadd.f32 %v754_v19, %v4775_v0  ;;  %v843_v17 = vpop.f32.mrf.mxu3  ;;  %v580_v21 = vadd.f32 %v579_v20, %v4759_v51  ;;  %v668_v24 = vpop.f32.mrf.mxu1  ;;  %v3598_v20 = vld [vmem:[%s8639_s0 + $0xf0] sm:$0xf] }
 0x103   :  { %v5082_v31 = vadd.f32 %v843_v17, %v755_v16  ;;  %v669_v2 = vadd.f32 %v668_v24, %v580_v21  ;;  %618 = vmatmul.bf16.gmra.mxu0 %v5068_v1  ;;  %v4082_v24 = vld [vmem:[%s8639_s0 + $0xf4] sm:$0xf] }
 0x104   :  { %707 = vmatmul.bf16.gmra.mxu1 %v5073_v23 }
 0x105   :  { %796 = vmatmul.bf16.gmra.mxu2 %v5068_v1  ;;  %v1098_v30 = vmax.f32 %v669_v2, 0.0 }
 0x106   :  { %885 = vmatmul.bf16.gmra.mxu3 %v5073_v23  ;;  %v5111_v23 = vor.u32 %v4082_v24, %v3600_v45 }
 0x108   :  { %v757_v36 = vpop.f32.mrf.mxu2  ;;  %v581_v52 = vpop.f32.mrf.mxu0  ;;  %8885 = vst [vmem:[#allocation10_spill] sm:$0xff] %v5111_v23 }
 0x109   :  { %v758_v42 = vadd.f32 %v757_v36, %v4775_v0  ;;  %v846_v48 = vpop.f32.mrf.mxu3  ;;  %v582_v19 = vadd.f32 %v581_v52, %v4759_v51  ;;  %v670_v16 = vpop.f32.mrf.mxu1  ;;  %v1079_v52 = vmax.f32 %v4820_v57, 0.0 }
 0x10b   :  { %v5090_v17 = vadd.f32 %v846_v48, %v758_v42  ;;  %v671_v4 = vadd.f32 %v670_v16, %v582_v19  ;;  %v5104_v42 = vor.u32 %v4083_v28, %v3598_v20  ;;  %v1081_v19 = vmax.f32 %v4842_v18, 0.0 }
 0x10d   :  { %v1100_v21 = vmax.f32 %v671_v4, 0.0  ;;  %8883 = vst [vmem:[#allocation8_spill] sm:$0xff] %v5104_v42  ;;  %v5119_v57 = vpack.c.bf16 %v1081_v19, %v1079_v52  ;;  %v1083_v52 = vmax.f32 %v4862_v39, 0.0  ;;  %v1085_v19 = vmax.f32 %v4884_v10, 0.0 }
 0x10f   :  { %v5106_v48 = vpack.c.bf16 %v1100_v21, %v1098_v30 }
 0x110   :  { %v759_v36 = vpop.f32.mrf.mxu2  ;;  %v584_v4 = vpop.f32.mrf.mxu0 }
 0x111   :  { %8884 = vst [vmem:[#allocation9_spill] sm:$0xff] %v5106_v48  ;;  %v760_v2 = vadd.f32 %v759_v36, %v4775_v0  ;;  %v848_v16 = vpop.f32.mrf.mxu3  ;;  %v585_v1 = vadd.f32 %v584_v4, %v4759_v51  ;;  %v673_v50 = vpop.f32.mrf.mxu1 }
 0x113   :  { %v5114_v34 = vadd.f32 %v848_v16, %v760_v2  ;;  %v674_v49 = vadd.f32 %v673_v50, %v585_v1  ;;  %623 = vmatmul.bf16.gmra.mxu0 %v5104_v42 }
 0x114   :  { %712 = vmatmul.bf16.gmra.mxu1 %v5111_v23 }
 0x115   :  { %801 = vmatmul.bf16.gmra.mxu2 %v5104_v42  ;;  %v1102_v1 = vmax.f32 %v674_v49, 0.0  ;;  %v5137_v49 = vpack.c.bf16 %v1085_v19, %v1083_v52  ;;  %v1089_v52 = vmax.f32 %v4914_v53, 0.0 }
 0x116   :  { %890 = vmatmul.bf16.gmra.mxu3 %v5111_v23 }
 0x118   :  { %v762_v18 = vpop.f32.mrf.mxu2  ;;  %v586_v30 = vpop.f32.mrf.mxu0 }
 0x119   :  { %v763_v20 = vadd.f32 %v762_v18, %v4775_v0  ;;  %v851_v28 = vpop.f32.mrf.mxu3  ;;  %v587_v21 = vadd.f32 %v586_v30, %v4759_v51  ;;  %v675_v24 = vpop.f32.mrf.mxu1 }
 0x11b   :  { %v5124_v45 = vadd.f32 %v851_v28, %v763_v20  ;;  %v676_v50 = vadd.f32 %v675_v24, %v587_v21 }
 0x11d   :  { %v1104_v36 = vmax.f32 %v676_v50, 0.0 }
 0x11f   :  { %v5126_v16 = vpack.c.bf16 %v1104_v36, %v1102_v1 }
 0x120   :  { %v764_v2 = vpop.f32.mrf.mxu2  ;;  %v589_v23 = vpop.f32.mrf.mxu0 }
 0x121   :  { %8886 = vst [vmem:[#allocation11_spill] sm:$0xff] %v5126_v16  ;;  %v765_v4 = vadd.f32 %v764_v2, %v4775_v0  ;;  %v853_v18 = vpop.f32.mrf.mxu3  ;;  %v590_v42 = vadd.f32 %v589_v23, %v4759_v51  ;;  %v678_v30 = vpop.f32.mrf.mxu1  ;;  %v1087_v2 = vmax.f32 %v4892_v22, 0.0 }
 0x123   :  { %v5132_v38 = vadd.f32 %v853_v18, %v765_v4  ;;  %v679_v20 = vadd.f32 %v678_v30, %v590_v42  ;;  %904 = vmatmul.bf16.vlgmr.msrb.gmra.mxu0 %v4554_v41 }
 0x124   :  { %993 = vmatmul.bf16.vlgmr.msrb.gmra.mxu1 %v4556_v43 }
 0x125   :  { %1376 = vmatmul.bf16.vlgmr.msrb.gmra.mxu2 %v4804_v25  ;;  %v1106_v41 = vmax.f32 %v679_v20, 0.0  ;;  %v5155_v20 = vpack.c.bf16 %v1089_v52, %v1087_v2  ;;  %v1091_v2 = vmax.f32 %v4958_v63, 0.0  ;;  %v1093_v52 = vmax.f32 %v5004_v12, 0.0 }
 0x126   :  { %1465 = vmatmul.bf16.vlgmr.msrb.gmra.mxu3 %v4816_v44 }
 0x128   :  { %v767_v39 = vpop.f32.mrf.mxu2  ;;  %v591_v21 = vpop.f32.mrf.mxu0 }
 0x129   :  { %v768_v10 = vadd.f32 %v767_v39, %v4775_v0  ;;  %v856_v28 = vpop.f32.mrf.mxu3  ;;  %v592_v23 = vadd.f32 %v591_v21, %v4759_v51  ;;  %v680_v24 = vpop.f32.mrf.mxu1 }
 0x12b   :  { %v5142_v50 = vadd.f32 %v856_v28, %v768_v10  ;;  %v681_v42 = vadd.f32 %v680_v24, %v592_v23 }
 0x12d   :  { %v1108_v1 = vmax.f32 %v681_v42, 0.0 }
 0x12f   :  { %v5144_v36 = vpack.c.bf16 %v1108_v1, %v1106_v41 }
 0x130   :  { %v769_v43 = vpop.f32.mrf.mxu2  ;;  %v594_v18 = vpop.f32.mrf.mxu0 }
 0x131   :  { %8887 = vst [vmem:[#allocation12_spill] sm:$0xff] %v5144_v36  ;;  %v770_v19 = vadd.f32 %v769_v43, %v4775_v0  ;;  %v858_v4 = vpop.f32.mrf.mxu3  ;;  %v595_v30 = vadd.f32 %v594_v18, %v4759_v51  ;;  %v683_v39 = vpop.f32.mrf.mxu1 }
 0x133   :  { %v5150_v21 = vadd.f32 %v858_v4, %v770_v19  ;;  %v684_v10 = vadd.f32 %v683_v39, %v595_v30  ;;  %909 = vmatmul.bf16.gmra.mxu0 %v4586_v54 }
 0x134   :  { %998 = vmatmul.bf16.gmra.mxu1 %v4588_v55 }
 0x135   :  { %1381 = vmatmul.bf16.gmra.mxu2 %v4836_v7  ;;  %v1110_v54 = vmax.f32 %v684_v10, 0.0  ;;  %v5173_v10 = vpack.c.bf16 %v1093_v52, %v1091_v2  ;;  %v1095_v2 = vmax.f32 %v5036_v11, 0.0  ;;  %v1097_v52 = vmax.f32 %v5082_v31, 0.0 }
 0x136   :  { %1470 = vmatmul.bf16.gmra.mxu3 %v5119_v57 }
 0x138   :  { %v772_v22 = vpop.f32.mrf.mxu2  ;;  %v596_v23 = vpop.f32.mrf.mxu0 }
 0x139   :  { %v773_v53 = vadd.f32 %v772_v22, %v4775_v0  ;;  %v861_v28 = vpop.f32.mrf.mxu3  ;;  %v597_v24 = vadd.f32 %v596_v23, %v4759_v51  ;;  %v685_v42 = vpop.f32.mrf.mxu1 }
 0x13b   :  { %v5160_v41 = vadd.f32 %v861_v28, %v773_v53  ;;  %v686_v1 = vadd.f32 %v685_v42, %v597_v24 }
 0x13d   :  { %v1112_v43 = vmax.f32 %v686_v1, 0.0 }
 0x13f   :  { %v5162_v19 = vpack.c.bf16 %v1112_v43, %v1110_v54 }
 0x140   :  { %v774_v55 = vpop.f32.mrf.mxu2  ;;  %v599_v30 = vpop.f32.mrf.mxu0 }
 0x141   :  { %8888 = vst [vmem:[#allocation13_spill] sm:$0xff] %v5162_v19  ;;  %v775_v4 = vadd.f32 %v774_v55, %v4775_v0  ;;  %v863_v18 = vpop.f32.mrf.mxu3  ;;  %v600_v39 = vadd.f32 %v599_v30, %v4759_v51  ;;  %v688_v22 = vpop.f32.mrf.mxu1 }
 0x143   :  { %v5168_v23 = vadd.f32 %v863_v18, %v775_v4  ;;  %v689_v53 = vadd.f32 %v688_v22, %v600_v39  ;;  %914 = vmatmul.bf16.gmra.mxu0 %v4606_v60 }
 0x144   :  { %1003 = vmatmul.bf16.gmra.mxu1 %v4608_v61 }
 0x145   :  { %1386 = vmatmul.bf16.gmra.mxu2 %v4878_v62  ;;  %v1114_v60 = vmax.f32 %v689_v53, 0.0  ;;  %v5191_v53 = vpack.c.bf16 %v1097_v52, %v1095_v2  ;;  %v1099_v2 = vmax.f32 %v5090_v17, 0.0  ;;  %v1101_v52 = vmax.f32 %v5114_v34, 0.0 }
 0x146   :  { %1475 = vmatmul.bf16.gmra.mxu3 %v5137_v49 }
 0x148   :  { %v777_v63 = vpop.f32.mrf.mxu2  ;;  %v601_v24 = vpop.f32.mrf.mxu0 }
 0x149   :  { %v778_v12 = vadd.f32 %v777_v63, %v4775_v0  ;;  %v866_v28 = vpop.f32.mrf.mxu3  ;;  %v602_v42 = vadd.f32 %v601_v24, %v4759_v51  ;;  %v690_v1 = vpop.f32.mrf.mxu1 }
 0x14b   :  { %v5178_v54 = vadd.f32 %v866_v28, %v778_v12  ;;  %v691_v43 = vadd.f32 %v690_v1, %v602_v42 }
 0x14d   :  { %v1116_v55 = vmax.f32 %v691_v43, 0.0 }
 0x14f   :  { %v5180_v4 = vpack.c.bf16 %v1116_v55, %v1114_v60 }
 0x150   :  { %v779_v61 = vpop.f32.mrf.mxu2  ;;  %v604_v39 = vpop.f32.mrf.mxu0 }
 0x151   :  { %8889 = vst [vmem:[#allocation14_spill] sm:$0xff] %v5180_v4  ;;  %v780_v18 = vadd.f32 %v779_v61, %v4775_v0  ;;  %v868_v30 = vpop.f32.mrf.mxu3  ;;  %v605_v22 = vadd.f32 %v604_v39, %v4759_v51  ;;  %v693_v63 = vpop.f32.mrf.mxu1 }
 0x153   :  { %v5186_v24 = vadd.f32 %v868_v30, %v780_v18  ;;  %v694_v12 = vadd.f32 %v693_v63, %v605_v22  ;;  %919 = vmatmul.bf16.gmra.mxu0 %v4638_v8 }
 0x154   :  { %1008 = vmatmul.bf16.gmra.mxu1 %v4640_v9 }
 0x155   :  { %1391 = vmatmul.bf16.gmra.mxu2 %v4908_v40  ;;  %v1118_v8 = vmax.f32 %v694_v12, 0.0  ;;  %v5209_v12 = vpack.c.bf16 %v1101_v52, %v1099_v2  ;;  %v1103_v2 = vmax.f32 %v5124_v45, 0.0  ;;  %v1105_v52 = vmax.f32 %v5132_v38, 0.0 }
 0x156   :  { %1480 = vmatmul.bf16.gmra.mxu3 %v5155_v20 }
 0x157   :  { %8891 = vst [vmem:[#allocation16_spill] sm:$0xff] %v5209_v12 }
 0x158   :  { %v782_v11 = vpop.f32.mrf.mxu2  ;;  %v606_v42 = vpop.f32.mrf.mxu0 }
 0x159   :  { %v783_v31 = vadd.f32 %v782_v11, %v4775_v0  ;;  %v871_v28 = vpop.f32.mrf.mxu3  ;;  %v607_v1 = vadd.f32 %v606_v42, %v4759_v51  ;;  %v695_v43 = vpop.f32.mrf.mxu1 }
 0x15b   :  { %v5196_v60 = vadd.f32 %v871_v28, %v783_v31  ;;  %v696_v55 = vadd.f32 %v695_v43, %v607_v1 }
 0x15d   :  { %v1120_v61 = vmax.f32 %v696_v55, 0.0 }
 0x15f   :  { %v5198_v18 = vpack.c.bf16 %v1120_v61, %v1118_v8 }
 0x160   :  { %v784_v9 = vpop.f32.mrf.mxu2  ;;  %v609_v22 = vpop.f32.mrf.mxu0 }
 0x161   :  { %8890 = vst [vmem:[#allocation15_spill] sm:$0xff] %v5198_v18  ;;  %v785_v30 = vadd.f32 %v784_v9, %v4775_v0  ;;  %v873_v39 = vpop.f32.mrf.mxu3  ;;  %v610_v63 = vadd.f32 %v609_v22, %v4759_v51  ;;  %v698_v11 = vpop.f32.mrf.mxu1 }
 0x163   :  { %v5204_v42 = vadd.f32 %v873_v39, %v785_v30  ;;  %v699_v31 = vadd.f32 %v698_v11, %v610_v63  ;;  %924 = vmatmul.bf16.gmra.mxu0 %v4658_v14 }
 0x164   :  { %1013 = vmatmul.bf16.gmra.mxu1 %v4660_v15 }
 0x165   :  { %1396 = vmatmul.bf16.gmra.mxu2 %v4992_v37  ;;  %v1122_v14 = vmax.f32 %v699_v31, 0.0  ;;  %v5227_v31 = vpack.c.bf16 %v1105_v52, %v1103_v2  ;;  %v1107_v2 = vmax.f32 %v5142_v50, 0.0  ;;  %v1109_v52 = vmax.f32 %v5150_v21, 0.0 }
 0x166   :  { %1485 = vmatmul.bf16.gmra.mxu3 %v5173_v10 }
 0x167   :  { %8893 = vst [vmem:[#allocation18_spill] sm:$0xff] %v5227_v31 }
 0x168   :  { %v787_v34 = vpop.f32.mrf.mxu2  ;;  %v611_v1 = vpop.f32.mrf.mxu0 }
 0x169   :  { %v788_v17 = vadd.f32 %v787_v34, %v4775_v0  ;;  %v876_v28 = vpop.f32.mrf.mxu3  ;;  %v612_v43 = vadd.f32 %v611_v1, %v4759_v51  ;;  %v700_v55 = vpop.f32.mrf.mxu1 }
 0x16b   :  { %v5214_v8 = vadd.f32 %v876_v28, %v788_v17  ;;  %v701_v61 = vadd.f32 %v700_v55, %v612_v43 }
 0x16d   :  { %v1124_v9 = vmax.f32 %v701_v61, 0.0 }
 0x16f   :  { %v5216_v30 = vpack.c.bf16 %v1124_v9, %v1122_v14 }
 0x170   :  { %v789_v15 = vpop.f32.mrf.mxu2  ;;  %v614_v63 = vpop.f32.mrf.mxu0 }
 0x171   :  { %8892 = vst [vmem:[#allocation17_spill] sm:$0xff] %v5216_v30  ;;  %v790_v39 = vadd.f32 %v789_v15, %v4775_v0  ;;  %v878_v22 = vpop.f32.mrf.mxu3  ;;  %v615_v11 = vadd.f32 %v614_v63, %v4759_v51  ;;  %v703_v34 = vpop.f32.mrf.mxu1 }
 0x173   :  { %v5222_v1 = vadd.f32 %v878_v22, %v790_v39  ;;  %v704_v17 = vadd.f32 %v703_v34, %v615_v11  ;;  %929 = vmatmul.bf16.gmra.mxu0 %v4690_v26 }
 0x174   :  { %1018 = vmatmul.bf16.gmra.mxu1 %v4692_v27 }
 0x175   :  { %1401 = vmatmul.bf16.gmra.mxu2 %v5070_v5  ;;  %v1126_v26 = vmax.f32 %v704_v17, 0.0  ;;  %v5245_v17 = vpack.c.bf16 %v1109_v52, %v1107_v2  ;;  %v1111_v2 = vmax.f32 %v5160_v41, 0.0  ;;  %v1113_v52 = vmax.f32 %v5168_v23, 0.0 }
 0x176   :  { %1490 = vmatmul.bf16.gmra.mxu3 %v5191_v53 }
 0x177   :  { %8895 = vst [vmem:[#allocation20_spill] sm:$0xff] %v5245_v17 }
 0x178   :  { %v792_v38 = vpop.f32.mrf.mxu2  ;;  %v616_v43 = vpop.f32.mrf.mxu0 }
 0x179   :  { %v793_v45 = vadd.f32 %v792_v38, %v4775_v0  ;;  %v881_v28 = vpop.f32.mrf.mxu3  ;;  %v617_v55 = vadd.f32 %v616_v43, %v4759_v51  ;;  %v705_v61 = vpop.f32.mrf.mxu1 }
 0x17b   :  { %v5232_v14 = vadd.f32 %v881_v28, %v793_v45  ;;  %v706_v9 = vadd.f32 %v705_v61, %v617_v55 }
 0x17d   :  { %v1128_v15 = vmax.f32 %v706_v9, 0.0 }
 0x17f   :  { %v5234_v39 = vpack.c.bf16 %v1128_v15, %v1126_v26 }
 0x180   :  { %v794_v27 = vpop.f32.mrf.mxu2  ;;  %v619_v11 = vpop.f32.mrf.mxu0 }
 0x181   :  { %8894 = vst [vmem:[#allocation19_spill] sm:$0xff] %v5234_v39  ;;  %v795_v22 = vadd.f32 %v794_v27, %v4775_v0  ;;  %v883_v63 = vpop.f32.mrf.mxu3  ;;  %v620_v34 = vadd.f32 %v619_v11, %v4759_v51  ;;  %v708_v38 = vpop.f32.mrf.mxu1 }
 0x183   :  { %v5240_v43 = vadd.f32 %v883_v63, %v795_v22  ;;  %v709_v45 = vadd.f32 %v708_v38, %v620_v34  ;;  %934 = vmatmul.bf16.gmra.mxu0 %v4710_v32 }
 0x184   :  { %1023 = vmatmul.bf16.gmra.mxu1 %v4712_v33 }
 0x185   :  { %1406 = vmatmul.bf16.gmra.mxu2 %v5106_v48  ;;  %v1130_v32 = vmax.f32 %v709_v45, 0.0  ;;  %v5263_v45 = vpack.c.bf16 %v1113_v52, %v1111_v2  ;;  %v4304_v2 = vld [vmem:[%s8640_s2] sm:$0x7] }
 0x186   :  { %1495 = vmatmul.bf16.gmra.mxu3 %v5209_v12  ;;  %v5273_v52 = vperm.slane %v4304_v2, 2 }
 0x187   :  { %8897 = vst [vmem:[#allocation22_spill] sm:$0xff] %v5263_v45 }
 0x188   :  { %v797_v50 = vpop.f32.mrf.mxu2  ;;  %v621_v55 = vpop.f32.mrf.mxu0 }
 0x189   :  { %v798_v21 = vadd.f32 %v797_v50, %v4775_v0  ;;  %v886_v28 = vpop.f32.mrf.mxu3  ;;  %v622_v61 = vadd.f32 %v621_v55, %v4759_v51  ;;  %v710_v9 = vpop.f32.mrf.mxu1 }
 0x18b   :  { %v5250_v26 = vadd.f32 %v886_v28, %v798_v21  ;;  %v711_v15 = vadd.f32 %v710_v9, %v622_v61 }
 0x18d   :  { %v1132_v27 = vmax.f32 %v711_v15, 0.0 }
 0x18f   :  { %v5252_v22 = vpack.c.bf16 %v1132_v27, %v1130_v32  ;;  %v8652_v27 = vlaneseq }
 0x190   :  { %v799_v33 = vpop.f32.mrf.mxu2  ;;  %v624_v34 = vpop.f32.mrf.mxu0 }
 0x191   :  { %8896 = vst [vmem:[#allocation21_spill] sm:$0xff] %v5252_v22  ;;  %v800_v63 = vadd.f32 %v799_v33, %v4775_v0  ;;  %v888_v11 = vpop.f32.mrf.mxu3  ;;  %v625_v38 = vadd.f32 %v624_v34, %v4759_v51  ;;  %v713_v50 = vpop.f32.mrf.mxu1 }
 0x193   :  { %v5258_v55 = vadd.f32 %v888_v11, %v800_v63  ;;  %v714_v21 = vadd.f32 %v713_v50, %v625_v38  ;;  %939 = vmatmul.bf16.gmra.mxu0 %v4742_v46  ;;  %v5276_v63 = vand.u32 127, %v8652_v27  ;;  %v1117_v38 = vmax.f32 %v5186_v24, 0.0 }
 0x194   :  { %1028 = vmatmul.bf16.gmra.mxu1 %v4744_v47 }
 0x195   :  { %1411 = vmatmul.bf16.gmra.mxu2 %v5126_v16  ;;  %v1134_v33 = vmax.f32 %v714_v21, 0.0  ;;  %vm1790_vm0 = vcmp.lt.s32.totalorder %v5276_v63, 8  ;;  %vm2047_vm1 = vcmp.lt.s32.totalorder %v5276_v63, 7 }
 0x196   :  { %1500 = vmatmul.bf16.gmra.mxu3 %v5227_v31  ;;  %v8913_v31 = vld [vmem:[#allocation10_spill] sm:$0xff] }
 0x198   :  { %v802_v41 = vpop.f32.mrf.mxu2  ;;  %v626_v61 = vpop.f32.mrf.mxu0 }
 0x199   :  { %v803_v23 = vadd.f32 %v802_v41, %v4775_v0  ;;  %v891_v28 = vpop.f32.mrf.mxu3  ;;  %v627_v9 = vadd.f32 %v626_v61, %v4759_v51  ;;  %v715_v15 = vpop.f32.mrf.mxu1  ;;  %v1115_v51 = vmax.f32 %v5178_v54, 0.0  ;;  %v1202_v61 = vld [vmem:[%s8642_s4] sm:$0x3] }
 0x19b   :  { %v5268_v32 = vadd.f32 %v891_v28, %v803_v23  ;;  %v716_v46 = vadd.f32 %v715_v15, %v627_v9  ;;  %v5295_v54 = vpack.c.bf16 %v1117_v38, %v1115_v51 }
 0x19d   :  { %v1136_v47 = vmax.f32 %v716_v46, 0.0  ;;  %8899 = vst [vmem:[#allocation24_spill] sm:$0xff] %v5295_v54 }
 0x19f   :  { %v5278_v34 = vpack.c.bf16 %v1136_v47, %v1134_v33 }
 0x1a0   :  { %v804_v11 = vpop.f32.mrf.mxu2  ;;  %v905_v41 = vpop.f32.mrf.mxu0 }
 0x1a1   :  { %8898 = vst [vmem:[#allocation23_spill] sm:$0xff] %v5278_v34  ;;  %v805_v50 = vadd.f32 %v804_v11, %v4775_v0  ;;  %v893_v21 = vpop.f32.mrf.mxu3  ;;  %v906_v23 = vadd.f32 %v905_v41, %v5273_v52  ;;  %v994_v28 = vpop.f32.mrf.mxu1  ;;  %v5293_v0 = vperm.slane %v1202_v61, 0  ;;  %v1121_v41 = vmax.f32 %v5204_v42, 0.0 }
 0x1a3   :  { %v5287_v9 = vadd.f32 %v893_v21, %v805_v50  ;;  %v995_v15 = vadd.f32 %v994_v28, %v906_v23  ;;  %944 = vmatmul.bf16.gmra.mxu0 %v4767_v56  ;;  %v1119_v21 = vmax.f32 %v5196_v60, 0.0 }
 0x1a4   :  { %1033 = vmatmul.bf16.gmra.mxu1 %v4769_v58 }
 0x1a5   :  { %1416 = vmatmul.bf16.gmra.mxu2 %v5144_v36  ;;  %v5300_v24 = vsel %vm1790_vm0, %v995_v15, -inf  ;;  %v8912_v36 = vld [vmem:[#allocation8_spill] sm:$0xff] }
 0x1a6   :  { %1505 = vmatmul.bf16.gmra.mxu3 %v5245_v17  ;;  %1823 = vmax.xlane.f32.xlu0 %v5300_v24  ;;  %v8910_v17 = vld [vmem:[#allocation7_spill] sm:$0xff] }
 0x1a8   :  { %v1377_v46 = vpop.f32.mrf.mxu2  ;;  %v907_v47 = vpop.f32.mrf.mxu0 }
 0x1a9   :  { %v1466_v33 = vpop.f32.mrf.mxu3  ;;  %v1378_v56 = vadd.f32 %v1377_v46, %v5293_v0  ;;  %v908_v58 = vadd.f32 %v907_v47, %v5273_v52  ;;  %v996_v2 = vpop.f32.mrf.mxu1  ;;  %v5321_v47 = vpack.c.bf16 %v1121_v41, %v1119_v21  ;;  %v4146_v41 = vld [vmem:[%s8641_s3 + $0x74] sm:$0xf] }
 0x1ab   :  { %v5305_v11 = vadd.f32 %v1466_v33, %v1378_v56  ;;  %v997_v51 = vadd.f32 %v996_v2, %v908_v58  ;;  %8900 = vst [vmem:[#allocation25_spill] sm:$0xff] %v5321_v47 }
 0x1ad   :  { %v5309_v38 = vsel %vm1790_vm0, %v997_v51, -inf }
 0x1ae   :  { %1825 = vmax.xlane.f32.xlu0 %v5309_v38 }
 0x1b0   :  { %v1379_v50 = vpop.f32.mrf.mxu2  ;;  %v910_v61 = vpop.f32.mrf.mxu0 }
 0x1b1   :  { %v1468_v23 = vpop.f32.mrf.mxu3  ;;  %v1380_v28 = vadd.f32 %v1379_v50, %v5293_v0  ;;  %v911_v15 = vadd.f32 %v910_v61, %v5273_v52  ;;  %v999_v46 = vpop.f32.mrf.mxu1 }
 0x1b3   :  { %v5316_v33 = vadd.f32 %v1468_v23, %v1380_v28  ;;  %v1000_v56 = vadd.f32 %v999_v46, %v911_v15  ;;  %949 = vmatmul.bf16.gmra.mxu0 %v4806_v29  ;;  %v3856_v23 = vld [vmem:[%s8641_s3 + $0x78] sm:$0xf0]  ;;  %v4162_v15 = vld [vmem:[%s8641_s3 + $0xf4] sm:$0xf] }
 0x1b4   :  { %1038 = vmatmul.bf16.gmra.mxu1 %v4809_v35  ;;  %v3859_v61 = vor.u32 %v4146_v41, %v3856_v23  ;;  %v3920_v46 = vld [vmem:[%s8641_s3 + $0xf8] sm:$0xf0] }
 0x1b5   :  { %1421 = vmatmul.bf16.gmra.mxu2 %v5162_v19  ;;  %v5326_v60 = vsel %vm1790_vm0, %v1000_v56, -inf  ;;  %v3923_v56 = vor.u32 %v4162_v15, %v3920_v46  ;;  %v8909_v19 = vld [vmem:[#allocation6_spill] sm:$0xff] }
 0x1b6   :  { %1510 = vmatmul.bf16.gmra.mxu3 %v5263_v45  ;;  %1827 = vmax.xlane.f32.xlu1 %v5326_v60 }
 0x1b7   :  { %1546 = vmatpush.bf16.msra.mxu0 %v3859_v61  ;;  %1635 = vmatpush.bf16.msra.mxu1 %v3923_v56 }
 0x1b8   :  { %v1382_v42 = vpop.f32.mrf.mxu2  ;;  %v912_v51 = vpop.f32.mrf.mxu0 }
 0x1b9   :  { %v1471_v58 = vpop.f32.mrf.mxu3  ;;  %v1383_v2 = vadd.f32 %v1382_v42, %v5293_v0  ;;  %v913_v29 = vadd.f32 %v912_v51, %v5273_v52  ;;  %v1001_v35 = vpop.f32.mrf.mxu1 }
 0x1bb   :  { %v5331_v50 = vadd.f32 %v1471_v58, %v1383_v2  ;;  %v1002_v21 = vadd.f32 %v1001_v35, %v913_v29  ;;  %v1123_v58 = vmax.f32 %v5214_v8, 0.0  ;;  %v1125_v2 = vmax.f32 %v5222_v1, 0.0 }
 0x1bd   :  { %v5341_v28 = vsel %vm1790_vm0, %v1002_v21, -inf  ;;  %v5359_v8 = vpack.c.bf16 %v1125_v2, %v1123_v58 }
 0x1be   :  { %1829 = vmax.xlane.f32.xlu1 %v5341_v28 }
 0x1bf   :  { %8901 = vst [vmem:[#allocation26_spill] sm:$0xff] %v5359_v8 }
 0x1c0   :  { %v1384_v42 = vpop.f32.mrf.mxu2  ;;  %v915_v35 = vpop.f32.mrf.mxu0 }
 0x1c1   :  { %v1473_v51 = vpop.f32.mrf.mxu3  ;;  %v1385_v29 = vadd.f32 %v1384_v42, %v5293_v0  ;;  %v916_v21 = vadd.f32 %v915_v35, %v5273_v52  ;;  %v1004_v41 = vpop.f32.mrf.mxu1 }
 0x1c3   :  { %v5354_v23 = vadd.f32 %v1473_v51, %v1385_v29  ;;  %v1005_v27 = vadd.f32 %v1004_v41, %v916_v21  ;;  %954 = vmatmul.bf16.gmra.mxu0 %v4834_v6  ;;  %v1127_v51 = vmax.f32 %v5232_v14, 0.0  ;;  %v1129_v29 = vmax.f32 %v5240_v43, 0.0 }
 0x1c4   :  { %1043 = vmatmul.bf16.gmra.mxu1 %v4839_v13 }
 0x1c5   :  { %1426 = vmatmul.bf16.gmra.mxu2 %v5180_v4  ;;  %v5364_v1 = vsel %vm1790_vm0, %v1005_v27, -inf  ;;  %v8906_v4 = vld [vmem:[#allocation4_spill] sm:$0xff] }
 0x1c6   :  { %1515 = vmatmul.bf16.gmra.mxu3 %v5295_v54  ;;  %1831 = vmax.xlane.f32.xlu2 %v5364_v1 }
 0x1c8   :  { %v1387_v61 = vpop.f32.mrf.mxu2  ;;  %v917_v56 = vpop.f32.mrf.mxu0 }
 0x1c9   :  { %v1476_v15 = vpop.f32.mrf.mxu3  ;;  %v1388_v46 = vadd.f32 %v1387_v61, %v5293_v0  ;;  %v918_v6 = vadd.f32 %v917_v56, %v5273_v52  ;;  %v1006_v13 = vpop.f32.mrf.mxu1 }
 0x1cb   :  { %v5369_v42 = vadd.f32 %v1476_v15, %v1388_v46  ;;  %v1007_v58 = vadd.f32 %v1006_v13, %v918_v6  ;;  %v5385_v6 = vpack.c.bf16 %v1129_v29, %v1127_v51  ;;  %v4144_v29 = vld [vmem:[%s8641_s3 + $0x64] sm:$0xf] }
 0x1cd   :  { %v5373_v2 = vsel %vm1790_vm0, %v1007_v58, -inf  ;;  %8902 = vst [vmem:[#allocation27_spill] sm:$0xff] %v5385_v6 }
 0x1ce   :  { %1833 = vmax.xlane.f32.xlu2 %v5373_v2 }
 0x1d0   :  { %v1389_v27 = vpop.f32.mrf.mxu2  ;;  %v920_v41 = vpop.f32.mrf.mxu0 }
 0x1d1   :  { %v1478_v35 = vpop.f32.mrf.mxu3  ;;  %v1390_v21 = vadd.f32 %v1389_v27, %v5293_v0  ;;  %v921_v61 = vadd.f32 %v920_v41, %v5273_v52  ;;  %v1009_v15 = vpop.f32.mrf.mxu1  ;;  %v4160_v41 = vld [vmem:[%s8641_s3 + $0xe4] sm:$0xf] }
 0x1d3   :  { %v5380_v46 = vadd.f32 %v1478_v35, %v1390_v21  ;;  %v1010_v56 = vadd.f32 %v1009_v15, %v921_v61  ;;  %959 = vmatmul.bf16.gmra.mxu0 %v4876_v59  ;;  %v3848_v21 = vld [vmem:[%s8641_s3 + $0x68] sm:$0xf0] }
 0x1d4   :  { %1048 = vmatmul.bf16.gmra.mxu1 %v4881_v3  ;;  %v3851_v61 = vor.u32 %v4144_v29, %v3848_v21  ;;  %v3912_v15 = vld [vmem:[%s8641_s3 + $0xe8] sm:$0xf0] }
 0x1d5   :  { %1431 = vmatmul.bf16.gmra.mxu2 %v5198_v18  ;;  %v5390_v14 = vsel %vm1790_vm0, %v1010_v56, -inf }
 0x1d6   :  { %1520 = vmatmul.bf16.gmra.mxu3 %v5321_v47  ;;  %1835 = vmax.xlane.f32.xlu0 %v5390_v14 }
 0x1d7   :  { %1547 = vmatpush.bf16.msra.mxu0 %v3851_v61 }
 0x1d8   :  { %v1392_v43 = vpop.f32.mrf.mxu2  ;;  %v922_v27 = vpop.f32.mrf.mxu0 }
 0x1d9   :  { %v1481_v13 = vpop.f32.mrf.mxu3  ;;  %v1393_v58 = vadd.f32 %v1392_v43, %v5293_v0  ;;  %v923_v59 = vadd.f32 %v922_v27, %v5273_v52  ;;  %v1011_v3 = vpop.f32.mrf.mxu1  ;;  %v3915_v43 = vor.u32 %v4160_v41, %v3912_v15  ;;  %v1133_v27 = vmax.f32 %v5258_v55, 0.0  ;;  %v8903_v41 = vld [vmem:[#allocation2_spill] sm:$0xff]  ;;  %v8904_v15 = vld [vmem:[#allocation3_spill] sm:$0xff] }
 0x1db   :  { %v5395_v35 = vadd.f32 %v1481_v13, %v1393_v58  ;;  %v1012_v51 = vadd.f32 %v1011_v3, %v923_v59  ;;  %1636 = vmatpush.bf16.msra.mxu1 %v3915_v43  ;;  %v1131_v58 = vmax.f32 %v5250_v26, 0.0 }
 0x1dd   :  { %v5411_v56 = vsel %vm1790_vm0, %v1012_v51, -inf  ;;  %v5423_v61 = vpack.c.bf16 %v1133_v27, %v1131_v58  ;;  %v4142_v58 = vld [vmem:[%s8641_s3 + $0x54] sm:$0xf]  ;;  %v3840_v27 = vld [vmem:[%s8641_s3 + $0x58] sm:$0xf0] }
 0x1de   :  { %1837 = vmax.xlane.f32.xlu1 %v5411_v56 }
 0x1df   :  { %8905 = vst [vmem:[#allocation2_spill] sm:$0xff] %v5423_v61 }
 0x1e0   :  { %v1394_v13 = vpop.f32.mrf.mxu2  ;;  %v925_v29 = vpop.f32.mrf.mxu0 }
 0x1e1   :  { %v1483_v59 = vpop.f32.mrf.mxu3  ;;  %v1395_v3 = vadd.f32 %v1394_v13, %v5293_v0  ;;  %v926_v21 = vadd.f32 %v925_v29, %v5273_v52  ;;  %v1014_v47 = vpop.f32.mrf.mxu1 }
 0x1e3   :  { %v5418_v18 = vadd.f32 %v1483_v59, %v1395_v3  ;;  %v1015_v51 = vadd.f32 %v1014_v47, %v926_v21  ;;  %964 = vmatmul.bf16.gmra.mxu0 %v8903_v41  ;;  %v4158_v3 = vld [vmem:[%s8641_s3 + $0xd4] sm:$0xf]  ;;  %v3843_v21 = vor.u32 %v4142_v58, %v3840_v27 }
 0x1e4   :  { %1053 = vmatmul.bf16.gmra.mxu1 %v8904_v15 }
 0x1e5   :  { %1436 = vmatmul.bf16.gmra.mxu2 %v5216_v30  ;;  %v5428_v26 = vsel %vm1790_vm0, %v1015_v51, -inf  ;;  %v3904_v51 = vld [vmem:[%s8641_s3 + $0xd8] sm:$0xf0]  ;;  %1548 = vmatpush.bf16.msra.mxu0 %v3843_v21  ;;  %v1137_v21 = vmax.f32 %v5287_v9, 0.0 }
 0x1e6   :  { %1525 = vmatmul.bf16.gmra.mxu3 %v5359_v8  ;;  %1839 = vmax.xlane.f32.xlu1 %v5428_v26  ;;  %v3907_v41 = vor.u32 %v4158_v3, %v3904_v51  ;;  %v3896_v3 = vld [vmem:[%s8641_s3 + $0xc8] sm:$0xf0] }
 0x1e8   :  { %v5431_v55 = vpop.f32.mrf.mxu2  ;;  %v927_v47 = vpop.f32.mrf.mxu0  ;;  %1637 = vmatpush.bf16.msra.mxu1 %v3907_v41 }
 0x1e9   :  { %v5433_v43 = vpop.f32.mrf.mxu3  ;;  %v928_v13 = vadd.f32 %v927_v47, %v5273_v52  ;;  %v1016_v59 = vpop.f32.mrf.mxu1  ;;  %v4140_v47 = vld [vmem:[%s8641_s3 + $0x44] sm:$0xf] }
 0x1eb   :  { %v1017_v29 = vadd.f32 %v1016_v59, %v928_v13  ;;  %v3832_v13 = vld [vmem:[%s8641_s3 + $0x48] sm:$0xf0]  ;;  %v4156_v59 = vld [vmem:[%s8641_s3 + $0xc4] sm:$0xf] }
 0x1ec   :  { %v3835_v27 = vor.u32 %v4140_v47, %v3832_v13  ;;  %v3899_v8 = vor.u32 %v4156_v59, %v3896_v3  ;;  %v4138_v47 = vld [vmem:[%s8641_s3 + $0x34] sm:$0xf]  ;;  %v3824_v13 = vld [vmem:[%s8641_s3 + $0x38] sm:$0xf0] }
 0x1ed   :  { %v5450_v15 = vsel %vm1790_vm0, %v1017_v29, -inf  ;;  %v1135_v29 = vmax.f32 %v5268_v32, 0.0  ;;  %v4154_v32 = vld [vmem:[%s8641_s3 + $0xb4] sm:$0xf]  ;;  %v3827_v59 = vor.u32 %v4138_v47, %v3824_v13  ;;  %v3880_v47 = vld [vmem:[%s8641_s3 + $0xa8] sm:$0xf0] }
 0x1ee   :  { %1841 = vmax.xlane.f32.xlu2 %v5450_v15  ;;  %1549 = vmatpush.bf16.msra.mxu0 %v3835_v27  ;;  %v8907_v27 = vld [vmem:[#allocation5_spill] sm:$0xff] }
 0x1ef   :  { %1638 = vmatpush.bf16.msra.mxu1 %v3899_v8  ;;  %v3888_v8 = vld [vmem:[%s8641_s3 + $0xb8] sm:$0xf0]  ;;  %v5487_v3 = vpack.c.bf16 %v1137_v21, %v1135_v29 }
 0x1f0   :  { %v5462_v58 = vpop.f32.mrf.mxu2  ;;  %v930_v41 = vpop.f32.mrf.mxu0 }
 0x1f1   :  { %v5469_v51 = vpop.f32.mrf.mxu3  ;;  %v931_v30 = vadd.f32 %v930_v41, %v5273_v52  ;;  %v1019_v54 = vpop.f32.mrf.mxu1  ;;  %8908 = vst [vmem:[#allocation3_spill] sm:$0xff] %v5487_v3  ;;  %v3891_v41 = vor.u32 %v4154_v32, %v3888_v8 }
 0x1f2   :  { %1550 = vmatpush.bf16.msra.mxu0 %v3827_v59 }
 0x1f3   :  { %v1020_v9 = vadd.f32 %v1019_v54, %v931_v30  ;;  %969 = vmatmul.bf16.gmra.mxu0 %v8906_v4  ;;  %1639 = vmatpush.bf16.msra.mxu1 %v3891_v41  ;;  %v4136_v4 = vld [vmem:[%s8641_s3 + $0x24] sm:$0xf]  ;;  %v3816_v30 = vld [vmem:[%s8641_s3 + $0x28] sm:$0xf0]  ;;  %v3808_v41 = vld [vmem:[%s8641_s3 + $0x18] sm:$0xf0] }
 0x1f4   :  { %1058 = vmatmul.bf16.gmra.mxu1 %v8907_v27  ;;  %v4152_v54 = vld [vmem:[%s8641_s3 + $0xa4] sm:$0xf]  ;;  %v3819_v21 = vor.u32 %v4136_v4, %v3816_v30  ;;  %v4134_v27 = vld [vmem:[%s8641_s3 + $0x14] sm:$0xf] }
 0x1f5   :  { %1441 = vmatmul.bf16.gmra.mxu2 %v5234_v39  ;;  %v5492_v45 = vsel %vm1790_vm0, %v1020_v9, -inf  ;;  %v3883_v9 = vor.u32 %v4152_v54, %v3880_v47  ;;  %v4150_v4 = vld [vmem:[%s8641_s3 + $0x94] sm:$0xf]  ;;  %v3872_v54 = vld [vmem:[%s8641_s3 + $0x98] sm:$0xf0] }
 0x1f6   :  { %1530 = vmatmul.bf16.gmra.mxu3 %v5385_v6  ;;  %1843 = vmax.xlane.f32.xlu0 %v5492_v45  ;;  %v3811_v6 = vor.u32 %v4134_v27, %v3808_v41 }
 0x1f7   :  { %1551 = vmatpush.bf16.msra.mxu0 %v3819_v21  ;;  %1640 = vmatpush.bf16.msra.mxu1 %v3883_v9  ;;  %v3875_v21 = vor.u32 %v4150_v4, %v3872_v54  ;;  %v3800_v9 = vld [vmem:[%s8641_s3 + $0x8] sm:$0xf0] }
 0x1f8   :  { %v5504_v29 = vpop.f32.mrf.mxu2  ;;  %v932_v32 = vpop.f32.mrf.mxu0 }
 0x1f9   :  { %v5509_v13 = vpop.f32.mrf.mxu3  ;;  %v933_v59 = vadd.f32 %v932_v32, %v5273_v52  ;;  %v1021_v8 = vpop.f32.mrf.mxu1  ;;  %v4132_v32 = vld [vmem:[%s8641_s3 + $0x4] sm:$0xf] }
 0x1fa   :  { %v3803_v27 = vor.u32 %v4132_v32, %v3800_v9 }
 0x1fb   :  { %v1022_v30 = vadd.f32 %v1021_v8, %v933_v59  ;;  %1552 = vmatpush.bf16.msra.mxu0 %v3811_v6  ;;  %1641 = vmatpush.bf16.msra.mxu1 %v3875_v21  ;;  %v4148_v59 = vld [vmem:[%s8641_s3 + $0x84] sm:$0xf]  ;;  %v3864_v6 = vld [vmem:[%s8641_s3 + $0x88] sm:$0xf0] }
 0x1fd   :  { %v5526_v47 = vsel %vm1790_vm0, %v1022_v30, -inf  ;;  %v3867_v30 = vor.u32 %v4148_v59, %v3864_v6 }
 0x1fe   :  { %1845 = vmax.xlane.f32.xlu1 %v5526_v47 }
 0x1ff   :  { %1553 = vmatpush.bf16.msra.mxu0 %v3803_v27  ;;  %1642 = vmatpush.bf16.msra.mxu1 %v3867_v30 }
 0x200   :  { %v1404_v8 = vpop.f32.mrf.mxu2  ;;  %v935_v4 = vpop.f32.mrf.mxu0 }
 0x201   :  { %v5541_v41 = vpop.f32.mrf.mxu3  ;;  %v936_v54 = vadd.f32 %v935_v4, %v5273_v52  ;;  %v1024_v21 = vpop.f32.mrf.mxu1 }
 0x203   :  { %v1025_v39 = vadd.f32 %v1024_v21, %v936_v54  ;;  %974 = vmatmul.bf16.gmra.mxu0 %v8909_v19 }
 0x204   :  { %1063 = vmatmul.bf16.gmra.mxu1 %v8910_v17 }
 0x205   :  { %1446 = vmatmul.bf16.gmra.mxu2 %v5252_v22  ;;  %v5550_v32 = vsel %vm1790_vm0, %v1025_v39, -inf }
 0x206   :  { %1535 = vmatmul.bf16.gmra.mxu3 %v5423_v61  ;;  %8911 = vst [vmem:[#allocation4_spill] sm:$0xff] %v5550_v32  ;;  %1847 = vmax.xlane.f32.xlu0 %v5550_v32 }
 0x208   :  { %v1407_v9 = vpop.f32.mrf.mxu2  ;;  %v937_v6 = vpop.f32.mrf.mxu0 }
 0x209   :  { %v1496_v59 = vpop.f32.mrf.mxu3  ;;  %v938_v27 = vadd.f32 %v937_v6, %v5273_v52  ;;  %v1026_v4 = vpop.f32.mrf.mxu1 }
 0x20b   :  { %v1027_v30 = vadd.f32 %v1026_v4, %v938_v27 }
 0x20d   :  { %v5556_v19 = vsel %vm1790_vm0, %v1027_v30, -inf }
 0x20e   :  { %1849 = vmax.xlane.f32.xlu1 %v5556_v19 }
 0x210   :  { %v1409_v17 = vpop.f32.mrf.mxu2  ;;  %v940_v21 = vpop.f32.mrf.mxu0 }
 0x211   :  { %v1498_v54 = vpop.f32.mrf.mxu3  ;;  %v941_v39 = vadd.f32 %v940_v21, %v5273_v52  ;;  %v1029_v61 = vpop.f32.mrf.mxu1 }
 0x213   :  { %v1030_v22 = vadd.f32 %v1029_v61, %v941_v39  ;;  %979 = vmatmul.bf16.gmra.mxu0 %v8912_v36 }
 0x214   :  { %1068 = vmatmul.bf16.gmra.mxu1 %v8913_v31 }
 0x215   :  { %1451 = vmatmul.bf16.gmra.mxu2 %v5278_v34  ;;  %v5566_v6 = vsel %vm1790_vm0, %v1030_v22, -inf }
 0x216   :  { %1540 = vmatmul.bf16.gmra.mxu3 %v5487_v3  ;;  %8914 = vst [vmem:[#allocation5_spill] sm:$0xff] %v5566_v6  ;;  %1851 = vmax.xlane.f32.xlu2 %v5566_v6  ;;  %v1410_v6 = vadd.f32 %v1409_v17, %v5293_v0 }
 0x218   :  { %v1412_v27 = vpop.f32.mrf.mxu2  ;;  %v942_v30 = vpop.f32.mrf.mxu0  ;;  %v1499_v17 = vadd.f32 %v1498_v54, %v1410_v6 }
 0x219   :  { %v1501_v4 = vpop.f32.mrf.mxu3  ;;  %v943_v21 = vadd.f32 %v942_v30, %v5273_v52  ;;  %v1031_v61 = vpop.f32.mrf.mxu1  ;;  %v1413_v22 = vadd.f32 %v1412_v27, %v5293_v0 }
 0x21a   :  { %v1824_v39 = vpop.xlane.xlu0 %1823 }
 0x21b   :  { %v1887_v36 = vsub.f32 %v5300_v24, %v1824_v39  ;;  %v1032_v31 = vadd.f32 %v1031_v61, %v943_v21  ;;  %v1408_v21 = vadd.f32 %v1407_v9, %v5293_v0  ;;  %v1502_v61 = vadd.f32 %v1501_v4, %v1413_v22 }
 0x21c   :  { %v1750_v22 = vmax.f32 %v1499_v17, 0.0 }
 0x21d   :  { %v1919_v16 = vmul.f32 1.442695, %v1887_v36  ;;  %v5573_v3 = vsel %vm1790_vm0, %v1032_v31, -inf }
 0x21e   :  { %8915 = vst [vmem:[#allocation6_spill] sm:$0xff] %v5573_v3  ;;  %1853 = vmax.xlane.f32.xlu0 %v5573_v3 }
 0x21f   :  { %4176 = vpow2.f32 %v1919_v16  ;;  %v1405_v16 = vadd.f32 %v1404_v8, %v5293_v0  ;;  %v1400_v8 = vadd.f32 %v5462_v58, %v5293_v0 }
 0x220   :  { %v1414_v34 = vpop.f32.mrf.mxu2  ;;  %v945_v12 = vpop.f32.mrf.mxu0 }
 0x221   :  { %v1503_v32 = vpop.f32.mrf.mxu3  ;;  %v1415_v30 = vadd.f32 %v1414_v34, %v5293_v0  ;;  %v1034_v48 = vpop.f32.mrf.mxu1  ;;  %v946_v34 = vadd.f32 %v945_v12, %v5273_v52  ;;  %v1494_v12 = vadd.f32 %v5541_v41, %v1405_v16 }
 0x222   :  { %v1826_v24 = vpop.xlane.xlu0 %1825 }
 0x223   :  { %v1504_v39 = vadd.f32 %v1503_v32, %v1415_v30  ;;  %v1888_v27 = vsub.f32 %v5309_v38, %v1826_v24  ;;  %1554 = vmatmul.bf16.vlgmr.msra.gmra.mxu0 %v4804_v25  ;;  %v1403_v32 = vadd.f32 %v5504_v29, %v5293_v0  ;;  %v1497_v38 = vadd.f32 %v1496_v59, %v1408_v21 }
 0x224   :  { %1643 = vmatmul.bf16.vlgmr.msra.gmra.mxu1 %v4816_v44  ;;  %v1752_v25 = vmax.f32 %v1502_v61, 0.0  ;;  %v1035_v44 = vadd.f32 %v1034_v48, %v946_v34  ;;  %v1489_v21 = vadd.f32 %v5469_v51, %v1400_v8 }
 0x225   :  { %v4177_v36 = vpop.eup %4176  ;;  %v1754_v31 = vmax.f32 %v1504_v39, 0.0  ;;  %v1921_v3 = vmul.f32 1.442695, %v1888_v27  ;;  %v1492_v59 = vadd.f32 %v5509_v13, %v1403_v32  ;;  %v1748_v58 = vmax.f32 %v1497_v38, 0.0 }
 0x226   :  { %1983 = vadd.xlane.f32.xlu2 %v4177_v36  ;;  %v2048_v9 = vsel %vm2047_vm1, %v4177_v36, 0.0  ;;  %v5605_v39 = vsel %vm1790_vm0, %v1035_v44, -inf  ;;  %v1746_v27 = vmax.f32 %v1494_v12, 0.0  ;;  %v1742_v17 = vmax.f32 %v1489_v21, 0.0 }
 0x227   :  { %4178 = vpow2.f32 %v1921_v3  ;;  %3180 = vmatpush.msra.mxu2 %v1754_v31  ;;  %2080 = vmax.xlane.f32.xlu1 %v2048_v9  ;;  %v1398_v3 = vadd.f32 %v5431_v55, %v5293_v0  ;;  %v1738_v12 = vmax.f32 %v5418_v18, 0.0  ;;  %v1734_v18 = vmax.f32 %v5380_v46, 0.0 }
 0x228   :  { %v5592_v54 = vpop.f32.mrf.mxu2  ;;  %v947_v4 = vpop.f32.mrf.mxu0 }
 0x229   :  { %v5595_v6 = vpop.f32.mrf.mxu3  ;;  %3181 = vmatpush.msra.mxu2 %v1752_v25  ;;  %v1036_v30 = vpop.f32.mrf.mxu1  ;;  %v948_v48 = vadd.f32 %v947_v4, %v5273_v52  ;;  %v1487_v55 = vadd.f32 %v5433_v43, %v1398_v3  ;;  %v1732_v3 = vmax.f32 %v5369_v42, 0.0 }
 0x22a   :  { %v1828_v29 = vpop.xlane.xlu1 %1827 }
 0x22b   :  { %v1889_v24 = vsub.f32 %v5326_v60, %v1828_v29  ;;  %3182 = vmatpush.msra.mxu2 %v1750_v22  ;;  %v1744_v60 = vmax.f32 %v1492_v59, 0.0  ;;  %v1037_v51 = vadd.f32 %v1036_v30, %v948_v48  ;;  %v1740_v32 = vmax.f32 %v1487_v55, 0.0 }
 0x22d   :  { %v4179_v41 = vpop.eup %4178  ;;  %v1923_v61 = vmul.f32 1.442695, %v1889_v24  ;;  %3183 = vmatpush.msra.mxu2 %v1748_v58  ;;  %v5619_v8 = vsel %vm1790_vm0, %v1037_v51, -inf  ;;  %v1724_v51 = vmax.f32 %v5305_v11, 0.0 }
 0x22e   :  { %1855 = vmax.xlane.f32.xlu2 %v5605_v39  ;;  %1985 = vadd.xlane.f32.xlu0 %v4179_v41 }
 0x22f   :  { %4180 = vpow2.f32 %v1923_v61  ;;  %3184 = vmatpush.msra.mxu2 %v1746_v27  ;;  %v1726_v27 = vmax.f32 %v5316_v33, 0.0 }
 0x230   :  { %v5609_v13 = vpop.f32.mrf.mxu2  ;;  %v950_v36 = vpop.f32.mrf.mxu0 }
 0x231   :  { %v5611_v16 = vpop.f32.mrf.mxu3  ;;  %3185 = vmatpush.msra.mxu2 %v1744_v60  ;;  %v1039_v31 = vpop.f32.mrf.mxu1  ;;  %v951_v38 = vadd.f32 %v950_v36, %v5273_v52 }
 0x232   :  { %v1830_v34 = vpop.xlane.xlu1 %1829 }
 0x233   :  { %v1890_v9 = vsub.f32 %v5341_v28, %v1830_v34  ;;  %3186 = vmatpush.msra.mxu2 %v1742_v17  ;;  %1559 = vmatmul.bf16.gmra.mxu0 %v4836_v7  ;;  %v2049_v28 = vsel %vm2047_vm1, %v4179_v41, 0.0  ;;  %v1736_v7 = vmax.f32 %v5395_v35, 0.0  ;;  %v1730_v41 = vmax.f32 %v5354_v23, 0.0 }
 0x234   :  { %1648 = vmatmul.bf16.gmra.mxu1 %v5119_v57  ;;  %v1040_v57 = vadd.f32 %v1039_v31, %v951_v38 }
 0x235   :  { %v4181_v43 = vpop.eup %4180  ;;  %v1925_v25 = vmul.f32 1.442695, %v1890_v9  ;;  %3187 = vmatpush.msra.mxu2 %v1740_v32 }
 0x236   :  { %1987 = vadd.xlane.f32.xlu1 %v4181_v43  ;;  %1857 = vmax.xlane.f32.xlu0 %v5619_v8  ;;  %v5635_v58 = vsel %vm1790_vm0, %v1040_v57, -inf  ;;  %v2050_v21 = vsel %vm2047_vm1, %v4181_v43, 0.0 }
 0x237   :  { %4182 = vpow2.f32 %v1925_v25  ;;  %2082 = vmax.xlane.f32.xlu2 %v2049_v28  ;;  %3188 = vmatpush.msra.mxu2 %v1738_v12 }
 0x238   :  { %v5626_v44 = vpop.f32.mrf.mxu2  ;;  %v952_v22 = vpop.f32.mrf.mxu0 }
 0x239   :  { %v5628_v4 = vpop.f32.mrf.mxu3  ;;  %3189 = vmatpush.msra.mxu2 %v1736_v7  ;;  %v1041_v30 = vpop.f32.mrf.mxu1  ;;  %v953_v46 = vadd.f32 %v952_v22, %v5273_v52 }
 0x23a   :  { %v1832_v29 = vpop.xlane.xlu2 %1831 }
 0x23b   :  { %v1891_v59 = vsub.f32 %v5364_v1, %v1832_v29  ;;  %3190 = vmatpush.msra.mxu2 %v1734_v18  ;;  %v1728_v1 = vmax.f32 %v5331_v50, 0.0  ;;  %v1042_v55 = vadd.f32 %v1041_v30, %v953_v46 }
 0x23d   :  { %v4183_v35 = vpop.eup %4182  ;;  %v1927_v24 = vmul.f32 1.442695, %v1891_v59  ;;  %3191 = vmatpush.msra.mxu2 %v1732_v3  ;;  %v5657_v11 = vsel %vm1790_vm0, %v1042_v55, -inf }
 0x23e   :  { %1859 = vmax.xlane.f32.xlu1 %v5635_v58  ;;  %2084 = vmax.xlane.f32.xlu0 %v2050_v21  ;;  %v2051_v33 = vsel %vm2047_vm1, %v4183_v35, 0.0 }
 0x23f   :  { %4184 = vpow2.f32 %v1927_v24  ;;  %1989 = vadd.xlane.f32.xlu2 %v4183_v35  ;;  %3192 = vmatpush.msra.mxu2 %v1730_v41 }
 0x240   :  { %v5643_v42 = vpop.f32.mrf.mxu2  ;;  %v955_v61 = vpop.f32.mrf.mxu0 }
 0x241   :  { %v5645_v48 = vpop.f32.mrf.mxu3  ;;  %3193 = vmatpush.msra.mxu2 %v1728_v1  ;;  %v1044_v23 = vpop.f32.mrf.mxu1  ;;  %v956_v17 = vadd.f32 %v955_v61, %v5273_v52 }
 0x242   :  { %v1834_v60 = vpop.xlane.xlu2 %1833 }
 0x243   :  { %v1892_v36 = vsub.f32 %v5373_v2, %v1834_v60  ;;  %3194 = vmatpush.msra.mxu2 %v1726_v27  ;;  %1564 = vmatmul.bf16.gmra.mxu0 %v4878_v62  ;;  %v1045_v2 = vadd.f32 %v1044_v23, %v956_v17 }
 0x244   :  { %1653 = vmatmul.bf16.gmra.mxu1 %v5137_v49 }
 0x245   :  { %v4185_v50 = vpop.eup %4184  ;;  %v1929_v31 = vmul.f32 1.442695, %v1892_v36  ;;  %3195 = vmatpush.msra.mxu2 %v1724_v51  ;;  %v5668_v28 = vsel %vm1790_vm0, %v1045_v2, -inf }
 0x246   :  { %2086 = vmax.xlane.f32.xlu1 %v2051_v33  ;;  %1991 = vadd.xlane.f32.xlu0 %v4185_v50  ;;  %v2052_v7 = vsel %vm2047_vm1, %v4185_v50, 0.0 }
 0x247   :  { %4186 = vpow2.f32 %v1929_v31  ;;  %1861 = vmax.xlane.f32.xlu2 %v5657_v11 }
 0x248   :  { %v5660_v62 = vpop.f32.mrf.mxu2  ;;  %v957_v9 = vpop.f32.mrf.mxu0 }
 0x249   :  { %v5662_v34 = vpop.f32.mrf.mxu3  ;;  %v1046_v49 = vpop.f32.mrf.mxu1  ;;  %v958_v25 = vadd.f32 %v957_v9, %v5273_v52 }
 0x24a   :  { %v1836_v32 = vpop.xlane.xlu0 %1835 }
 0x24b   :  { %v1893_v43 = vsub.f32 %v5390_v14, %v1836_v32  ;;  %v1047_v22 = vadd.f32 %v1046_v49, %v958_v25 }
 0x24d   :  { %v4187_v38 = vpop.eup %4186  ;;  %v1931_v12 = vmul.f32 1.442695, %v1893_v43  ;;  %v5682_v24 = vsel %vm1790_vm0, %v1047_v22, -inf }
 0x24e   :  { %1993 = vadd.xlane.f32.xlu1 %v4187_v38  ;;  %1863 = vmax.xlane.f32.xlu0 %v5668_v28  ;;  %v2053_v21 = vsel %vm2047_vm1, %v4187_v38, 0.0 }
 0x24f   :  { %4188 = vpow2.f32 %v1931_v12  ;;  %2088 = vmax.xlane.f32.xlu2 %v2052_v7 }
 0x250   :  { %v5673_v57 = vpop.f32.mrf.mxu2  ;;  %v960_v18 = vpop.f32.mrf.mxu0 }
 0x251   :  { %v5675_v14 = vpop.f32.mrf.mxu3  ;;  %v1049_v30 = vpop.f32.mrf.mxu1  ;;  %v961_v41 = vadd.f32 %v960_v18, %v5273_v52 }
 0x252   :  { %v1838_v29 = vpop.xlane.xlu1 %1837 }
 0x253   :  { %v1894_v3 = vsub.f32 %v5411_v56, %v1838_v29  ;;  %1569 = vmatmul.bf16.gmra.mxu0 %v4908_v40 }
 0x254   :  { %1658 = vmatmul.bf16.gmra.mxu1 %v5155_v20  ;;  %v1050_v20 = vadd.f32 %v1049_v30, %v961_v41 }
 0x255   :  { %v4189_v59 = vpop.eup %4188  ;;  %v1933_v35 = vmul.f32 1.442695, %v1894_v3 }
 0x256   :  { %1865 = vmax.xlane.f32.xlu1 %v5682_v24  ;;  %2090 = vmax.xlane.f32.xlu0 %v2053_v21  ;;  %v2054_v23 = vsel %vm2047_vm1, %v4189_v59, 0.0  ;;  %v5698_v51 = vsel %vm1790_vm0, %v1050_v20, -inf }
 0x257   :  { %4190 = vpow2.f32 %v1933_v35  ;;  %1995 = vadd.xlane.f32.xlu2 %v4189_v59 }
 0x258   :  { %v5688_v56 = vpop.f32.mrf.mxu2  ;;  %v962_v46 = vpop.f32.mrf.mxu0 }
 0x259   :  { %v5690_v40 = vpop.f32.mrf.mxu3  ;;  %v1051_v1 = vpop.f32.mrf.mxu1  ;;  %v963_v55 = vadd.f32 %v962_v46, %v5273_v52 }
 0x25a   :  { %v1840_v61 = vpop.xlane.xlu1 %1839 }
 0x25b   :  { %v1895_v60 = vsub.f32 %v5428_v26, %v1840_v61  ;;  %v1052_v50 = vadd.f32 %v1051_v1, %v963_v55 }
 0x25d   :  { %v4191_v27 = vpop.eup %4190  ;;  %v1935_v33 = vmul.f32 1.442695, %v1895_v60  ;;  %v5710_v32 = vsel %vm1790_vm0, %v1052_v50, -inf }
 0x25e   :  { %1997 = vadd.xlane.f32.xlu0 %v4191_v27  ;;  %2092 = vmax.xlane.f32.xlu1 %v2054_v23  ;;  %v2055_v38 = vsel %vm2047_vm1, %v4191_v27, 0.0 }
 0x25f   :  { %1867 = vmax.xlane.f32.xlu2 %v5698_v51  ;;  %4192 = vpow2.f32 %v1935_v33 }
 0x260   :  { %v5701_v36 = vpop.f32.mrf.mxu2  ;;  %v965_v31 = vpop.f32.mrf.mxu0 }
 0x261   :  { %v5703_v17 = vpop.f32.mrf.mxu3  ;;  %v1054_v2 = vpop.f32.mrf.mxu1  ;;  %v966_v43 = vadd.f32 %v965_v31, %v5273_v52 }
 0x262   :  { %v1842_v9 = vpop.xlane.xlu2 %1841 }
 0x263   :  { %v1896_v49 = vsub.f32 %v5450_v15, %v1842_v9  ;;  %1574 = vmatmul.bf16.gmra.mxu0 %v4992_v37 }
 0x264   :  { %1663 = vmatmul.bf16.gmra.mxu1 %v5173_v10  ;;  %v1055_v10 = vadd.f32 %v1054_v2, %v966_v43 }
 0x265   :  { %v1937_v26 = vmul.f32 1.442695, %v1896_v49  ;;  %v4193_v22 = vpop.eup %4192 }
 0x266   :  { %1869 = vmax.xlane.f32.xlu0 %v5710_v32  ;;  %v5724_v3 = vsel %vm1790_vm0, %v1055_v10, -inf  ;;  %v2056_v55 = vsel %vm2047_vm1, %v4193_v22, 0.0 }
 0x267   :  { %4194 = vpow2.f32 %v1937_v26  ;;  %2094 = vmax.xlane.f32.xlu2 %v2055_v38 }
 0x268   :  { %v5716_v15 = vpop.f32.mrf.mxu2  ;;  %v967_v25 = vpop.f32.mrf.mxu0 }
 0x269   :  { %v5718_v37 = vpop.f32.mrf.mxu3  ;;  %v1056_v12 = vpop.f32.mrf.mxu1  ;;  %v968_v30 = vadd.f32 %v967_v25, %v5273_v52 }
 0x26a   :  { %v1844_v7 = vpop.xlane.xlu0 %1843 }
 0x26b   :  { %v1897_v29 = vsub.f32 %v5492_v45, %v1844_v7  ;;  %v1057_v35 = vadd.f32 %v1056_v12, %v968_v30  ;;  %v8916_v30 = vld [vmem:[#allocation9_spill] sm:$0xff] }
 0x26d   :  { %v4195_v18 = vpop.eup %4194  ;;  %v1939_v21 = vmul.f32 1.442695, %v1897_v29  ;;  %v5736_v27 = vsel %vm1790_vm0, %v1057_v35, -inf }
 0x26e   :  { %1999 = vadd.xlane.f32.xlu0 %v4193_v22  ;;  %2001 = vadd.xlane.f32.xlu1 %v4195_v18  ;;  %v2057_v9 = vsel %vm2047_vm1, %v4195_v18, 0.0 }
 0x26f   :  { %1871 = vmax.xlane.f32.xlu2 %v5724_v3  ;;  %4196 = vpow2.f32 %v1939_v21 }
 0x270   :  { %v5727_v59 = vpop.f32.mrf.mxu2  ;;  %v970_v46 = vpop.f32.mrf.mxu0 }
 0x271   :  { %v5729_v41 = vpop.f32.mrf.mxu3  ;;  %v971_v20 = vadd.f32 %v970_v46, %v5273_v52  ;;  %v1059_v1 = vpop.f32.mrf.mxu1  ;;  %v8917_v46 = vld [vmem:[#allocation16_spill] sm:$0xff] }
 0x272   :  { %v1846_v45 = vpop.xlane.xlu1 %1845 }
 0x273   :  { %v1060_v61 = vadd.f32 %v1059_v1, %v971_v20  ;;  %1579 = vmatmul.bf16.gmra.mxu0 %v5070_v5  ;;  %v1898_v60 = vsub.f32 %v5526_v47, %v1846_v45 }
 0x274   :  { %1668 = vmatmul.bf16.gmra.mxu1 %v5191_v53 }
 0x275   :  { %v5743_v23 = vsel %vm1790_vm0, %v1060_v61, -inf  ;;  %v4197_v33 = vpop.eup %4196  ;;  %v1941_v2 = vmul.f32 1.442695, %v1898_v60 }
 0x276   :  { %1873 = vmax.xlane.f32.xlu0 %v5736_v27  ;;  %1875 = vmax.xlane.f32.xlu1 %v5743_v23  ;;  %v2058_v47 = vsel %vm2047_vm1, %v4197_v33, 0.0 }
 0x277   :  { %2096 = vmax.xlane.f32.xlu2 %v2056_v55  ;;  %4198 = vpow2.f32 %v1941_v2 }
 0x278   :  { %v5747_v5 = vpop.f32.mrf.mxu2  ;;  %v972_v50 = vpop.f32.mrf.mxu0 }
 0x279   :  { %v5749_v53 = vpop.f32.mrf.mxu3  ;;  %v1061_v31 = vpop.f32.mrf.mxu1  ;;  %v973_v49 = vadd.f32 %v972_v50, %v5273_v52 }
 0x27a   :  { %v1848_v35 = vpop.xlane.xlu0 %1847 }
 0x27b   :  { %v1062_v25 = vadd.f32 %v1061_v31, %v973_v49 }
 0x27d   :  { %v4199_v29 = vpop.eup %4198  ;;  %v5766_v20 = vsel %vm1790_vm0, %v1062_v25, -inf }
 0x27e   :  { %2098 = vmax.xlane.f32.xlu0 %v2057_v9  ;;  %2100 = vmax.xlane.f32.xlu1 %v2058_v47 }
 0x27f   :  { %2003 = vadd.xlane.f32.xlu2 %v4197_v33  ;;  %v8920_v33 = vld [vmem:[#allocation5_spill] sm:$0xff] }
 0x280   :  { %v5756_v26 = vpop.f32.mrf.mxu2  ;;  %v975_v38 = vpop.f32.mrf.mxu0 }
 0x281   :  { %v5758_v43 = vpop.f32.mrf.mxu3  ;;  %v976_v10 = vadd.f32 %v975_v38, %v5273_v52  ;;  %v1064_v12 = vpop.f32.mrf.mxu1  ;;  %v2059_v38 = vsel %vm2047_vm1, %v4199_v29, 0.0 }
 0x282   :  { %v1850_v7 = vpop.xlane.xlu1 %1849 }
 0x283   :  { %v1900_v22 = vsub.f32 %v5556_v19, %v1850_v7  ;;  %v1065_v18 = vadd.f32 %v1064_v12, %v976_v10  ;;  %1584 = vmatmul.bf16.gmra.mxu0 %v8916_v30  ;;  %v8919_v19 = vld [vmem:[#allocation4_spill] sm:$0xff]  ;;  %v8922_v30 = vld [vmem:[#allocation11_spill] sm:$0xff] }
 0x284   :  { %1673 = vmatmul.bf16.gmra.mxu1 %v8917_v46  ;;  %v1899_v61 = vsub.f32 %v8919_v19, %v1848_v35  ;;  %v8924_v46 = vld [vmem:[#allocation18_spill] sm:$0xff] }
 0x285   :  { %v1945_v21 = vmul.f32 1.442695, %v1900_v22  ;;  %v5770_v1 = vsel %vm1790_vm0, %v1065_v18, -inf }
 0x286   :  { %2005 = vadd.xlane.f32.xlu0 %v4199_v29  ;;  %8918 = vst [vmem:[#allocation7_spill] sm:$0xff] %v5770_v1  ;;  %1879 = vmax.xlane.f32.xlu1 %v5770_v1  ;;  %v1943_v9 = vmul.f32 1.442695, %v1899_v61 }
 0x287   :  { %4200 = vpow2.f32 %v1945_v21  ;;  %1877 = vmax.xlane.f32.xlu2 %v5766_v20 }
 0x288   :  { %v5775_v45 = vpop.f32.mrf.mxu2  ;;  %v977_v60 = vpop.f32.mrf.mxu0 }
 0x289   :  { %v5777_v55 = vpop.f32.mrf.mxu3  ;;  %v1066_v50 = vpop.f32.mrf.mxu1  ;;  %v978_v29 = vadd.f32 %v977_v60, %v5273_v52 }
 0x28a   :  { %v1852_v31 = vpop.xlane.xlu2 %1851 }
 0x28b   :  { %v1901_v2 = vsub.f32 %v8920_v33, %v1852_v31  ;;  %v8927_v31 = vld [vmem:[#allocation6_spill] sm:$0xff] }
 0x28d   :  { %v5780_v49 = vpop.eup %4200  ;;  %v1947_v47 = vmul.f32 1.442695, %v1901_v2 }
 0x28e   :  { %8921 = vst [vmem:[#allocation8_spill] sm:$0xff] %v5780_v49  ;;  %2009 = vadd.xlane.f32.xlu0 %v5780_v49 }
 0x28f   :  { %4202 = vpow2.f32 %v1947_v47  ;;  %2102 = vmax.xlane.f32.xlu2 %v2059_v38  ;;  %v1067_v38 = vadd.f32 %v1066_v50, %v978_v29  ;;  %v5823_v50 = vadd.f32 %v5626_v44, %v5293_v0  ;;  %v5827_v29 = vadd.f32 %v5643_v42, %v5293_v0  ;;  %v4305_v42 = vld [vmem:[%s8642_s4] sm:$0x3] }
 0x290   :  { %4204 = vpow2.f32 %v1943_v9  ;;  %v1449_v25 = vpop.f32.mrf.mxu2  ;;  %v980_v12 = vpop.f32.mrf.mxu0 }
 0x291   :  { %v5785_v10 = vpop.f32.mrf.mxu3  ;;  %v981_v7 = vadd.f32 %v980_v12, %v5273_v52  ;;  %v1069_v22 = vpop.f32.mrf.mxu1 }
 0x292   :  { %v1854_v21 = vpop.xlane.xlu0 %1853 }
 0x293   :  { %v1070_v18 = vadd.f32 %v1069_v22, %v981_v7  ;;  %1589 = vmatmul.bf16.gmra.mxu0 %v8922_v30  ;;  %v1902_v33 = vsub.f32 %v8927_v31, %v1854_v21  ;;  %v1435_v30 = vadd.f32 %v5701_v36, %v5293_v0  ;;  %v5815_v21 = vsel %vm1790_vm0, %v1067_v38, -inf }
 0x294   :  { %1678 = vmatmul.bf16.gmra.mxu1 %v8924_v46  ;;  %v5811_v46 = vadd.f32 %v5609_v13, %v5293_v0  ;;  %8928 = vst [vmem:[#allocation4_spill] sm:$0xff] %v5815_v21  ;;  %v5834_v13 = vadd.f32 %v5660_v62, %v5293_v0  ;;  %v5838_v31 = vadd.f32 %v5673_v57, %v5293_v0 }
 0x295   :  { %v5789_v35 = vpop.eup %4202  ;;  %v5798_v61 = vsel %vm1790_vm0, %v1070_v18, -inf  ;;  %v1949_v22 = vmul.f32 1.442695, %v1902_v33  ;;  %v5849_v38 = vadd.f32 %v5688_v56, %v5293_v0  ;;  %v5852_v62 = vadd.f32 %v5703_v17, %v1435_v30 }
 0x296   :  { %8923 = vst [vmem:[#allocation10_spill] sm:$0xff] %v5789_v35  ;;  %v5792_v19 = vpop.eup %4204  ;;  %2011 = vadd.xlane.f32.xlu1 %v5789_v35  ;;  %1883 = vmax.xlane.f32.xlu0 %v5798_v61  ;;  %v1450_v57 = vadd.f32 %v1449_v25, %v5293_v0  ;;  %v1448_v17 = vadd.f32 %v5775_v45, %v5293_v0 }
 0x297   :  { %8925 = vst [vmem:[#allocation9_spill] sm:$0xff] %v5792_v19  ;;  %2007 = vadd.xlane.f32.xlu2 %v5792_v19 }
 0x298   :  { %8926 = vst [vmem:[#allocation16_spill] sm:$0xff] %v5798_v61  ;;  %v1452_v2 = vpop.f32.mrf.mxu2  ;;  %v982_v47 = vpop.f32.mrf.mxu0  ;;  %v8930_v61 = vld [vmem:[#allocation12_spill] sm:$0xff]  ;;  %v1539_v1 = vadd.f32 %v5785_v10, %v1450_v57 }
 0x299   :  { %v1541_v9 = vpop.f32.mrf.mxu3  ;;  %v983_v12 = vadd.f32 %v982_v47, %v5273_v52  ;;  %v1071_v7 = vpop.f32.mrf.mxu1  ;;  %v1453_v36 = vadd.f32 %v1452_v2, %v5293_v0  ;;  %v5845_v2 = vperm.slane %v4305_v42, 1  ;;  %v1440_v42 = vadd.f32 %v5727_v59, %v5293_v0 }
 0x29a   :  { %v5804_v60 = vpop.xlane.xlu2 %1983  ;;  %v5840_v44 = vpop.xlane.xlu1 %2080  ;;  %v1445_v59 = vadd.f32 %v5756_v26, %v5293_v0 }
 0x29b   :  { %4206 = vrcp.f32 %v5804_v60  ;;  %v1072_v18 = vadd.f32 %v1071_v7, %v983_v12  ;;  %v1542_v25 = vadd.f32 %v1541_v9, %v1453_v36  ;;  %v2155_v45 = vand.u32 2147483648, %v5804_v60 }
 0x29c   :  { %4208 = vpow2.f32 %v1949_v22  ;;  %v5889_v57 = vadd.f32 %v5729_v41, %v1440_v42  ;;  %vm2149_vm3 = vweird.f32 %v5804_v60 }
 0x29d   :  { %v5819_v52 = vsel %vm1790_vm0, %v1072_v18, -inf  ;;  %v1438_v18 = vadd.f32 %v5716_v15, %v5293_v0  ;;  %v1443_v15 = vadd.f32 %v5747_v5, %v5293_v0  ;;  %v2153_v5 = vand.u32 2147483647, %v5804_v60 }
 0x29e   :  { %8929 = vst [vmem:[#allocation5_spill] sm:$0xff] %v5819_v52  ;;  %1885 = vmax.xlane.f32.xlu1 %v5819_v52  ;;  %v1784_v10 = vmax.f32 %v1542_v25, 0.0 }
 0x29f   :  { %1881 = vmax.xlane.f32.xlu2 %v5815_v21  ;;  %vm2154_vm5 = vcmp.eq.f32.partialorder %v2153_v5, 8.507059e+37 }
 0x2a0   :  { %v1454_v33 = vpop.f32.mrf.mxu2  ;;  %v1555_v49 = vpop.f32.mrf.mxu0 }
 0x2a1   :  { %v4207_v47 = vpop.eup %4206  ;;  %v1543_v12 = vpop.f32.mrf.mxu3  ;;  %v1455_v7 = vadd.f32 %v1454_v33, %v5293_v0  ;;  %v1556_v21 = vadd.f32 %v1555_v49, %v5845_v2  ;;  %v5882_v49 = vadd.f32 %v5718_v37, %v1438_v18  ;;  %v1534_v37 = vadd.f32 %v5758_v43, %v1445_v59 }
 0x2a2   :  { %v5856_v22 = vpop.xlane.xlu0 %1985  ;;  %v2145_v35 = vmul.f32 %v4207_v47, %v5804_v60  ;;  %v1644_v56 = vpop.f32.mrf.mxu1  ;;  %vm2150_vm2 = vweird.f32 %v4207_v47 }
 0x2a3   :  { %v1856_v19 = vpop.xlane.xlu2 %1855  ;;  %4210 = vrcp.f32 %v5856_v22  ;;  %v1544_v30 = vadd.f32 %v1543_v12, %v1455_v7  ;;  %1594 = vmatmul.bf16.gmra.mxu0 %v8930_v61  ;;  %v8931_v12 = vld [vmem:[#allocation20_spill] sm:$0xff]  ;;  %v5879_v26 = vadd.f32 %v1644_v56, %v1556_v21  ;;  %v1782_v21 = vmax.f32 %v1539_v1, 0.0  ;;  %vm2151_vm4 = vmor %vm2149_vm3, %vm2150_vm2 }
 0x2a4   :  { %v1903_v33 = vsub.f32 %v5605_v39, %v1856_v19  ;;  %v2146_v52 = vsub.f32 1.0, %v2145_v35  ;;  %1683 = vmatmul.bf16.gmra.mxu1 %v8931_v12  ;;  %v5876_v39 = vpop.eup %4208  ;;  %v1537_v35 = vadd.f32 %v5777_v55, %v1448_v17  ;;  %v2156_v55 = vor.u32 1.1754944e-38, %v2155_v45 }
 0x2a5   :  { %v1786_v9 = vmax.f32 %v1544_v30, 0.0  ;;  %v8932_v1 = vlaneseq  ;;  %vm2163_vm7 = vweird.f32 %v5856_v22 }
 0x2a6   :  { %v1951_v36 = vmul.f32 1.442695, %v1903_v33  ;;  %v2147_v19 = vmul.f32 %v4207_v47, %v2146_v52  ;;  %v1532_v52 = vadd.f32 %v5749_v53, %v1443_v15  ;;  %v1780_v15 = vmax.f32 %v1537_v35, 0.0 }
 0x2a7   :  { %2013 = vadd.xlane.f32.xlu2 %v5876_v39  ;;  %3245 = vmatpush.msra.mxu3 %v1786_v9  ;;  %v5902_v25 = vshrl.u32 %v8932_v1, 7 }
 0x2a8   :  { %4212 = vpow2.f32 %v1951_v36  ;;  %v2148_v7 = vadd.f32 %v4207_v47, %v2147_v19  ;;  %v1557_v33 = vpop.f32.mrf.mxu0  ;;  %v1778_v19 = vmax.f32 %v1534_v37, 0.0  ;;  %v1776_v37 = vmax.f32 %v1532_v52, 0.0 }
 0x2a9   :  { %v5886_v61 = vpop.eup %4210  ;;  %3246 = vmatpush.msra.mxu3 %v1784_v10  ;;  %v5897_v56 = vpop.xlane.xlu1 %1987  ;;  %v1558_v9 = vadd.f32 %v1557_v33, %v5845_v2  ;;  %v5913_v5 = vadd.s32 8, %v5902_v25  ;;  %v5921_v10 = vadd.f32 %v5675_v14, %v5838_v31  ;;  %vm2641_vm9 = vcmp.eq.s32.totalorder %v5902_v25, %v5276_v63 }
 0x2aa   :  { %v2159_v18 = vmul.f32 %v5886_v61, %v5856_v22  ;;  %v1858_v17 = vpop.xlane.xlu0 %1857  ;;  %v2152_v41 = vsel %vm2151_vm4, %v4207_v47, %v2148_v7  ;;  %v1646_v42 = vpop.f32.mrf.mxu1  ;;  %4214 = vrcp.f32 %v5897_v56  ;;  %v2169_v47 = vand.u32 2147483648, %v5856_v22 }
 0x2ab   :  { %v2083_v53 = vpop.xlane.xlu2 %2082  ;;  %v1904_v60 = vsub.f32 %v5619_v8, %v1858_v17  ;;  %v2157_v43 = vsel %vm2154_vm5, %v2156_v55, %v2152_v41  ;;  %3247 = vmatpush.msra.mxu3 %v1782_v21  ;;  %vm2164_vm6 = vweird.f32 %v5886_v61  ;;  %v2167_v8 = vand.u32 2147483647, %v5856_v22  ;;  %8934 = vst [vmem:[#allocation18_spill] sm:$0xff] %v5913_v5 }
 0x2ac   :  { %v2160_v30 = vsub.f32 1.0, %v2159_v18  ;;  %v5905_v59 = vmul.f32 %v2157_v43, %v5840_v44  ;;  %v5915_v44 = vadd.f32 %v1646_v42, %v1558_v9  ;;  %v1522_v55 = vadd.f32 %v5690_v40, %v5849_v38  ;;  %vm2165_vm8 = vmor %vm2163_vm7, %vm2164_vm6  ;;  %v8937_v9 = vld [vmem:[#allocation22_spill] sm:$0xff] }
 0x2ad   :  { %v1953_v45 = vmul.f32 1.442695, %v1904_v60  ;;  %3248 = vmatpush.msra.mxu3 %v1780_v15  ;;  %v1770_v18 = vmax.f32 %v5852_v62, 0.0  ;;  %v1774_v17 = vmax.f32 %v5889_v57, 0.0  ;;  %v2170_v14 = vor.u32 1.1754944e-38, %v2169_v47  ;;  %v8936_v47 = vld [vmem:[#allocation13_spill] sm:$0xff] }
 0x2ae   :  { %8933 = vst [vmem:[#allocation11_spill] sm:$0xff] %v5905_v59  ;;  %v4213_v36 = vpop.eup %4212  ;;  %v2161_v12 = vmul.f32 %v5886_v61, %v2160_v30  ;;  %vm2168_vm10 = vcmp.eq.f32.partialorder %v2167_v8, 8.507059e+37  ;;  %v1772_v38 = vmax.f32 %v5882_v49, 0.0  ;;  %vm2642_vm11 = vcmp.eq.s32.totalorder %v5913_v5, %v5276_v63 }
 0x2af   :  { %4216 = vpow2.f32 %v1953_v45  ;;  %2015 = vadd.xlane.f32.xlu1 %v4213_v36  ;;  %v2064_v35 = vsel %vm2047_vm1, %v4213_v36, 0.0  ;;  %3249 = vmatpush.msra.mxu3 %v1778_v19  ;;  %v2673_v49 = vsel %vm2641_vm9, %v5905_v59, 0.0  ;;  %v5965_v8 = vadd.s32 16, %v5902_v25 }
 0x2b0   :  { %v2162_v7 = vadd.f32 %v5886_v61, %v2161_v12  ;;  %2112 = vmax.xlane.f32.xlu0 %v2064_v35  ;;  %v5925_v21 = vpop.eup %4214  ;;  %v1560_v1 = vpop.f32.mrf.mxu0  ;;  %v1517_v35 = vadd.f32 %v5662_v34, %v5834_v13  ;;  %vm2177_vm13 = vweird.f32 %v5897_v56  ;;  %v1509_v34 = vadd.f32 %v5611_v16, %v5811_v46 }
 0x2b1   :  { %v2173_v31 = vmul.f32 %v5925_v21, %v5897_v56  ;;  %3250 = vmatpush.msra.mxu3 %v1776_v37  ;;  %v1860_v52 = vpop.xlane.xlu1 %1859  ;;  %v1561_v15 = vadd.f32 %v1560_v1, %v5845_v2  ;;  %vm2178_vm12 = vweird.f32 %v5925_v21  ;;  %8938 = vst [vmem:[#allocation12_spill] sm:$0xff] %v5965_v8  ;;  %v1766_v13 = vmax.f32 %v5921_v10, 0.0 }
 0x2b2   :  { %v2166_v22 = vsel %vm2165_vm8, %v5886_v61, %v2162_v7  ;;  %v2085_v40 = vpop.xlane.xlu0 %2084  ;;  %v1649_v57 = vpop.f32.mrf.mxu1  ;;  %v1905_v41 = vsub.f32 %v5635_v58, %v1860_v52  ;;  %v2181_v61 = vand.u32 2147483647, %v5897_v56  ;;  %v2183_v58 = vand.u32 2147483648, %v5897_v56  ;;  %vm2179_vm14 = vmor %vm2177_vm13, %vm2178_vm12 }
 0x2b3   :  { %v2171_v62 = vsel %vm2168_vm10, %v2170_v14, %v2166_v22  ;;  %v5942_v42 = vpop.xlane.xlu2 %1989  ;;  %v2174_v60 = vsub.f32 1.0, %v2173_v31  ;;  %3251 = vmatpush.msra.mxu3 %v1774_v17  ;;  %1599 = vmatmul.bf16.gmra.mxu0 %v8936_v47  ;;  %v5967_v19 = vadd.f32 %v1649_v57, %v1561_v15  ;;  %v1768_v7 = vmax.f32 %v1522_v55, 0.0 }
 0x2b4   :  { %v5944_v43 = vmul.f32 %v2171_v62, %v2083_v53  ;;  %4218 = vrcp.f32 %v5942_v42  ;;  %v1955_v33 = vmul.f32 1.442695, %v1905_v41  ;;  %1688 = vmatmul.bf16.gmra.mxu1 %v8937_v9  ;;  %v1418_v17 = vadd.f32 %v5592_v54, %v5293_v0 }
 0x2b5   :  { %v4217_v30 = vpop.eup %4216  ;;  %v2175_v45 = vmul.f32 %v5925_v21, %v2174_v60  ;;  %3252 = vmatpush.msra.mxu3 %v1772_v38  ;;  %v1514_v14 = vadd.f32 %v5645_v48, %v5827_v29  ;;  %v2184_v31 = vor.u32 1.1754944e-38, %v2183_v58  ;;  %vm2182_vm15 = vcmp.eq.f32.partialorder %v2181_v61, 8.507059e+37 }
 0x2b6   :  { %8935 = vst [vmem:[#allocation6_spill] sm:$0xff] %v5944_v43  ;;  %v2674_v53 = vsel %vm2642_vm11, %v5944_v43, 0.0  ;;  %v2065_v36 = vsel %vm2047_vm1, %v4217_v30, 0.0  ;;  %4220 = vpow2.f32 %v1955_v33  ;;  %2017 = vadd.xlane.f32.xlu2 %v4217_v30  ;;  %vm2643_vm0 = vcmp.eq.s32.totalorder %v5965_v8, %v5276_v63 }
 0x2b7   :  { %v2689_v12 = vmax.f32 %v2673_v49, %v2674_v53  ;;  %2114 = vmax.xlane.f32.xlu1 %v2065_v36  ;;  %v2176_v37 = vadd.f32 %v5925_v21, %v2175_v45  ;;  %3253 = vmatpush.msra.mxu3 %v1770_v18  ;;  %v1512_v16 = vadd.f32 %v5628_v4, %v5823_v50  ;;  %v1764_v46 = vmax.f32 %v1517_v35, 0.0 }
 0x2b8   :  { %v1562_v52 = vpop.f32.mrf.mxu0  ;;  %v1762_v62 = vmax.f32 %v1514_v14, 0.0  ;;  %v2195_v41 = vand.u32 2147483647, %v5942_v42  ;;  %v2197_v4 = vand.u32 2147483648, %v5942_v42  ;;  %v1507_v49 = vadd.f32 %v5595_v6, %v1418_v17 }
 0x2b9   :  { %v2180_v55 = vsel %vm2179_vm14, %v5925_v21, %v2176_v37  ;;  %3254 = vmatpush.msra.mxu3 %v1768_v7  ;;  %v2087_v56 = vpop.xlane.xlu1 %2086  ;;  %v1563_v60 = vadd.f32 %v1562_v52, %v5845_v2  ;;  %v1760_v33 = vmax.f32 %v1512_v16, 0.0  ;;  %v6009_v58 = vadd.s32 24, %v5902_v25  ;;  %v8944_v16 = vld [vmem:[#allocation24_spill] sm:$0xff] }
 0x2ba   :  { %v4219_v22 = vpop.eup %4218  ;;  %v5983_v18 = vpop.xlane.xlu0 %1991  ;;  %v2185_v54 = vsel %vm2182_vm15, %v2184_v31, %v2180_v55  ;;  %vm2191_vm3 = vweird.f32 %v5942_v42  ;;  %v1758_v53 = vmax.f32 %v1509_v34, 0.0  ;;  %v2198_v45 = vor.u32 1.1754944e-38, %v2197_v4 }
 0x2bb   :  { %v2187_v0 = vmul.f32 %v4219_v22, %v5942_v42  ;;  %v1651_v48 = vpop.f32.mrf.mxu1  ;;  %v1862_v29 = vpop.xlane.xlu2 %1861  ;;  %4222 = vrcp.f32 %v5983_v18  ;;  %v5991_v10 = vmul.f32 %v2185_v54, %v2085_v40  ;;  %3255 = vmatpush.msra.mxu3 %v1766_v13  ;;  %vm2192_vm2 = vweird.f32 %v4219_v22  ;;  %8940 = vst [vmem:[#allocation13_spill] sm:$0xff] %v6009_v58 }
 0x2bc   :  { %v1906_v21 = vsub.f32 %v5657_v11, %v1862_v29  ;;  %v4221_v38 = vpop.eup %4220  ;;  %v6005_v30 = vadd.f32 %v1651_v48, %v1563_v60  ;;  %vm2193_vm4 = vmor %vm2191_vm3, %vm2192_vm2  ;;  %vm2196_vm5 = vcmp.eq.f32.partialorder %v2195_v41, 8.507059e+37  ;;  %vm2644_vm6 = vcmp.eq.s32.totalorder %v6009_v58, %v5276_v63 }
 0x2bd   :  { %8939 = vst [vmem:[#allocation20_spill] sm:$0xff] %v5991_v10  ;;  %v2188_v57 = vsub.f32 1.0, %v2187_v0  ;;  %v2675_v61 = vsel %vm2643_vm0, %v5991_v10, 0.0  ;;  %3256 = vmatpush.msra.mxu3 %v1764_v46  ;;  %2019 = vadd.xlane.f32.xlu0 %v4221_v38  ;;  %v2066_v11 = vsel %vm2047_vm1, %v4221_v38, 0.0  ;;  %v1756_v31 = vmax.f32 %v1507_v49, 0.0  ;;  %v8942_v0 = vld [vmem:[#allocation14_spill] sm:$0xff] }
 0x2be   :  { %v1957_v50 = vmul.f32 1.442695, %v1906_v21  ;;  %v6003_v40 = vmax.f32 %v2675_v61, %v2689_v12  ;;  %2116 = vmax.xlane.f32.xlu2 %v2066_v11  ;;  %v2211_v13 = vand.u32 2147483648, %v5983_v18  ;;  %v2209_v29 = vand.u32 2147483647, %v5983_v18 }
 0x2bf   :  { %v2189_v1 = vmul.f32 %v4219_v22, %v2188_v57  ;;  %3257 = vmatpush.msra.mxu3 %v1762_v62  ;;  %vm2205_vm8 = vweird.f32 %v5983_v18 }
 0x2c0   :  { %4224 = vpow2.f32 %v1957_v50  ;;  %v1565_v14 = vpop.f32.mrf.mxu0  ;;  %v2212_v57 = vor.u32 1.1754944e-38, %v2211_v13  ;;  %vm2210_vm12 = vcmp.eq.f32.partialorder %v2209_v29, 8.507059e+37 }
 0x2c1   :  { %v4223_v15 = vpop.eup %4222  ;;  %v2190_v47 = vadd.f32 %v4219_v22, %v2189_v1  ;;  %3258 = vmatpush.msra.mxu3 %v1760_v33  ;;  %v6013_v36 = vpop.xlane.xlu1 %1993  ;;  %v1566_v55 = vadd.f32 %v1565_v14, %v5845_v2 }
 0x2c2   :  { %v2201_v9 = vmul.f32 %v4223_v15, %v5983_v18  ;;  %v1864_v12 = vpop.xlane.xlu0 %1863  ;;  %4226 = vrcp.f32 %v6013_v36  ;;  %vm2206_vm7 = vweird.f32 %v4223_v15  ;;  %vm2219_vm15 = vweird.f32 %v6013_v36 }
 0x2c3   :  { %v2194_v6 = vsel %vm2193_vm4, %v4219_v22, %v2190_v47  ;;  %v1654_v35 = vpop.f32.mrf.mxu1  ;;  %v2089_v7 = vpop.xlane.xlu2 %2088  ;;  %v1907_v37 = vsub.f32 %v5668_v28, %v1864_v12  ;;  %3259 = vmatpush.msra.mxu3 %v1758_v53  ;;  %1604 = vmatmul.bf16.gmra.mxu0 %v8942_v0  ;;  %v6025_v28 = vadd.s32 32, %v5902_v25  ;;  %vm2207_vm10 = vmor %vm2205_vm8, %vm2206_vm7  ;;  %v2223_v53 = vand.u32 2147483647, %v6013_v36 }
 0x2c4   :  { %v2199_v42 = vsel %vm2196_vm5, %v2198_v45, %v2194_v6  ;;  %v2202_v17 = vsub.f32 1.0, %v2201_v9  ;;  %1693 = vmatmul.bf16.gmra.mxu1 %v8944_v16  ;;  %v6033_v46 = vadd.f32 %v1654_v35, %v1566_v55  ;;  %v2225_v45 = vand.u32 2147483648, %v6013_v36 }
 0x2c5   :  { %v6019_v34 = vmul.f32 %v2199_v42, %v2087_v56  ;;  %v1959_v22 = vmul.f32 1.442695, %v1907_v37  ;;  %8943 = vst [vmem:[#allocation14_spill] sm:$0xff] %v6025_v28  ;;  %3260 = vmatpush.msra.mxu3 %v1756_v31  ;;  %vm2645_vm13 = vcmp.eq.s32.totalorder %v6025_v28, %v5276_v63  ;;  %vm2224_vm3 = vcmp.eq.f32.partialorder %v2223_v53, 8.507059e+37 }
 0x2c6   :  { %v4225_v54 = vpop.eup %4224  ;;  %v2203_v48 = vmul.f32 %v4223_v15, %v2202_v17  ;;  %v2226_v17 = vor.u32 1.1754944e-38, %v2225_v45 }
 0x2c7   :  { %8941 = vst [vmem:[#allocation22_spill] sm:$0xff] %v6019_v34  ;;  %v2676_v56 = vsel %vm2644_vm6, %v6019_v34, 0.0  ;;  %4228 = vpow2.f32 %v1959_v22  ;;  %2021 = vadd.xlane.f32.xlu1 %v4225_v54  ;;  %v2067_v21 = vsel %vm2047_vm1, %v4225_v54, 0.0 }
 0x2c8   :  { %v2691_v52 = vmax.f32 %v2676_v56, %v6003_v40  ;;  %v2204_v38 = vadd.f32 %v4223_v15, %v2203_v48  ;;  %2118 = vmax.xlane.f32.xlu0 %v2067_v21  ;;  %v4227_v62 = vpop.eup %4226  ;;  %v1567_v33 = vpop.f32.mrf.mxu0 }
 0x2c9   :  { %v2215_v41 = vmul.f32 %v4227_v62, %v6013_v36  ;;  %v1866_v61 = vpop.xlane.xlu1 %1865  ;;  %v1568_v9 = vadd.f32 %v1567_v33, %v5845_v2  ;;  %vm2220_vm14 = vweird.f32 %v4227_v62 }
 0x2ca   :  { %v2208_v60 = vsel %vm2207_vm10, %v4223_v15, %v2204_v38  ;;  %v2091_v4 = vpop.xlane.xlu0 %2090  ;;  %v1908_v40 = vsub.f32 %v5682_v24, %v1866_v61  ;;  %vm2221_vm2 = vmor %vm2219_vm15, %vm2220_vm14  ;;  %v8948_v38 = vld [vmem:[#allocation15_spill] sm:$0xff] }
 0x2cb   :  { %v2213_v50 = vsel %vm2210_vm12, %v2212_v57, %v2208_v60  ;;  %v1656_v11 = vpop.f32.mrf.mxu1  ;;  %v6043_v1 = vpop.xlane.xlu2 %1995  ;;  %v2216_v18 = vsub.f32 1.0, %v2215_v41  ;;  %v8949_v60 = vld [vmem:[#allocation25_spill] sm:$0xff] }
 0x2cc   :  { %v6045_v49 = vmul.f32 %v2213_v50, %v2089_v7  ;;  %4230 = vrcp.f32 %v6043_v1  ;;  %v1961_v15 = vmul.f32 1.442695, %v1908_v40  ;;  %v6060_v7 = vadd.s32 40, %v5902_v25 }
 0x2cd   :  { %v4229_v47 = vpop.eup %4228  ;;  %v2217_v12 = vmul.f32 %v4227_v62, %v2216_v18  ;;  %v6062_v37 = vadd.f32 %v1656_v11, %v1568_v9  ;;  %v2237_v21 = vand.u32 2147483647, %v6043_v1  ;;  %v2239_v41 = vand.u32 2147483648, %v6043_v1 }
 0x2ce   :  { %8945 = vst [vmem:[#allocation24_spill] sm:$0xff] %v6045_v49  ;;  %v2677_v24 = vsel %vm2645_vm13, %v6045_v49, 0.0  ;;  %2023 = vadd.xlane.f32.xlu2 %v4229_v47  ;;  %v2068_v6 = vsel %vm2047_vm1, %v4229_v47, 0.0  ;;  %4232 = vpow2.f32 %v1961_v15  ;;  %vm2646_vm4 = vcmp.eq.s32.totalorder %v6060_v7, %v5276_v63 }
 0x2cf   :  { %v6057_v35 = vmax.f32 %v2677_v24, %v2691_v52  ;;  %8946 = vst [vmem:[#allocation28_spill] sm:$0xff] %v6060_v7  ;;  %2120 = vmax.xlane.f32.xlu1 %v2068_v6  ;;  %v2218_v42 = vadd.f32 %v4227_v62, %v2217_v12  ;;  %v6089_v11 = vadd.s32 48, %v5902_v25  ;;  %vm2233_vm7 = vweird.f32 %v6043_v1 }
 0x2d0   :  { %v1570_v29 = vpop.f32.mrf.mxu0  ;;  %v2240_v33 = vor.u32 1.1754944e-38, %v2239_v41  ;;  %vm2238_vm10 = vcmp.eq.f32.partialorder %v2237_v21, 8.507059e+37 }
 0x2d1   :  { %v2222_v31 = vsel %vm2221_vm2, %v4227_v62, %v2218_v42  ;;  %v1571_v52 = vadd.f32 %v1570_v29, %v5845_v2  ;;  %8950 = vst [vmem:[#allocation15_spill] sm:$0xff] %v6089_v11  ;;  %v2093_v47 = vpop.xlane.xlu1 %2092  ;;  %vm8684_vm12 = vcmp.eq.s32.totalorder %v6089_v11, %v5276_v63 }
 0x2d2   :  { %v4231_v14 = vpop.eup %4230  ;;  %v6065_v13 = vpop.xlane.xlu0 %1997  ;;  %v2227_v55 = vsel %vm2224_vm3, %v2226_v17, %v2222_v31 }
 0x2d3   :  { %v2229_v22 = vmul.f32 %v4231_v14, %v6043_v1  ;;  %v1659_v0 = vpop.f32.mrf.mxu1  ;;  %v1868_v54 = vpop.xlane.xlu2 %1867  ;;  %4234 = vrcp.f32 %v6065_v13  ;;  %v6071_v48 = vmul.f32 %v2227_v55, %v2091_v4  ;;  %1609 = vmatmul.bf16.gmra.mxu0 %v8948_v38  ;;  %vm2234_vm5 = vweird.f32 %v4231_v14 }
 0x2d4   :  { %v1909_v36 = vsub.f32 %v5698_v51, %v1868_v54  ;;  %v4233_v16 = vpop.eup %4232  ;;  %1698 = vmatmul.bf16.gmra.mxu1 %v8949_v60  ;;  %v6086_v50 = vadd.f32 %v1659_v0, %v1571_v52  ;;  %vm2235_vm8 = vmor %vm2233_vm7, %vm2234_vm5  ;;  %v2253_v1 = vand.u32 2147483648, %v6065_v13  ;;  %vm2247_vm15 = vweird.f32 %v6065_v13 }
 0x2d5   :  { %8947 = vst [vmem:[#allocation29_spill] sm:$0xff] %v6071_v48  ;;  %v2230_v56 = vsub.f32 1.0, %v2229_v22  ;;  %v2678_v62 = vsel %vm2646_vm4, %v6071_v48, 0.0  ;;  %2025 = vadd.xlane.f32.xlu0 %v4233_v16  ;;  %v2069_v51 = vsel %vm2047_vm1, %v4233_v16, 0.0 }
 0x2d6   :  { %v1963_v57 = vmul.f32 1.442695, %v1909_v36  ;;  %v2693_v61 = vmax.f32 %v2678_v62, %v6057_v35  ;;  %2122 = vmax.xlane.f32.xlu2 %v2069_v51  ;;  %v2254_v21 = vor.u32 1.1754944e-38, %v2253_v1 }
 0x2d7   :  { %v2231_v4 = vmul.f32 %v4231_v14, %v2230_v56 }
 0x2d8   :  { %4236 = vpow2.f32 %v1963_v57  ;;  %v1572_v42 = vpop.f32.mrf.mxu0 }
 0x2d9   :  { %v4235_v40 = vpop.eup %4234  ;;  %v2232_v18 = vadd.f32 %v4231_v14, %v2231_v4  ;;  %v1573_v22 = vadd.f32 %v1572_v42, %v5845_v2 }
 0x2da   :  { %v2243_v15 = vmul.f32 %v4235_v40, %v6065_v13  ;;  %v1870_v53 = vpop.xlane.xlu0 %1869  ;;  %vm2248_vm14 = vweird.f32 %v4235_v40 }
 0x2db   :  { %v2236_v45 = vsel %vm2235_vm8, %v4231_v14, %v2232_v18  ;;  %v1661_v9 = vpop.f32.mrf.mxu1  ;;  %v2095_v24 = vpop.xlane.xlu2 %2094  ;;  %v1910_v12 = vsub.f32 %v5710_v32, %v1870_v53  ;;  %v6101_v14 = vadd.s32 56, %v5902_v25  ;;  %v2251_v32 = vand.u32 2147483647, %v6065_v13  ;;  %vm2249_vm2 = vmor %vm2247_vm15, %vm2248_vm14  ;;  %v8954_v18 = vld [vmem:[#allocation17_spill] sm:$0xff] }
 0x2dc   :  { %v2241_v6 = vsel %vm2238_vm10, %v2240_v33, %v2236_v45  ;;  %v2244_v35 = vsub.f32 1.0, %v2243_v15  ;;  %v6108_v36 = vadd.f32 %v1661_v9, %v1573_v22  ;;  %v8955_v15 = vld [vmem:[#allocation26_spill] sm:$0xff] }
 0x2dd   :  { %v6096_v17 = vmul.f32 %v2241_v6, %v2093_v47  ;;  %v1965_v31 = vmul.f32 1.442695, %v1910_v12  ;;  %8952 = vst [vmem:[#allocation30_spill] sm:$0xff] %v6101_v14  ;;  %vm2252_vm3 = vcmp.eq.f32.partialorder %v2251_v32, 8.507059e+37  ;;  %vm8683_vm5 = vcmp.eq.s32.totalorder %v6101_v14, %v5276_v63 }
 0x2de   :  { %v4237_v55 = vpop.eup %4236  ;;  %v2245_v0 = vmul.f32 %v4235_v40, %v2244_v35 }
 0x2df   :  { %8951 = vst [vmem:[#allocation25_spill] sm:$0xff] %v6096_v17  ;;  %v2679_v54 = vsel %vm8684_vm12, %v6096_v17, 0.0  ;;  %4238 = vpow2.f32 %v1965_v31  ;;  %2027 = vadd.xlane.f32.xlu1 %v4237_v55  ;;  %v2070_v29 = vsel %vm2047_vm1, %v4237_v55, 0.0 }
 0x2e0   :  { %v6112_v16 = vmax.f32 %v2679_v54, %v2693_v61  ;;  %v2246_v56 = vadd.f32 %v4235_v40, %v2245_v0  ;;  %2124 = vmax.xlane.f32.xlu0 %v2070_v29  ;;  %v1575_v61 = vpop.f32.mrf.mxu0 }
 0x2e1   :  { %v6115_v38 = vpop.xlane.xlu1 %2001 }
 0x2e2   :  { %v2250_v52 = vsel %vm2249_vm2, %v4235_v40, %v2246_v56  ;;  %v6117_v62 = vpop.xlane.xlu0 %1999  ;;  %4240 = vrcp.f32 %v6115_v38  ;;  %v1576_v40 = vadd.f32 %v1575_v61, %v5845_v2  ;;  %v6154_v61 = vadd.s32 64, %v5902_v25 }
 0x2e3   :  { %v2255_v57 = vsel %vm2252_vm3, %v2254_v21, %v2250_v52  ;;  %v1664_v41 = vpop.f32.mrf.mxu1  ;;  %v1872_v60 = vpop.xlane.xlu2 %1871  ;;  %4242 = vrcp.f32 %v6117_v62  ;;  %1614 = vmatmul.bf16.gmra.mxu0 %v8954_v18  ;;  %v2265_v55 = vand.u32 2147483647, %v6117_v62  ;;  %v2281_v21 = vand.u32 2147483648, %v6115_v38 }
 0x2e4   :  { %v6122_v51 = vmul.f32 %v2255_v57, %v2095_v24  ;;  %v1911_v13 = vsub.f32 %v5724_v3, %v1872_v60  ;;  %1703 = vmatmul.bf16.gmra.mxu1 %v8955_v15  ;;  %v6139_v45 = vadd.f32 %v1664_v41, %v1576_v40  ;;  %v2267_v57 = vand.u32 2147483648, %v6117_v62 }
 0x2e5   :  { %v4239_v4 = vpop.eup %4238  ;;  %v2279_v60 = vand.u32 2147483647, %v6115_v38  ;;  %vm2275_vm10 = vweird.f32 %v6115_v38  ;;  %vm2261_vm14 = vweird.f32 %v6117_v62  ;;  %v2282_v18 = vor.u32 1.1754944e-38, %v2281_v21 }
 0x2e6   :  { %8953 = vst [vmem:[#allocation31_spill] sm:$0xff] %v6122_v51  ;;  %v6132_v33 = vsel %vm8683_vm5, %v6122_v51, 0.0  ;;  %v1967_v47 = vmul.f32 1.442695, %v1911_v13  ;;  %2029 = vadd.xlane.f32.xlu2 %v4239_v4  ;;  %v2071_v3 = vsel %vm2047_vm1, %v4239_v4, 0.0  ;;  %vm2266_vm5 = vcmp.eq.f32.partialorder %v2265_v55, 8.507059e+37 }
 0x2e7   :  { %v2695_v53 = vmax.f32 %v6132_v33, %v6112_v16  ;;  %2126 = vmax.xlane.f32.xlu1 %v2071_v3  ;;  %vm2280_vm3 = vcmp.eq.f32.partialorder %v2279_v60, 8.507059e+37  ;;  %v6162_v3 = vadd.s32 72, %v5902_v25  ;;  %vm2649_vm12 = vcmp.eq.s32.totalorder %v6154_v61, %v5276_v63 }
 0x2e8   :  { %4244 = vpow2.f32 %v1967_v47  ;;  %v4241_v9 = vpop.eup %4240  ;;  %v6147_v0 = vpop.f32.mrf.mxu0  ;;  %v2268_v47 = vor.u32 1.1754944e-38, %v2267_v57 }
 0x2e9   :  { %v4243_v24 = vpop.eup %4242  ;;  %v2271_v12 = vmul.f32 %v4241_v9, %v6115_v38  ;;  %v1876_v32 = vpop.xlane.xlu1 %1875  ;;  %vm2276_vm7 = vweird.f32 %v4241_v9 }
 0x2ea   :  { %v1874_v6 = vpop.xlane.xlu0 %1873  ;;  %v2257_v35 = vmul.f32 %v4243_v24, %v6117_v62  ;;  %v1913_v56 = vsub.f32 %v5743_v23, %v1876_v32  ;;  %vm2262_vm8 = vweird.f32 %v4243_v24  ;;  %vm2277_vm15 = vmor %vm2275_vm10, %vm2276_vm7  ;;  %vm2650_vm7 = vcmp.eq.s32.totalorder %v6162_v3, %v5276_v63 }
 0x2eb   :  { %v6143_v42 = vpop.f32.mrf.mxu1  ;;  %v2097_v1 = vpop.xlane.xlu2 %2096  ;;  %v1912_v31 = vsub.f32 %v5736_v27, %v1874_v6  ;;  %v2272_v22 = vsub.f32 1.0, %v2271_v12  ;;  %vm2263_vm2 = vmor %vm2261_vm14, %vm2262_vm8 }
 0x2ec   :  { %v2258_v54 = vsub.f32 1.0, %v2257_v35  ;;  %v1971_v13 = vmul.f32 1.442695, %v1913_v56  ;;  %v8958_v56 = vld [vmem:[#allocation19_spill] sm:$0xff] }
 0x2ed   :  { %v1969_v29 = vmul.f32 1.442695, %v1912_v31  ;;  %v2273_v41 = vmul.f32 %v4241_v9, %v2272_v22 }
 0x2ee   :  { %v4245_v52 = vpop.eup %4244  ;;  %v2259_v27 = vmul.f32 %v4243_v24, %v2258_v54 }
 0x2ef   :  { %4246 = vpow2.f32 %v1969_v29  ;;  %2031 = vadd.xlane.f32.xlu1 %v4245_v52  ;;  %v2072_v23 = vsel %vm2047_vm1, %v4245_v52, 0.0  ;;  %v2274_v4 = vadd.f32 %v4241_v9, %v2273_v41 }
 0x2f0   :  { %v2260_v40 = vadd.f32 %v4243_v24, %v2259_v27  ;;  %4248 = vpow2.f32 %v1971_v13  ;;  %2128 = vmax.xlane.f32.xlu0 %v2072_v23  ;;  %v6170_v32 = vpop.f32.mrf.mxu0 }
 0x2f1   :  { %v2278_v15 = vsel %vm2277_vm15, %v4241_v9, %v2274_v4  ;;  %v2101_v9 = vpop.xlane.xlu1 %2100 }
 0x2f2   :  { %v2099_v12 = vpop.xlane.xlu0 %2098  ;;  %v2264_v6 = vsel %vm2263_vm2, %v4243_v24, %v2260_v40  ;;  %v2283_v31 = vsel %vm2280_vm3, %v2282_v18, %v2278_v15  ;;  %v8959_v24 = vld [vmem:[#allocation27_spill] sm:$0xff] }
 0x2f3   :  { %v6164_v35 = vpop.f32.mrf.mxu1  ;;  %v2004_v38 = vpop.xlane.xlu2 %2003  ;;  %v2269_v62 = vsel %vm2266_vm5, %v2268_v47, %v2264_v6  ;;  %v6168_v22 = vmul.f32 %v2283_v31, %v2099_v12  ;;  %1619 = vmatmul.bf16.gmra.mxu0 %v8958_v56  ;;  %v6200_v56 = vadd.s32 80, %v5902_v25 }
 0x2f4   :  { %4250 = vrcp.f32 %v2004_v38  ;;  %v6172_v29 = vmul.f32 %v2269_v62, %v2097_v1  ;;  %1708 = vmatmul.bf16.gmra.mxu1 %v8959_v24  ;;  %v2295_v12 = vand.u32 2147483648, %v2004_v38  ;;  %v2293_v62 = vand.u32 2147483647, %v2004_v38 }
 0x2f5   :  { %8956 = vst [vmem:[#allocation17_spill] sm:$0xff] %v6168_v22  ;;  %v4247_v54 = vpop.eup %4246  ;;  %v2682_v57 = vsel %vm2650_vm7, %v6168_v22, 0.0  ;;  %vm2289_vm8 = vweird.f32 %v2004_v38  ;;  %vm2651_vm15 = vcmp.eq.s32.totalorder %v6200_v56, %v5276_v63 }
 0x2f6   :  { %8957 = vst [vmem:[#allocation26_spill] sm:$0xff] %v6172_v29  ;;  %2033 = vadd.xlane.f32.xlu2 %v4247_v54  ;;  %v2073_v55 = vsel %vm2047_vm1, %v4247_v54, 0.0  ;;  %v4249_v21 = vpop.eup %4248  ;;  %v2681_v52 = vsel %vm2649_vm12, %v6172_v29, 0.0  ;;  %vm2294_vm14 = vcmp.eq.f32.partialorder %v2293_v62, 8.507059e+37  ;;  %v8969_v29 = vld [vmem:[#allocation3_spill] sm:$0xff] }
 0x2f7   :  { %2130 = vmax.xlane.f32.xlu1 %v2073_v55  ;;  %v2696_v1 = vmax.f32 %v2681_v52, %v2695_v53  ;;  %v8960_v53 = vld [vmem:[#allocation7_spill] sm:$0xff]  ;;  %v2074_v15 = vsel %vm2047_vm1, %v4249_v21, 0.0  ;;  %v2296_v55 = vor.u32 1.1754944e-38, %v2295_v12  ;;  %v8963_v12 = vld [vmem:[#allocation2_spill] sm:$0xff] }
 0x2f8   :  { %2035 = vadd.xlane.f32.xlu0 %v4249_v21  ;;  %v6194_v18 = vpop.f32.mrf.mxu0 }
 0x2f9   :  { %v2698_v60 = vmax.f32 %v2682_v57, %v2696_v1  ;;  %v1880_v16 = vpop.xlane.xlu1 %1879 }
 0x2fa   :  { %v4251_v41 = vpop.eup %4250  ;;  %v2006_v27 = vpop.xlane.xlu0 %2005  ;;  %v1915_v47 = vsub.f32 %v8960_v53, %v1880_v16  ;;  %v8962_v53 = vld [vmem:[#allocation21_spill] sm:$0xff] }
 0x2fb   :  { %v2285_v13 = vmul.f32 %v4251_v41, %v2004_v38  ;;  %v6191_v23 = vpop.f32.mrf.mxu1  ;;  %v1878_v4 = vpop.xlane.xlu2 %1877  ;;  %4252 = vrcp.f32 %v2006_v27  ;;  %vm2290_vm5 = vweird.f32 %v4251_v41  ;;  %v2309_v38 = vand.u32 2147483648, %v2006_v27 }
 0x2fc   :  { %v1914_v40 = vsub.f32 %v5766_v20, %v1878_v4  ;;  %v1975_v54 = vmul.f32 1.442695, %v1915_v47  ;;  %vm2291_vm10 = vmor %vm2289_vm8, %vm2290_vm5  ;;  %vm2303_vm3 = vweird.f32 %v2006_v27 }
 0x2fd   :  { %v2286_v33 = vsub.f32 1.0, %v2285_v13 }
 0x2fe   :  { %v1973_v6 = vmul.f32 1.442695, %v1914_v40  ;;  %2132 = vmax.xlane.f32.xlu2 %v2074_v15 }
 0x2ff   :  { %v2287_v31 = vmul.f32 %v4251_v41, %v2286_v33 }
 0x300   :  { %4254 = vpow2.f32 %v1973_v6  ;;  %v1585_v16 = vpop.f32.mrf.mxu0 }
 0x301   :  { %v4253_v20 = vpop.eup %4252  ;;  %v2288_v24 = vadd.f32 %v4251_v41, %v2287_v31  ;;  %4256 = vpow2.f32 %v1975_v54 }
 0x302   :  { %v2299_v52 = vmul.f32 %v4253_v20, %v2006_v27  ;;  %v6202_v1 = vpop.xlane.xlu0 %2009  ;;  %vm2304_vm2 = vweird.f32 %v4253_v20 }
 0x303   :  { %v2292_v21 = vsel %vm2291_vm10, %v4251_v41, %v2288_v24  ;;  %v6204_v57 = vpop.f32.mrf.mxu1  ;;  %v2103_v13 = vpop.xlane.xlu2 %2102  ;;  %1624 = vmatmul.bf16.gmra.mxu0 %v8962_v53  ;;  %v2307_v41 = vand.u32 2147483647, %v2006_v27  ;;  %vm2305_vm5 = vmor %vm2303_vm3, %vm2304_vm2  ;;  %v2310_v24 = vor.u32 1.1754944e-38, %v2309_v38  ;;  %v8965_v27 = vld [vmem:[#allocation16_spill] sm:$0xff] }
 0x304   :  { %v2297_v4 = vsel %vm2294_vm14, %v2296_v55, %v2292_v21  ;;  %v2300_v40 = vsub.f32 1.0, %v2299_v52  ;;  %1713 = vmatmul.bf16.gmra.mxu1 %v8963_v12 }
 0x305   :  { %v6208_v33 = vmul.f32 %v2297_v4, %v2101_v9  ;;  %v6221_v9 = vadd.s32 88, %v5902_v25  ;;  %vm2308_vm8 = vcmp.eq.f32.partialorder %v2307_v41, 8.507059e+37 }
 0x306   :  { %v6211_v47 = vpop.eup %4254  ;;  %v2301_v15 = vmul.f32 %v4253_v20, %v2300_v40 }
 0x307   :  { %8961 = vst [vmem:[#allocation19_spill] sm:$0xff] %v6208_v33  ;;  %v6214_v6 = vpop.eup %4256  ;;  %v2683_v31 = vsel %vm2651_vm15, %v6208_v33, 0.0  ;;  %2037 = vadd.xlane.f32.xlu1 %v6211_v47  ;;  %vm2652_vm10 = vcmp.eq.s32.totalorder %v6221_v9, %v5276_v63  ;;  %v8967_v33 = vld [vmem:[#allocation5_spill] sm:$0xff] }
 0x308   :  { %v6224_v62 = vmax.f32 %v2683_v31, %v2698_v60  ;;  %v2302_v54 = vadd.f32 %v4253_v20, %v2301_v15  ;;  %2039 = vadd.xlane.f32.xlu0 %v6214_v6  ;;  %v1587_v60 = vpop.f32.mrf.mxu0 }
 0x309   :  { %v6227_v52 = vpop.xlane.xlu1 %2011 }
 0x30a   :  { %v2306_v55 = vsel %vm2305_vm5, %v4253_v20, %v2302_v54  ;;  %v1884_v15 = vpop.xlane.xlu0 %1883  ;;  %v2349_v5 = vand.u32 2147483647, %v6227_v52 }
 0x30b   :  { %v2311_v21 = vsel %vm2308_vm8, %v2310_v24, %v2306_v55  ;;  %v1676_v4 = vpop.f32.mrf.mxu1  ;;  %v6231_v40 = vpop.xlane.xlu2 %2007  ;;  %v1917_v12 = vsub.f32 %v8965_v27, %v1884_v15  ;;  %v8966_v24 = vld [vmem:[#allocation4_spill] sm:$0xff]  ;;  %v8968_v15 = vld [vmem:[#allocation23_spill] sm:$0xff] }
 0x30c   :  { %v6233_v53 = vmul.f32 %v2311_v21, %v2103_v13  ;;  %v2323_v28 = vand.u32 2147483648, %v6231_v40  ;;  %v2321_v49 = vand.u32 2147483647, %v6231_v40 }
 0x30d   :  { %v1979_v41 = vmul.f32 1.442695, %v1917_v12 }
 0x30e   :  { %8964 = vst [vmem:[#allocation27_spill] sm:$0xff] %v6233_v53  ;;  %v6240_v20 = vsel %vm2652_vm10, %v6233_v53, 0.0 }
 0x30f   :  { %4258 = vpow2.f32 %v1979_v41 }
 0x310   :  { %v1590_v55 = vpop.f32.mrf.mxu0 }
 0x311   :  { %v1886_v21 = vpop.xlane.xlu1 %1885  ;;  %v1591_v12 = vadd.f32 %v1590_v55, %v5845_v2 }
 0x312   :  { %v1918_v22 = vsub.f32 %v8967_v33, %v1886_v21 }
 0x313   :  { %v1679_v31 = vpop.f32.mrf.mxu1  ;;  %v1882_v54 = vpop.xlane.xlu2 %1881  ;;  %1629 = vmatmul.bf16.gmra.mxu0 %v8968_v15 }
 0x314   :  { %v1916_v13 = vsub.f32 %v8966_v24, %v1882_v54  ;;  %1718 = vmatmul.bf16.gmra.mxu1 %v8969_v29  ;;  %v1981_v51 = vmul.f32 1.442695, %v1918_v22  ;;  %v1588_v24 = vadd.f32 %v1587_v60, %v5845_v2  ;;  %v1586_v29 = vadd.f32 %v1585_v16, %v5845_v2  ;;  %v8970_v22 = vld [vmem:[#allocation8_spill] sm:$0xff] }
 0x315   :  { %v6248_v53 = vpop.eup %4258  ;;  %v1680_v15 = vadd.f32 %v1679_v31, %v1591_v12  ;;  %v1583_v60 = vadd.f32 %v6194_v18, %v5845_v2 }
 0x316   :  { %v1977_v27 = vmul.f32 1.442695, %v1916_v13  ;;  %2043 = vadd.xlane.f32.xlu2 %v6248_v53  ;;  %v1677_v55 = vadd.f32 %v1676_v4, %v1588_v24  ;;  %v1675_v31 = vadd.f32 %v6204_v57, %v1586_v29  ;;  %v8971_v24 = vld [vmem:[#allocation9_spill] sm:$0xff] }
 0x317   :  { %v1753_v12 = vmax.f32 %v1680_v15, 0.0  ;;  %v1672_v18 = vadd.f32 %v6191_v23, %v1583_v60  ;;  %v2060_v57 = vsel %vm2047_vm1, %v8971_v24, 0.0  ;;  %v2076_v23 = vsel %vm2047_vm1, %v6214_v6, 0.0  ;;  %v8973_v24 = vld [vmem:[#allocation10_spill] sm:$0xff] }
 0x318   :  { %4260 = vpow2.f32 %v1977_v27  ;;  %v1592_v54 = vpop.f32.mrf.mxu0  ;;  %v1751_v4 = vmax.f32 %v1677_v55, 0.0  ;;  %v1749_v29 = vmax.f32 %v1675_v31, 0.0 }
 0x319   :  { %4262 = vpow2.f32 %v1981_v51  ;;  %v1593_v33 = vadd.f32 %v1592_v54, %v5845_v2  ;;  %v2061_v51 = vsel %vm2047_vm1, %v8970_v22, 0.0  ;;  %v1581_v54 = vadd.f32 %v6170_v32, %v5845_v2 }
 0x31a   :  { %v1578_v22 = vadd.f32 %v6147_v0, %v5845_v2  ;;  %v2075_v0 = vsel %vm2047_vm1, %v6211_v47, 0.0  ;;  %v1747_v60 = vmax.f32 %v1672_v18, 0.0  ;;  %v1741_v18 = vmax.f32 %v6139_v45, 0.0 }
 0x31b   :  { %v1681_v41 = vpop.f32.mrf.mxu1  ;;  %v6265_v17 = vpop.xlane.xlu2 %2013  ;;  %v1670_v32 = vadd.f32 %v6164_v35, %v1581_v54 }
 0x31c   :  { %v1682_v38 = vadd.f32 %v1681_v41, %v1593_v33 }
 0x31d   :  { %v1745_v31 = vmax.f32 %v1670_v32, 0.0 }
 0x31e   :  { %v6254_v21 = vpop.eup %4260  ;;  %2106 = vmax.xlane.f32.xlu2 %v2061_v51  ;;  %v1755_v27 = vmax.f32 %v1682_v38, 0.0  ;;  %v1667_v51 = vadd.f32 %v6143_v42, %v1578_v22  ;;  %v2063_v22 = vsel %vm2047_vm1, %v5876_v39, 0.0 }
 0x31f   :  { %v4263_v13 = vpop.eup %4262  ;;  %2041 = vadd.xlane.f32.xlu1 %v6254_v21 }
 0x320   :  { %2045 = vadd.xlane.f32.xlu0 %v4263_v13  ;;  %3310 = vmatpush.msrb.mxu2 %v1755_v27  ;;  %v1595_v33 = vpop.f32.mrf.mxu0 }
 0x321   :  { %v1596_v38 = vadd.f32 %v1595_v33, %v5845_v2  ;;  %v1743_v33 = vmax.f32 %v1667_v51, 0.0  ;;  %v1739_v51 = vmax.f32 %v6108_v36, 0.0 }
 0x322   :  { %v2016_v16 = vpop.xlane.xlu1 %2015  ;;  %3311 = vmatpush.msrb.mxu2 %v1753_v12 }
 0x323   :  { %4264 = vrcp.f32 %v2016_v16  ;;  %v1684_v41 = vpop.f32.mrf.mxu1  ;;  %v2113_v55 = vpop.xlane.xlu0 %2112  ;;  %v2379_v6 = vand.u32 2147483648, %v2016_v16  ;;  %v2377_v42 = vand.u32 2147483647, %v2016_v16  ;;  %vm2373_vm2 = vweird.f32 %v2016_v16 }
 0x324   :  { %v6276_v15 = vadd.f32 %v1684_v41, %v1596_v38  ;;  %3312 = vmatpush.msrb.mxu2 %v1751_v4 }
 0x325   :  { %v2380_v39 = vor.u32 1.1754944e-38, %v2379_v6  ;;  %vm2378_vm5 = vcmp.eq.f32.partialorder %v2377_v42, 8.507059e+37 }
 0x326   :  { %8972 = vst [vmem:[#allocation7_spill] sm:$0xff] %v6276_v15  ;;  %2136 = vmax.xlane.f32.xlu2 %v2076_v23  ;;  %3313 = vmatpush.msrb.mxu2 %v1749_v29  ;;  %v2079_v29 = vsel %vm2047_vm1, %v4263_v13, 0.0  ;;  %v1737_v13 = vmax.f32 %v6086_v50, 0.0  ;;  %v2078_v50 = vsel %vm2047_vm1, %v6248_v53, 0.0 }
 0x327   :  { %2104 = vmax.xlane.f32.xlu1 %v2060_v57  ;;  %v2062_v57 = vsel %vm2047_vm1, %v8973_v24, 0.0 }
 0x328   :  { %2134 = vmax.xlane.f32.xlu0 %v2075_v0  ;;  %3314 = vmatpush.msrb.mxu2 %v1747_v60  ;;  %v1597_v41 = vpop.f32.mrf.mxu0 }
 0x329   :  { %v4265_v35 = vpop.eup %4264  ;;  %v6285_v54 = vpop.xlane.xlu2 %2017  ;;  %v1598_v4 = vadd.f32 %v1597_v41, %v5845_v2 }
 0x32a   :  { %v2369_v27 = vmul.f32 %v4265_v35, %v2016_v16  ;;  %4266 = vrcp.f32 %v6285_v54  ;;  %3315 = vmatpush.msrb.mxu2 %v1745_v31  ;;  %vm2374_vm14 = vweird.f32 %v4265_v35  ;;  %v2115_v31 = vpop.xlane.xlu1 %2114  ;;  %v2393_v6 = vand.u32 2147483648, %v6285_v54 }
 0x32b   :  { %v1686_v47 = vpop.f32.mrf.mxu1  ;;  %vm2375_vm3 = vmor %vm2373_vm2, %vm2374_vm14  ;;  %vm2387_vm14 = vweird.f32 %v6285_v54 }
 0x32c   :  { %v2370_v12 = vsub.f32 1.0, %v2369_v27  ;;  %v6293_v32 = vadd.f32 %v1686_v47, %v1598_v4  ;;  %3316 = vmatpush.msrb.mxu2 %v1743_v33  ;;  %v2394_v24 = vor.u32 1.1754944e-38, %v2393_v6 }
 0x32e   :  { %v2371_v38 = vmul.f32 %v4265_v35, %v2370_v12  ;;  %2142 = vmax.xlane.f32.xlu2 %v2079_v29  ;;  %3317 = vmatpush.msrb.mxu2 %v1741_v18 }
 0x32f   :  { %2110 = vmax.xlane.f32.xlu1 %v2063_v22  ;;  %v2077_v22 = vsel %vm2047_vm1, %v6254_v21, 0.0 }
 0x330   :  { %v2372_v0 = vadd.f32 %v4265_v35, %v2371_v38  ;;  %2108 = vmax.xlane.f32.xlu0 %v2062_v57  ;;  %v4267_v23 = vpop.eup %4266  ;;  %v6300_v45 = vpop.xlane.xlu0 %2019  ;;  %3318 = vmatpush.msrb.mxu2 %v1739_v51  ;;  %v2391_v38 = vand.u32 2147483647, %v6285_v54 }
 0x331   :  { %v2383_v27 = vmul.f32 %v4267_v23, %v6285_v54  ;;  %4268 = vrcp.f32 %v6300_v45  ;;  %v1600_v33 = vpop.f32.mrf.mxu0  ;;  %vm2388_vm8 = vweird.f32 %v4267_v23  ;;  %v2117_v53 = vpop.xlane.xlu2 %2116 }
 0x332   :  { %v2376_v60 = vsel %vm2375_vm3, %v4265_v35, %v2372_v0  ;;  %v1601_v36 = vadd.f32 %v1600_v33, %v5845_v2  ;;  %3319 = vmatpush.msrb.mxu2 %v1737_v13  ;;  %v1735_v35 = vmax.f32 %v6062_v37, 0.0  ;;  %vm2389_vm2 = vmor %vm2387_vm14, %vm2388_vm8  ;;  %vm2392_vm3 = vcmp.eq.f32.partialorder %v2391_v38, 8.507059e+37 }
 0x333   :  { %v2381_v16 = vsel %vm2378_vm5, %v2380_v39, %v2376_v60  ;;  %v1689_v47 = vpop.f32.mrf.mxu1  ;;  %v2384_v41 = vsub.f32 1.0, %v2383_v27  ;;  %v1729_v39 = vmax.f32 %v5967_v19, 0.0  ;;  %v2407_v27 = vand.u32 2147483648, %v6300_v45 }
 0x334   :  { %v6306_v12 = vmul.f32 %v2381_v16, %v2113_v55  ;;  %v1733_v55 = vmax.f32 %v6033_v46, 0.0  ;;  %v6316_v42 = vadd.f32 %v1689_v47, %v1601_v36  ;;  %3320 = vmatpush.msrb.mxu2 %v1735_v35  ;;  %v1731_v46 = vmax.f32 %v6005_v30, 0.0 }
 0x335   :  { %v2385_v4 = vmul.f32 %v4267_v23, %v2384_v41  ;;  %v1727_v16 = vmax.f32 %v5915_v44, 0.0  ;;  %v2405_v30 = vand.u32 2147483647, %v6300_v45  ;;  %v1725_v19 = vmax.f32 %v5879_v26, 0.0 }
 0x336   :  { %8974 = vst [vmem:[#allocation21_spill] sm:$0xff] %v6306_v12  ;;  %3321 = vmatpush.msrb.mxu2 %v1733_v55  ;;  %vm2401_vm5 = vweird.f32 %v6300_v45  ;;  %v2408_v36 = vor.u32 1.1754944e-38, %v2407_v27 }
 0x337   :  { %8975 = vst [vmem:[#allocation2_spill] sm:$0xff] %v6316_v42  ;;  %2140 = vmax.xlane.f32.xlu1 %v2078_v50  ;;  %v4269_v18 = vpop.eup %4268  ;;  %v2386_v37 = vadd.f32 %v4267_v23, %v2385_v4  ;;  %vm2406_vm14 = vcmp.eq.f32.partialorder %v2405_v30, 8.507059e+37 }
 0x338   :  { %2138 = vmax.xlane.f32.xlu0 %v2077_v22  ;;  %v2397_v57 = vmul.f32 %v4269_v18, %v6300_v45  ;;  %3322 = vmatpush.msrb.mxu2 %v1731_v46  ;;  %vm2402_vm1 = vweird.f32 %v4269_v18 }
 0x339   :  { %v2390_v29 = vsel %vm2389_vm2, %v4267_v23, %v2386_v37  ;;  %v1602_v13 = vpop.f32.mrf.mxu0  ;;  %vm2403_vm8 = vmor %vm2401_vm5, %vm2402_vm1 }
 0x33a   :  { %v2022_v0 = vpop.xlane.xlu1 %2021  ;;  %v2395_v51 = vsel %vm2392_vm3, %v2394_v24, %v2390_v29  ;;  %v2398_v21 = vsub.f32 1.0, %v2397_v57  ;;  %v1603_v23 = vadd.f32 %v1602_v13, %v5845_v2  ;;  %3323 = vmatpush.msrb.mxu2 %v1729_v39 }
 0x33b   :  { %4270 = vrcp.f32 %v2022_v0  ;;  %v1691_v60 = vpop.f32.mrf.mxu1  ;;  %v6325_v54 = vmul.f32 %v2395_v51, %v2115_v31  ;;  %v2827_v31 = vsel %vm2641_vm9, %v6306_v12, 0.0  ;;  %v2119_v4 = vpop.xlane.xlu0 %2118  ;;  %v2421_v46 = vand.u32 2147483648, %v2022_v0 }
 0x33c   :  { %v2399_v47 = vmul.f32 %v4269_v18, %v2398_v21  ;;  %v6341_v6 = vadd.f32 %v1691_v60, %v1603_v23  ;;  %3324 = vmatpush.msrb.mxu2 %v1727_v16  ;;  %v2419_v51 = vand.u32 2147483647, %v2022_v0 }
 0x33d   :  { %8976 = vst [vmem:[#allocation16_spill] sm:$0xff] %v6325_v54  ;;  %v2828_v41 = vsel %vm2642_vm11, %v6325_v54, 0.0  ;;  %vm2415_vm11 = vweird.f32 %v2022_v0  ;;  %v2422_v27 = vor.u32 1.1754944e-38, %v2421_v46 }
 0x33e   :  { %v2843_v44 = vmax.f32 %v2827_v31, %v2828_v41  ;;  %v2400_v33 = vadd.f32 %v4269_v18, %v2399_v47  ;;  %8977 = vst [vmem:[#allocation4_spill] sm:$0xff] %v6341_v6  ;;  %3325 = vmatpush.msrb.mxu2 %v1725_v19  ;;  %vm2420_vm3 = vcmp.eq.f32.partialorder %v2419_v51, 8.507059e+37 }
 0x340   :  { %v2404_v35 = vsel %vm2403_vm8, %v4269_v18, %v2400_v33 }
 0x341   :  { %v4271_v26 = vpop.eup %4270  ;;  %v2024_v38 = vpop.xlane.xlu2 %2023  ;;  %v2409_v50 = vsel %vm2406_vm14, %v2408_v36, %v2404_v35 }
 0x342   :  { %v2411_v55 = vmul.f32 %v4271_v26, %v2022_v0  ;;  %4272 = vrcp.f32 %v2024_v38  ;;  %v6343_v22 = vmul.f32 %v2409_v50, %v2117_v53  ;;  %v1605_v57 = vpop.f32.mrf.mxu0  ;;  %vm2416_vm9 = vweird.f32 %v4271_v26  ;;  %v2121_v30 = vpop.xlane.xlu1 %2120 }
 0x343   :  { %v1694_v37 = vpop.f32.mrf.mxu1  ;;  %v1606_v18 = vadd.f32 %v1605_v57, %v5845_v2  ;;  %vm2417_vm2 = vmor %vm2415_vm11, %vm2416_vm9  ;;  %v2433_v35 = vand.u32 2147483647, %v2024_v38  ;;  %vm2429_vm1 = vweird.f32 %v2024_v38 }
 0x344   :  { %8978 = vst [vmem:[#allocation5_spill] sm:$0xff] %v6343_v22  ;;  %v2412_v24 = vsub.f32 1.0, %v2411_v55  ;;  %v2829_v45 = vsel %vm2643_vm0, %v6343_v22, 0.0 }
 0x345   :  { %v2844_v29 = vmax.f32 %v2829_v45, %v2843_v44  ;;  %v6350_v21 = vadd.f32 %v1694_v37, %v1606_v18  ;;  %v2435_v44 = vand.u32 2147483648, %v2024_v38  ;;  %vm2434_vm8 = vcmp.eq.f32.partialorder %v2433_v35, 8.507059e+37 }
 0x346   :  { %v2413_v39 = vmul.f32 %v4271_v26, %v2412_v24 }
 0x347   :  { %8979 = vst [vmem:[#allocation23_spill] sm:$0xff] %v6350_v21 }
 0x348   :  { %v4273_v60 = vpop.eup %4272  ;;  %v2414_v53 = vadd.f32 %v4271_v26, %v2413_v39  ;;  %v2026_v16 = vpop.xlane.xlu0 %2025 }
 0x349   :  { %v2425_v13 = vmul.f32 %v4273_v60, %v2024_v38  ;;  %4274 = vrcp.f32 %v2026_v16  ;;  %vm2430_vm0 = vweird.f32 %v4273_v60  ;;  %v2123_v46 = vpop.xlane.xlu2 %2122  ;;  %vm2443_vm14 = vweird.f32 %v2026_v16 }
 0x34a   :  { %v2418_v47 = vsel %vm2417_vm2, %v4271_v26, %v2414_v53  ;;  %v1607_v33 = vpop.f32.mrf.mxu0  ;;  %vm2431_vm5 = vmor %vm2429_vm1, %vm2430_vm0  ;;  %vm8985_vm1 = vcmp.eq.s32.totalorder %v6089_v11, %v5276_v63 }
 0x34b   :  { %v2423_v23 = vsel %vm2420_vm3, %v2422_v27, %v2418_v47  ;;  %v2426_v19 = vsub.f32 1.0, %v2425_v13  ;;  %v1696_v31 = vpop.f32.mrf.mxu1  ;;  %v1608_v0 = vadd.f32 %v1607_v33, %v5845_v2  ;;  %v2447_v13 = vand.u32 2147483647, %v2026_v16 }
 0x34c   :  { %v6352_v41 = vmul.f32 %v2423_v23, %v2119_v4  ;;  %v2436_v4 = vor.u32 1.1754944e-38, %v2435_v44 }
 0x34d   :  { %v2427_v36 = vmul.f32 %v4273_v60, %v2426_v19  ;;  %v6359_v37 = vadd.f32 %v1696_v31, %v1608_v0  ;;  %vm2448_vm11 = vcmp.eq.f32.partialorder %v2447_v13, 8.507059e+37 }
 0x34e   :  { %8980 = vst [vmem:[#allocation3_spill] sm:$0xff] %v6352_v41  ;;  %v2830_v26 = vsel %vm2644_vm6, %v6352_v41, 0.0 }
 0x34f   :  { %v2845_v50 = vmax.f32 %v2830_v26, %v2844_v29  ;;  %v2428_v55 = vadd.f32 %v4273_v60, %v2427_v36  ;;  %8981 = vst [vmem:[#allocation8_spill] sm:$0xff] %v6359_v37  ;;  %v4275_v24 = vpop.eup %4274  ;;  %v2449_v29 = vand.u32 2147483648, %v2026_v16 }
 0x350   :  { %v2439_v45 = vmul.f32 %v4275_v24, %v2026_v16  ;;  %vm2444_vm6 = vweird.f32 %v4275_v24 }
 0x351   :  { %v2432_v57 = vsel %vm2431_vm5, %v4273_v60, %v2428_v55  ;;  %vm2445_vm9 = vmor %vm2443_vm14, %vm2444_vm6  ;;  %v2450_v44 = vor.u32 1.1754944e-38, %v2449_v29  ;;  %vm8987_vm14 = vcmp.eq.s32.totalorder %v6101_v14, %v5276_v63 }
 0x352   :  { %v2437_v18 = vsel %vm2434_vm8, %v2436_v4, %v2432_v57  ;;  %v2028_v39 = vpop.xlane.xlu1 %2027  ;;  %v2440_v53 = vsub.f32 1.0, %v2439_v45  ;;  %v1610_v47 = vpop.f32.mrf.mxu0 }
 0x353   :  { %v6361_v51 = vmul.f32 %v2437_v18, %v2121_v30  ;;  %4276 = vrcp.f32 %v2028_v39  ;;  %v1699_v27 = vpop.f32.mrf.mxu1  ;;  %v1611_v60 = vadd.f32 %v1610_v47, %v5845_v2  ;;  %v2125_v29 = vpop.xlane.xlu0 %2124  ;;  %vm2457_vm2 = vweird.f32 %v2028_v39 }
 0x354   :  { %v2441_v23 = vmul.f32 %v4275_v24, %v2440_v53 }
 0x355   :  { %8982 = vst [vmem:[#allocation9_spill] sm:$0xff] %v6361_v51  ;;  %v2831_v38 = vsel %vm2645_vm13, %v6361_v51, 0.0  ;;  %v6368_v30 = vadd.f32 %v1699_v27, %v1611_v60  ;;  %v2461_v27 = vand.u32 2147483647, %v2028_v39 }
 0x356   :  { %v2846_v19 = vmax.f32 %v2831_v38, %v2845_v50  ;;  %v2442_v31 = vadd.f32 %v4275_v24, %v2441_v23  ;;  %v2463_v50 = vand.u32 2147483648, %v2028_v39 }
 0x357   :  { %vm2462_vm0 = vcmp.eq.f32.partialorder %v2461_v27, 8.507059e+37 }
 0x358   :  { %v2446_v36 = vsel %vm2445_vm9, %v4275_v24, %v2442_v31  ;;  %v2464_v23 = vor.u32 1.1754944e-38, %v2463_v50  ;;  %vm2331_vm9 = vweird.f32 %v6202_v1 }
 0x359   :  { %v4277_v33 = vpop.eup %4276  ;;  %v2030_v35 = vpop.xlane.xlu2 %2029  ;;  %v2451_v0 = vsel %vm2448_vm11, %v2450_v44, %v2446_v36 }
 0x35a   :  { %v2453_v26 = vmul.f32 %v4277_v33, %v2028_v39  ;;  %4278 = vrcp.f32 %v2030_v35  ;;  %v6370_v55 = vmul.f32 %v2451_v0, %v2123_v46  ;;  %v1612_v45 = vpop.f32.mrf.mxu0  ;;  %vm2458_vm13 = vweird.f32 %v4277_v33  ;;  %v2127_v13 = vpop.xlane.xlu1 %2126 }
 0x35b   :  { %v1701_v4 = vpop.f32.mrf.mxu1  ;;  %v1613_v18 = vadd.f32 %v1612_v45, %v5845_v2  ;;  %vm2459_vm3 = vmor %vm2457_vm2, %vm2458_vm13  ;;  %vm2471_vm5 = vweird.f32 %v2030_v35  ;;  %vm2345_vm2 = vweird.f32 %v6227_v52 }
 0x35c   :  { %8983 = vst [vmem:[#allocation10_spill] sm:$0xff] %v6370_v55  ;;  %v2454_v57 = vsub.f32 1.0, %v2453_v26  ;;  %v2832_v16 = vsel %vm2646_vm4, %v6370_v55, 0.0  ;;  %v2337_v55 = vand.u32 2147483648, %v6202_v1 }
 0x35d   :  { %v2847_v53 = vmax.f32 %v2832_v16, %v2846_v19  ;;  %v6377_v47 = vadd.f32 %v1701_v4, %v1613_v18  ;;  %v2477_v19 = vand.u32 2147483648, %v2030_v35  ;;  %v2475_v16 = vand.u32 2147483647, %v2030_v35 }
 0x35e   :  { %v2455_v24 = vmul.f32 %v4277_v33, %v2454_v57  ;;  %v6463_v7 = vor.u32 1.1754944e-38, %v2337_v55 }
 0x35f   :  { %v2478_v27 = vor.u32 1.1754944e-38, %v2477_v19  ;;  %vm2476_vm6 = vcmp.eq.f32.partialorder %v2475_v16, 8.507059e+37 }
 0x360   :  { %v4279_v46 = vpop.eup %4278  ;;  %v2456_v38 = vadd.f32 %v4277_v33, %v2455_v24 }
 0x361   :  { %v2467_v60 = vmul.f32 %v4279_v46, %v2030_v35  ;;  %vm2472_vm4 = vweird.f32 %v4279_v46 }
 0x362   :  { %v2460_v31 = vsel %vm2459_vm3, %v4277_v33, %v2456_v38  ;;  %v1615_v57 = vpop.f32.mrf.mxu0  ;;  %vm2473_vm8 = vmor %vm2471_vm5, %vm2472_vm4  ;;  %vm2317_vm3 = vweird.f32 %v6231_v40 }
 0x363   :  { %v2465_v44 = vsel %vm2462_vm0, %v2464_v23, %v2460_v31  ;;  %v2468_v36 = vsub.f32 1.0, %v2467_v60  ;;  %v1704_v0 = vpop.f32.mrf.mxu1  ;;  %v1616_v4 = vadd.f32 %v1615_v57, %v5845_v2  ;;  %v6388_v18 = vpop.xlane.xlu0 %2128 }
 0x364   :  { %v6379_v26 = vmul.f32 %v2465_v44, %v2125_v29  ;;  %v6392_v29 = vpop.xlane.xlu1 %2031 }
 0x365   :  { %v2469_v45 = vmul.f32 %v4279_v46, %v2468_v36  ;;  %v6390_v24 = vadd.f32 %v1704_v0, %v1616_v4  ;;  %4280 = vrcp.f32 %v6392_v29  ;;  %v2491_v55 = vand.u32 2147483648, %v6392_v29 }
 0x366   :  { %8984 = vst [vmem:[#allocation32_spill] sm:$0xff] %v6379_v26  ;;  %v2833_v39 = vsel %vm8985_vm1, %v6379_v26, 0.0  ;;  %4282 = vrcp.f32 %v6202_v1  ;;  %vm2485_vm0 = vweird.f32 %v6392_v29 }
 0x367   :  { %v6386_v50 = vmax.f32 %v2833_v39, %v2847_v53  ;;  %v2470_v33 = vadd.f32 %v4279_v46, %v2469_v45 }
 0x369   :  { %v2474_v38 = vsel %vm2473_vm8, %v4279_v46, %v2470_v33  ;;  %v6397_v31 = vpop.xlane.xlu2 %2033 }
 0x36a   :  { %v2479_v23 = vsel %vm2476_vm6, %v2478_v27, %v2474_v38  ;;  %v6402_v35 = vpop.f32.mrf.mxu0  ;;  %4284 = vrcp.f32 %v6397_v31  ;;  %vm2499_vm8 = vweird.f32 %v6397_v31  ;;  %v2503_v42 = vand.u32 2147483647, %v6397_v31 }
 0x36b   :  { %v6394_v60 = vmul.f32 %v2479_v23, %v2127_v13  ;;  %v6399_v53 = vpop.f32.mrf.mxu1  ;;  %v6413_v46 = vpop.eup %4280  ;;  %4286 = vrcp.f32 %v6227_v52 }
 0x36c   :  { %v6416_v36 = vpop.xlane.xlu0 %2035  ;;  %v6418_v0 = vpop.eup %4282  ;;  %4288 = vrcp.f32 %v6231_v40  ;;  %v2481_v45 = vmul.f32 %v6413_v46, %v6392_v29  ;;  %vm2486_vm13 = vweird.f32 %v6413_v46 }
 0x36d   :  { %8986 = vst [vmem:[#allocation33_spill] sm:$0xff] %v6394_v60  ;;  %v6408_v44 = vsel %vm8987_vm14, %v6394_v60, 0.0  ;;  %4290 = vrcp.f32 %v6265_v17  ;;  %v2327_v4 = vmul.f32 %v6418_v0, %v6202_v1  ;;  %v6441_v60 = vpop.xlane.xlu1 %2130  ;;  %vm2332_vm11 = vweird.f32 %v6418_v0  ;;  %vm6487_vm4 = vmor %vm2485_vm0, %vm2486_vm13 }
 0x36e   :  { %4292 = vrcp.f32 %v6416_v36  ;;  %v2482_v38 = vsub.f32 1.0, %v2481_v45  ;;  %vm6518_vm6 = vmor %vm2331_vm9, %vm2332_vm11  ;;  %vm6537_vm11 = vcmp.eq.f32.partialorder %v2321_v49, 8.507059e+37 }
 0x36f   :  { %v2328_v13 = vsub.f32 1.0, %v2327_v4 }
 0x370   :  { %v6424_v57 = vpop.eup %4284  ;;  %v2483_v4 = vmul.f32 %v6413_v46, %v2482_v38 }
 0x371   :  { %v6433_v39 = vpop.eup %4286  ;;  %v2495_v33 = vmul.f32 %v6424_v57, %v6397_v31  ;;  %v2329_v11 = vmul.f32 %v6418_v0, %v2328_v13  ;;  %vm2500_vm1 = vweird.f32 %v6424_v57 }
 0x372   :  { %v6429_v16 = vpop.f32.mrf.mxu0  ;;  %v6437_v27 = vpop.eup %4288  ;;  %v2341_v51 = vmul.f32 %v6433_v39, %v6227_v52  ;;  %v2484_v13 = vadd.f32 %v6413_v46, %v2483_v4  ;;  %v6485_v4 = vor.u32 1.1754944e-38, %v2323_v28  ;;  %vm6524_vm13 = vmor %vm2499_vm8, %vm2500_vm1  ;;  %vm2346_vm0 = vweird.f32 %v6433_v39 }
 0x373   :  { %v6422_v19 = vpop.f32.mrf.mxu1  ;;  %v6439_v23 = vpop.eup %4290  ;;  %v2313_v41 = vmul.f32 %v6437_v27, %v6231_v40  ;;  %v2496_v22 = vsub.f32 1.0, %v2495_v33  ;;  %v2335_v33 = vand.u32 2147483647, %v6202_v1  ;;  %vm2318_vm9 = vweird.f32 %v6437_v27 }
 0x374   :  { %v6443_v26 = vpop.eup %4292  ;;  %v2355_v45 = vmul.f32 %v6439_v23, %v6265_v17  ;;  %v2342_v58 = vsub.f32 1.0, %v2341_v51  ;;  %v2488_v37 = vsel %vm6487_vm4, %v6413_v46, %v2484_v13  ;;  %vm6542_vm4 = vcmp.eq.f32.partialorder %v2349_v5, 8.507059e+37 }
 0x375   :  { %v2509_v14 = vmul.f32 %v6443_v26, %v6416_v36  ;;  %v2314_v15 = vsub.f32 1.0, %v2313_v41  ;;  %v2497_v38 = vmul.f32 %v6424_v57, %v2496_v22  ;;  %v6478_v22 = vadd.f32 %v6418_v0, %v2329_v11  ;;  %v6493_v11 = vpop.xlane.xlu2 %2132 }
 0x376   :  { %v2356_v48 = vsub.f32 1.0, %v2355_v45  ;;  %v2351_v41 = vand.u32 2147483648, %v6227_v52  ;;  %v2489_v45 = vand.u32 2147483647, %v6392_v29  ;;  %vm6497_vm5 = vcmp.eq.f32.partialorder %v2335_v33, 8.507059e+37 }
 0x377   :  { %v2510_v34 = vsub.f32 1.0, %v2509_v14  ;;  %v2498_v14 = vadd.f32 %v6424_v57, %v2497_v38  ;;  %v2315_v29 = vmul.f32 %v6437_v27, %v2314_v15  ;;  %v2343_v28 = vmul.f32 %v6433_v39, %v2342_v58 }
 0x378   :  { %v2505_v38 = vand.u32 2147483648, %v6397_v31  ;;  %v2357_v6 = vmul.f32 %v6439_v23, %v2356_v48  ;;  %v2492_v33 = vor.u32 1.1754944e-38, %v2491_v55  ;;  %vm2490_vm14 = vcmp.eq.f32.partialorder %v2489_v45, 8.507059e+37 }
 0x379   :  { %v2511_v15 = vmul.f32 %v6443_v26, %v2510_v34  ;;  %v2334_v34 = vsel %vm6518_vm6, %v6418_v0, %v6478_v22  ;;  %v2352_v48 = vor.u32 1.1754944e-38, %v2351_v41  ;;  %v2502_v31 = vsel %vm6524_vm13, %v6424_v57, %v2498_v14  ;;  %vm6572_vm13 = vmor %vm2317_vm3, %vm2318_vm9 }
 0x37a   :  { %v6455_v12 = vpop.f32.mrf.mxu0  ;;  %v6475_v51 = vpop.xlane.xlu1 %2037  ;;  %v2493_v1 = vsel %vm2490_vm14, %v2492_v33, %v2488_v37  ;;  %v2344_v13 = vadd.f32 %v6433_v39, %v2343_v28  ;;  %v2506_v22 = vor.u32 1.1754944e-38, %v2505_v38  ;;  %v2316_v37 = vadd.f32 %v6437_v27, %v2315_v29  ;;  %vm6558_vm14 = vmor %vm2345_vm2, %vm2346_vm0 }
 0x37b   :  { %v6450_v54 = vpop.f32.mrf.mxu1  ;;  %v6467_v8 = vpop.xlane.xlu0 %2039  ;;  %vm2360_vm1 = vweird.f32 %v6439_v23  ;;  %v2365_v57 = vand.u32 2147483648, %v6265_v17  ;;  %vm2504_vm8 = vcmp.eq.f32.partialorder %v2503_v42, 8.507059e+37  ;;  %v2512_v49 = vadd.f32 %v6443_v26, %v2511_v15 }
 0x37c   :  { %4294 = vrcp.f32 %v6467_v8  ;;  %vm2514_vm6 = vweird.f32 %v6443_v26  ;;  %v2358_v41 = vadd.f32 %v6439_v23, %v2357_v6  ;;  %v6565_v14 = vmul.f32 %v2493_v1, %v6388_v18 }
 0x37d   :  { %4296 = vrcp.f32 %v6475_v51  ;;  %v2507_v42 = vsel %vm2504_vm8, %v2506_v22, %v2502_v31  ;;  %v2519_v29 = vand.u32 2147483648, %v6416_v36  ;;  %vm2359_vm2 = vweird.f32 %v6265_v17 }
 0x37e   :  { %vm2513_vm0 = vweird.f32 %v6416_v36  ;;  %v2517_v52 = vand.u32 2147483647, %v6416_v36  ;;  %vm6587_vm8 = vmor %vm2359_vm2, %vm2360_vm1  ;;  %v2363_v33 = vand.u32 2147483647, %v6265_v17  ;;  %v2339_v10 = vsel %vm6497_vm5, %v6463_v7, %v2334_v34 }
 0x37f   :  { %vm6594_vm3 = vmor %vm2513_vm0, %vm2514_vm6  ;;  %v2320_v58 = vsel %vm6572_vm13, %v6437_v27, %v2316_v37  ;;  %v2366_v1 = vor.u32 1.1754944e-38, %v2365_v57  ;;  %v2348_v17 = vsel %vm6558_vm14, %v6433_v39, %v2344_v13  ;;  %v6610_v31 = vmul.f32 %v2507_v42, %v6441_v60 }
 0x380   :  { %v2516_v22 = vsel %vm6594_vm3, %v6443_v26, %v2512_v49  ;;  %v2362_v7 = vsel %vm6587_vm8, %v6439_v23, %v2358_v41  ;;  %v2835_v27 = vsel %vm2649_vm12, %v6565_v14, 0.0  ;;  %v2520_v39 = vor.u32 1.1754944e-38, %v2519_v29 }
 0x381   :  { %v1621_v60 = vadd.f32 %v6429_v16, %v5845_v2  ;;  %v6627_v34 = vadd.s32 104, %v5902_v25  ;;  %vm2518_vm5 = vcmp.eq.f32.partialorder %v2517_v52, 8.507059e+37  ;;  %vm2364_vm9 = vcmp.eq.f32.partialorder %v2363_v33, 8.507059e+37 }
 0x382   :  { %v6508_v21 = vpop.f32.mrf.mxu0  ;;  %v6546_v0 = vpop.eup %4294  ;;  %v2521_v13 = vsel %vm2518_vm5, %v2520_v39, %v2516_v22  ;;  %v2325_v23 = vsel %vm6537_vm11, %v6485_v4, %v2320_v58  ;;  %v6633_v37 = vsel %vm2364_vm9, %v2366_v1, %v2362_v7  ;;  %v6637_v57 = vsel %vm6542_vm4, %v2352_v48, %v2348_v17 }
 0x383   :  { %v6495_v43 = vpop.f32.mrf.mxu1  ;;  %v6562_v45 = vpop.eup %4296  ;;  %v2537_v18 = vmul.f32 %v6546_v0, %v6467_v8  ;;  %v9008_v16 = vmax.f32 %v6408_v44, %v6386_v50  ;;  %v2836_v41 = vsel %vm2650_vm7, %v6610_v31, 0.0  ;;  %v6648_v5 = vadd.f32 %v6402_v35, %v5845_v2 }
 0x384   :  { %v2523_v59 = vmul.f32 %v6562_v45, %v6475_v51  ;;  %v6651_v46 = vadd.f32 %v6422_v19, %v1621_v60  ;;  %v1623_v48 = vadd.f32 %v6455_v12, %v5845_v2  ;;  %vm2654_vm12 = vcmp.eq.s32.totalorder %v6627_v34, %v5276_v63 }
 0x385   :  { %v2538_v26 = vsub.f32 1.0, %v2537_v18  ;;  %v2851_v49 = vmax.f32 %v2835_v27, %v9008_v16  ;;  %v6660_v50 = vadd.s32 96, %v5902_v25  ;;  %v6663_v44 = vmul.f32 %v2521_v13, %v6493_v11 }
 0x386   :  { %v2524_v4 = vsub.f32 1.0, %v2523_v59  ;;  %vm2527_vm7 = vweird.f32 %v6475_v51  ;;  %v2531_v12 = vand.u32 2147483647, %v6475_v51  ;;  %v1626_v6 = vadd.f32 %v6508_v21, %v5845_v2 }
 0x387   :  { %v2539_v19 = vmul.f32 %v6546_v0, %v2538_v26  ;;  %v2850_v29 = vmax.f32 %v2836_v41, %v2851_v49  ;;  %vm2541_vm11 = vweird.f32 %v6467_v8  ;;  %v2545_v33 = vand.u32 2147483647, %v6467_v8 }
 0x388   :  { %v2547_v15 = vand.u32 2147483648, %v6467_v8  ;;  %v2525_v58 = vmul.f32 %v6562_v45, %v2524_v4  ;;  %v6683_v1 = vadd.f32 %v6450_v54, %v1623_v48  ;;  %vm2653_vm4 = vcmp.eq.s32.totalorder %v6660_v50, %v5276_v63 }
 0x389   :  { %v6583_v38 = vpop.xlane.xlu2 %2043  ;;  %v2837_v17 = vsel %vm2651_vm15, %v6663_v44, 0.0  ;;  %v9009_v22 = vmax.f32 %v6224_v62, %v6240_v20  ;;  %v2540_v59 = vadd.f32 %v6546_v0, %v2539_v19  ;;  %vm2542_vm1 = vweird.f32 %v6546_v0 }
 0x38a   :  { %v6598_v36 = vpop.f32.mrf.mxu0  ;;  %4298 = vrcp.f32 %v6583_v38  ;;  %v6704_v7 = vadd.f32 %v6495_v43, %v1626_v6  ;;  %vm6708_vm6 = vcmp.eq.f32.partialorder %v2531_v12, 8.507059e+37  ;;  %v6713_v60 = vadd.s32 120, %v5902_v25  ;;  %vm6732_vm13 = vmor %vm2541_vm11, %vm2542_vm1 }
 0x38b   :  { %v6581_v28 = vpop.f32.mrf.mxu1  ;;  %vm6717_vm15 = vcmp.eq.f32.partialorder %v2545_v33, 8.507059e+37  ;;  %v2526_v26 = vadd.f32 %v6562_v45, %v2525_v58  ;;  %vm2528_vm14 = vweird.f32 %v6562_v45  ;;  %v6724_v43 = vadd.s32 112, %v5902_v25 }
 0x38c   :  { %v6726_v13 = vmax.f32 %v2850_v29, %v2837_v17  ;;  %v2548_v4 = vor.u32 1.1754944e-38, %v2547_v15  ;;  %v1628_v19 = vadd.f32 %v6598_v36, %v5845_v2  ;;  %v2544_v33 = vsel %vm6732_vm13, %v6546_v0, %v2540_v59  ;;  %vm6750_vm2 = vmor %vm2527_vm7, %vm2528_vm14 }
 0x38d   :  { %vm2656_vm0 = vcmp.eq.s32.totalorder %v6713_v60, %v5276_v63  ;;  %v2530_v15 = vsel %vm6750_vm2, %v6562_v45, %v2526_v26  ;;  %vm2655_vm8 = vcmp.eq.s32.totalorder %v6724_v43, %v5276_v63  ;;  %vm2569_vm5 = vweird.f32 %v6583_v38 }
 0x390   :  { %v6676_v40 = vpop.eup %4298 }
 0x391   :  { %v2107_v42 = vpop.xlane.xlu2 %2106  ;;  %v2565_v27 = vmul.f32 %v6676_v40, %v6583_v38  ;;  %vm2570_vm1 = vweird.f32 %v6676_v40 }
 0x392   :  { %v6655_v55 = vpop.xlane.xlu1 %2041  ;;  %v6671_v52 = vmul.f32 %v2339_v10, %v2107_v42  ;;  %v1630_v11 = vpop.f32.mrf.mxu0  ;;  %v2533_v10 = vand.u32 2147483648, %v6475_v51 }
 0x393   :  { %4300 = vrcp.f32 %v6655_v55  ;;  %v1719_v35 = vpop.f32.mrf.mxu1  ;;  %v6673_v18 = vpop.xlane.xlu0 %2045  ;;  %v1631_v12 = vadd.f32 %v1630_v11, %v5845_v2  ;;  %v2566_v58 = vsub.f32 1.0, %v2565_v27  ;;  %v2549_v27 = vsel %vm6717_vm15, %v2548_v4, %v2544_v33 }
 0x394   :  { %4302 = vrcp.f32 %v6673_v18  ;;  %v2686_v21 = vsel %vm2654_vm12, %v6671_v52, 0.0  ;;  %v2534_v48 = vor.u32 1.1754944e-38, %v2533_v10  ;;  %v2589_v36 = vand.u32 2147483648, %v6673_v18 }
 0x395   :  { %v6699_v54 = vmax.f32 %v2686_v21, %v9009_v22  ;;  %v1720_v41 = vadd.f32 %v1719_v35, %v1631_v12  ;;  %v2567_v26 = vmul.f32 %v6676_v40, %v2566_v58  ;;  %vm2583_vm9 = vweird.f32 %v6673_v18 }
 0x396   :  { %v2573_v35 = vand.u32 2147483647, %v6583_v38  ;;  %v2590_v39 = vor.u32 1.1754944e-38, %v2589_v36  ;;  %vm2555_vm15 = vweird.f32 %v6655_v55  ;;  %v1779_v36 = vmax.f32 %v6683_v1, 0.0 }
 0x397   :  { %v1785_v12 = vmax.f32 %v1720_v41, 0.0  ;;  %v2568_v58 = vadd.f32 %v6676_v40, %v2567_v26  ;;  %v1707_v41 = vadd.f32 %v6399_v53, %v6648_v5 }
 0x398   :  { %vm2574_vm13 = vcmp.eq.f32.partialorder %v2573_v35, 8.507059e+37 }
 0x399   :  { %v6715_v62 = vpop.eup %4300  ;;  %v2137_v6 = vpop.xlane.xlu2 %2136 }
 0x39a   :  { %v2551_v16 = vmul.f32 %v6715_v62, %v6655_v55  ;;  %v2105_v49 = vpop.xlane.xlu1 %2104  ;;  %v4303_v42 = vpop.eup %4302 }
 0x39b   :  { %v6739_v29 = vmul.f32 %v2325_v23, %v2105_v49  ;;  %v2579_v21 = vmul.f32 %v4303_v42, %v6673_v18  ;;  %v2135_v23 = vpop.xlane.xlu0 %2134  ;;  %v1632_v11 = vpop.f32.mrf.mxu0  ;;  %v1717_v49 = vadd.f32 %v6581_v28, %v1628_v19  ;;  %vm2584_vm3 = vweird.f32 %v4303_v42 }
 0x39c   :  { %v1633_v51 = vadd.f32 %v1632_v11, %v5845_v2  ;;  %v2552_v10 = vsub.f32 1.0, %v2551_v16  ;;  %v1721_v59 = vpop.f32.mrf.mxu1  ;;  %v2587_v2 = vand.u32 2147483647, %v6673_v18  ;;  %v6773_v16 = vmul.f32 %v2549_v27, %v2137_v6  ;;  %vm2585_vm7 = vmor %vm2583_vm9, %vm2584_vm3 }
 0x39d   :  { %v2685_v0 = vsel %vm2653_vm4, %v6739_v29, 0.0  ;;  %v2580_v17 = vsub.f32 1.0, %v2579_v21  ;;  %v1783_v19 = vmax.f32 %v1717_v49, 0.0  ;;  %v2559_v49 = vand.u32 2147483647, %v6655_v55 }
 0x39e   :  { %v2699_v22 = vmax.f32 %v2685_v0, %v6699_v54  ;;  %v1722_v8 = vadd.f32 %v1721_v59, %v1633_v51  ;;  %v2535_v54 = vsel %vm6708_vm6, %v2534_v48, %v2530_v15  ;;  %v2553_v4 = vmul.f32 %v6715_v62, %v2552_v10 }
 0x39f   :  { %v2581_v45 = vmul.f32 %v4303_v42, %v2580_v17  ;;  %vm2588_vm11 = vcmp.eq.f32.partialorder %v2587_v2, 8.507059e+37  ;;  %v2839_v18 = vsel %vm2653_vm4, %v6773_v16, 0.0  ;;  %v2575_v15 = vand.u32 2147483648, %v6583_v38  ;;  %vm6815_vm4 = vmor %vm2569_vm5, %vm2570_vm1 }
 0x3a0   :  { %v1787_v21 = vmax.f32 %v1722_v8, 0.0  ;;  %v2554_v51 = vadd.f32 %v6715_v62, %v2553_v4  ;;  %vm2556_vm6 = vweird.f32 %v6715_v62  ;;  %v6801_v10 = vmul.f32 %v2535_v54, %v2135_v23 }
 0x3a1   :  { %v2582_v28 = vadd.f32 %v4303_v42, %v2581_v45  ;;  %v2143_v48 = vpop.xlane.xlu2 %2142  ;;  %v2572_v38 = vsel %vm6815_vm4, %v6676_v40, %v2568_v58  ;;  %vm6831_vm14 = vmor %vm2555_vm15, %vm2556_vm6  ;;  %v2576_v26 = vor.u32 1.1754944e-38, %v2575_v15  ;;  %vm2560_vm2 = vcmp.eq.f32.partialorder %v2559_v49, 8.507059e+37  ;;  %v9023_v15 = vld [vmem:[#allocation2_spill] sm:$0xff]  ;;  %v9032_v45 = vld [vmem:[#allocation29_spill] sm:$0xff] }
 0x3a2   :  { %v2111_v20 = vpop.xlane.xlu1 %2110  ;;  %3375 = vmatpush.msrb.mxu3 %v1787_v21  ;;  %v2558_v53 = vsel %vm6831_vm14, %v6715_v62, %v2554_v51  ;;  %v2838_v5 = vsel %vm2652_vm10, %v6801_v10, 0.0  ;;  %v1761_v51 = vmax.f32 %v9023_v15, 0.0  ;;  %vm8739_vm10 = vcmp.lt.s32.totalorder %v5902_v25, %v5276_v63 }
 0x3a3   :  { %v6782_v33 = vmul.f32 %v6633_v37, %v2111_v20  ;;  %v2586_v6 = vsel %vm2585_vm7, %v4303_v42, %v2582_v28  ;;  %v2109_v8 = vpop.xlane.xlu0 %2108  ;;  %v2577_v54 = vsel %vm2574_vm13, %v2576_v26, %v2572_v38  ;;  %v1775_v20 = vmax.f32 %v1707_v41, 0.0  ;;  %v9031_v38 = vld [vmem:[#allocation24_spill] sm:$0xff]  ;;  %v9035_v26 = vld [vmem:[#allocation26_spill] sm:$0xff] }
 0x3a4   :  { %v2591_v11 = vsel %vm2588_vm11, %v2590_v39, %v2586_v6  ;;  %v6796_v0 = vmul.f32 %v6637_v57, %v2109_v8  ;;  %3376 = vmatpush.msrb.mxu3 %v1785_v12  ;;  %v2561_v57 = vand.u32 2147483648, %v6655_v55  ;;  %v1777_v55 = vmax.f32 %v6651_v46, 0.0 }
 0x3a5   :  { %v2688_v37 = vsel %vm2656_vm0, %v6782_v33, 0.0  ;;  %v6803_v17 = vmul.f32 %v2591_v11, %v2143_v48  ;;  %v1773_v48 = vmax.f32 %v6390_v24, 0.0  ;;  %v1769_v24 = vmax.f32 %v6368_v30, 0.0  ;;  %v9027_v30 = vld [vmem:[#allocation11_spill] sm:$0xff] }
 0x3a6   :  { %v2702_v42 = vmax.f32 %v2699_v22, %v2688_v37  ;;  %v2687_v59 = vsel %vm2655_vm8, %v6796_v0, 0.0  ;;  %3377 = vmatpush.msrb.mxu3 %v1783_v19  ;;  %v2853_v22 = vmax.f32 %v2839_v18, %v6726_v13  ;;  %v9020_v13 = vmax.f32 %v6704_v7, 0.0 }
 0x3a7   :  { %v2842_v40 = vsel %vm2656_vm0, %v6803_v17, 0.0  ;;  %v2562_v1 = vor.u32 1.1754944e-38, %v2561_v57  ;;  %v1771_v18 = vmax.f32 %v6377_v47, 0.0  ;;  %v9024_v57 = vld [vmem:[#allocation4_spill] sm:$0xff] }
 0x3a8   :  { %v2703_v27 = vmax.f32 %v2687_v59, %v2702_v42  ;;  %3378 = vmatpush.msrb.mxu3 %v9020_v13  ;;  %v2856_v46 = vmax.f32 %v2853_v22, %v2838_v5  ;;  %v1759_v42 = vmax.f32 %v6293_v32, 0.0  ;;  %v1763_v22 = vmax.f32 %v9024_v57, 0.0  ;;  %v9026_v47 = vld [vmem:[#allocation8_spill] sm:$0xff]  ;;  %v9028_v32 = vld [vmem:[#allocation6_spill] sm:$0xff]  ;;  %v9037_v5 = vld [vmem:[#allocation19_spill] sm:$0xff] }
 0x3a9   :  { %v2563_v28 = vsel %vm2560_vm2, %v2562_v1, %v2558_v53  ;;  %v1767_v49 = vmax.f32 %v9026_v47, 0.0  ;;  %v9030_v13 = vld [vmem:[#allocation22_spill] sm:$0xff]  ;;  %v9036_v53 = vld [vmem:[#allocation17_spill] sm:$0xff]  ;;  %v9064_v57 = vmov 0  ;;  %v9069_v47 = vld [vmem:[#allocation3_spill] sm:$0xff] }
 0x3aa   :  { %v2704_v2 = vrot.slane %v2703_v27, 4  ;;  %3379 = vmatpush.msrb.mxu3 %v1779_v36  ;;  %v2141_v21 = vpop.xlane.xlu1 %2140  ;;  %v2852_v19 = vmax.f32 %v2842_v40, %v2856_v46  ;;  %v9029_v36 = vld [vmem:[#allocation20_spill] sm:$0xff]  ;;  %v9038_v40 = vld [vmem:[#allocation27_spill] sm:$0xff]  ;;  %v9039_v1 = vld [vmem:[#allocation18_spill] sm:$0xff] }
 0x3ab   :  { %v6847_v62 = vmul.f32 %v2577_v54, %v2141_v21  ;;  %v2139_v4 = vpop.xlane.xlu0 %2138  ;;  %vm8740_vm9 = vcmp.lt.s32.totalorder %v9039_v1, %v5276_v63  ;;  %v9041_v54 = vld [vmem:[#allocation7_spill] sm:$0xff] }
 0x3ac   :  { %v2705_v7 = vmax.f32 %v2703_v27, %v2704_v2  ;;  %3380 = vmatpush.msrb.mxu3 %v1777_v55  ;;  %v6849_v39 = vmul.f32 %v2563_v28, %v2139_v4  ;;  %v9025_v27 = vld [vmem:[#allocation23_spill] sm:$0xff]  ;;  %v9033_v55 = vld [vmem:[#allocation25_spill] sm:$0xff]  ;;  %v1757_v21 = vmax.f32 %v9041_v54, 0.0  ;;  %v9075_v54 = vld [vmem:[#allocation32_spill] sm:$0xff]  ;;  %v8749_v28 = vmov 0.0  }
 0x3ad   :  { %v2841_v35 = vsel %vm2655_vm8, %v6847_v62, 0.0  ;;  %v1765_v23 = vmax.f32 %v9025_v27, 0.0  ;;  %v9034_v2 = vld [vmem:[#allocation31_spill] sm:$0xff]  ;;  %v9067_v27 = vld [vmem:[#allocation16_spill] sm:$0xff] }
 0x3ae   :  { %v2706_v12 = vrot.slane %v2705_v7, 2  ;;  %3381 = vmatpush.msrb.mxu3 %v1775_v20  ;;  %v2855_v8 = vmax.f32 %v2841_v35, %v2852_v19  ;;  %v2840_v58 = vsel %vm2654_vm12, %v6849_v39, 0.0  ;;  %v9042_v20 = vld [vmem:[#allocation13_spill] sm:$0xff]  ;;  %v9045_v19 = vld [vmem:[#allocation14_spill] sm:$0xff] }
 0x3af   :  { %vm8742_vm0 = vcmp.lt.s32.totalorder %v9042_v20, %v5276_v63  ;;  %vm8743_vm12 = vcmp.lt.s32.totalorder %v9045_v19, %v5276_v63 }
 0x3b0   :  { %v2707_v6 = vmax.f32 %v2705_v7, %v2706_v12  ;;  %3382 = vmatpush.msrb.mxu3 %v1773_v48  ;;  %v2857_v11 = vmax.f32 %v2855_v8, %v2840_v58  ;;  %v9040_v7 = vld [vmem:[#allocation12_spill] sm:$0xff]  ;;  %v9051_v8 = vld [vmem:[#allocation15_spill] sm:$0xff] }
 0x3b1   :  { %vm8741_vm3 = vcmp.lt.s32.totalorder %v9040_v7, %v5276_v63  ;;  %v9048_v48 = vld [vmem:[#allocation28_spill] sm:$0xff] }
 0x3b2   :  { %v2708_v37 = vrot.slane %v2707_v6, 1  ;;  %3383 = vmatpush.msrb.mxu3 %v1771_v18  ;;  %v2858_v41 = vrot.slane %v2857_v11, 4  ;;  %v9054_v18 = vld [vmem:[#allocation30_spill] sm:$0xff] }
 0x3b4   :  { %v6864_v59 = vmax.f32 %v2707_v6, %v2708_v37  ;;  %3384 = vmatpush.msrb.mxu3 %v1769_v24  ;;  %v2859_v46 = vmax.f32 %v2857_v11, %v2858_v41  ;;  %v9073_v41 = vld [vmem:[#allocation9_spill] sm:$0xff] }
 0x3b6   :  { %3385 = vmatpush.msrb.mxu3 %v1767_v49  ;;  %vm2726_vm6 = vcmp.eq.f32.partialorder %v9027_v30, %v6864_v59  ;;  %vm2727_vm4 = vcmp.eq.f32.partialorder %v9028_v32, %v6864_v59  ;;  %vm2728_vm15 = vcmp.eq.f32.partialorder %v9029_v36, %v6864_v59  ;;  %vm2729_vm14 = vcmp.eq.f32.partialorder %v9030_v13, %v6864_v59 }
 0x3b7   :  { %vm2730_vm13 = vcmp.eq.f32.partialorder %v9031_v38, %v6864_v59  ;;  %vm2731_vm2 = vcmp.eq.f32.partialorder %v9032_v45, %v6864_v59  ;;  %vm2732_vm1 = vcmp.eq.f32.partialorder %v9033_v55, %v6864_v59  ;;  %vm2733_vm11 = vcmp.eq.f32.partialorder %v9034_v2, %v6864_v59  ;;  %vm6948_vm7 = vmand %vm2726_vm6, %vm8739_vm10 }
 0x3b8   :  { %3386 = vmatpush.msrb.mxu3 %v1765_v23  ;;  %v2860_v4 = vrot.slane %v2859_v46, 2  ;;  %vm6960_vm8 = vmand %vm2727_vm4, %vm8740_vm9  ;;  %vm8744_vm6 = vcmp.lt.s32.totalorder %v9048_v48, %v5276_v63  ;;  %vm8745_vm4 = vcmp.lt.s32.totalorder %v9051_v8, %v5276_v63  ;;  %v9068_v23 = vld [vmem:[#allocation5_spill] sm:$0xff]  ;;  %v9071_v49 = vmov 0 }
 0x3b9   :  { %vm6972_vm10 = vmand %vm2728_vm15, %vm8741_vm3  ;;  %vm8746_vm15 = vcmp.lt.s32.totalorder %v9054_v18, %v5276_v63  ;;  %vm9082_vm5 = vcmp.eq.f32.partialorder %v9038_v40, %v6864_v59 }
 0x3ba   :  { %3387 = vmatpush.msrb.mxu3 %v1763_v22  ;;  %v2861_v6 = vmax.f32 %v2859_v46, %v2860_v4  ;;  %vm6984_vm9 = vmand %vm2729_vm14, %vm8742_vm0  ;;  %vm8747_vm14 = vcmp.lt.s32.totalorder %v6154_v61, %v5276_v63  ;;  %v9066_v22 = vld [vmem:[#allocation21_spill] sm:$0xff]  ;;  %v9074_v46 = vld [vmem:[#allocation10_spill] sm:$0xff]  ;;  %v9079_v4 = vmov 0 }
 0x3bb   :  { %vm6996_vm3 = vmand %vm2730_vm13, %vm8743_vm12  ;;  %vm8748_vm13 = vcmp.lt.s32.totalorder %v6162_v3, %v5276_v63 }
 0x3bc   :  { %3388 = vmatpush.msrb.mxu3 %v1761_v51  ;;  %v2862_v11 = vrot.slane %v2861_v6, 1  ;;  %vm7008_vm0 = vmand %vm2731_vm2, %vm8744_vm6  ;;  %vm9086_vm2 = vcmp.lt.s32.totalorder %v6660_v50, %v5276_v63 }
 0x3bd   :  { %vm7020_vm12 = vmand %vm2732_vm1, %vm8745_vm4  ;;  %vm9063_vm4 = vcmp.eq.f32.partialorder %v9035_v26, %v6864_v59 }
 0x3be   :  { %3389 = vmatpush.msrb.mxu3 %v1759_v42  ;;  %v7024_v15 = vmax.f32 %v2861_v6, %v2862_v11  ;;  %vm7038_vm1 = vmand %vm2733_vm11, %vm8746_vm15  ;;  %vm9081_vm15 = vcmp.lt.s32.totalorder %v6221_v9, %v5276_v63  ;;  %v9083_v6 = vmov 0  ;;  %vm9087_vm11 = vcmp.eq.f32.partialorder %v6739_v29, %v6864_v59 }
 0x3bf   :  { %vm7048_vm6 = vmand %vm9063_vm4, %vm8747_vm14  ;;  %vm9070_vm4 = vcmp.eq.f32.partialorder %v9036_v53, %v6864_v59  ;;  %v9088_v11 = vmov 0 }
 0x3c0   :  { %3390 = vmatpush.msrb.mxu3 %v1757_v21  ;;  %v9065_v57 = vsel %vm7048_vm6, 4294967295, %v9064_v57  ;;  %vm7066_vm14 = vmand %vm9070_vm4, %vm8748_vm13  ;;  %v9076_v21 = vld [vmem:[#allocation33_spill] sm:$0xff]  ;;  %vm9077_vm4 = vcmp.lt.s32.totalorder %v6200_v56, %v5276_v63  ;;  %vm9078_vm13 = vcmp.eq.f32.partialorder %v9037_v5, %v6864_v59 }
 0x3c1   :  { %v9072_v49 = vsel %vm7066_vm14, 4294967295, %v9071_v49  ;;  %vm7086_vm14 = vmand %vm9078_vm13, %vm9077_vm4  ;;  %vm9085_vm13 = vcmp.gt.f32.partialorder %v9027_v30, %v6864_v59 }
 0x3c2   :  { %v9080_v4 = vsel %vm7086_vm14, 4294967295, %v9079_v4  ;;  %vm7100_vm6 = vmand %vm9082_vm5, %vm9081_vm15  ;;  %vm9090_vm5 = vcmp.gt.f32.partialorder %v9028_v32, %v6864_v59 }
 0x3c3   :  { %v9084_v6 = vsel %vm7100_vm6, 4294967295, %v9083_v6  ;;  %vm2758_vm4 = vmor %vm9085_vm13, %vm6948_vm7  ;;  %vm9097_vm13 = vcmp.eq.f32.partialorder %v6796_v0, %v6864_v59 }
 0x3c4   :  { %vm7115_vm14 = vmand %vm9087_vm11, %vm9086_vm2  ;;  %v3924_v30 = vsel %vm2758_vm4, 1.0, %v8749_v28  ;;  %vm9091_vm11 = vcmp.lt.s32.totalorder %v6627_v34, %v5276_v63  ;;  %vm9101_vm2 = vcmp.lt.s32.totalorder %v6713_v60, %v5276_v63 }
 0x3c5   :  { %v9089_v11 = vsel %vm7115_vm14, 4294967295, %v9088_v11  ;;  %vm2759_vm15 = vmor %vm9090_vm5, %vm6960_vm8  ;;  %vm9092_vm14 = vcmp.eq.f32.partialorder %v6671_v52, %v6864_v59  ;;  %vm9095_vm8 = vcmp.gt.f32.partialorder %v9029_v36, %v6864_v59  ;;  %vm2883_vm5 = vcmp.eq.f32.partialorder %v9069_v47, %v7024_v15 }
 0x3c6   :  { %vm7137_vm6 = vmand %vm9092_vm14, %vm9091_vm11  ;;  %v3925_v12 = vsel %vm2759_vm15, 1.0, %v8749_v28  ;;  %vm9096_vm11 = vcmp.lt.s32.totalorder %v6724_v43, %v5276_v63  ;;  %vm9107_vm14 = vcmp.gt.f32.partialorder %v9032_v45, %v6864_v59 }
 0x3c7   :  { %vm2760_vm4 = vmor %vm9095_vm8, %vm6972_vm10  ;;  %vm9100_vm10 = vcmp.gt.f32.partialorder %v9030_v13, %v6864_v59  ;;  %v2806_v35 = vadd.f32 %v3925_v12, %v3924_v30  ;;  %v9106_v13 = vmov 0.0  }
 0x3c8   :  { %vm7159_vm7 = vmand %vm9097_vm13, %vm9096_vm11  ;;  %vm9102_vm13 = vcmp.eq.f32.partialorder %v6782_v33, %v6864_v59  ;;  %v3926_v58 = vsel %vm2760_vm4, 1.0, %v9106_v13 }
 0x3c9   :  { %vm2761_vm15 = vmor %vm9100_vm10, %vm6984_vm9  ;;  %vm9105_vm9 = vcmp.gt.f32.partialorder %v9031_v38, %v6864_v59  ;;  %v2807_v30 = vadd.f32 %v3926_v58, %v2806_v35 }
 0x3ca   :  { %vm7178_vm11 = vmand %vm9102_vm13, %vm9101_vm2  ;;  %vm9108_vm2 = vcmp.gt.f32.partialorder %v9033_v55, %v6864_v59  ;;  %v3927_v37 = vsel %vm2761_vm15, 1.0, %v9106_v13 }
 0x3cb   :  { %vm2762_vm10 = vmor %vm9105_vm9, %vm6996_vm3  ;;  %vm9109_vm3 = vcmp.gt.f32.partialorder %v9034_v2, %v6864_v59  ;;  %v2808_v45 = vadd.f32 %v3927_v37, %v2807_v30  ;;  %v9224_v2 = vmov 0 }
 0x3cc   :  { %vm2763_vm8 = vmor %vm9107_vm14, %vm7008_vm0  ;;  %vm9112_vm0 = vnez %v9065_v57  ;;  %vm9113_vm14 = vcmp.gt.f32.partialorder %v9035_v26, %v6864_v59  ;;  %v3928_v24 = vsel %vm2762_vm10, 1.0, %v9106_v13  ;;  %vm9124_vm10 = vnez %v9084_v6 }
 0x3cd   :  { %vm2764_vm13 = vmor %vm9108_vm2, %vm7020_vm12  ;;  %vm9116_vm12 = vnez %v9072_v49  ;;  %v2809_v42 = vadd.f32 %v3928_v24, %v2808_v45  ;;  %vm9120_vm2 = vnez %v9080_v4  ;;  %v3929_v51 = vsel %vm2763_vm8, 1.0, %v9106_v13 }
 0x3ce   :  { %vm7204_vm4 = vmor %vm9109_vm3, %vm7038_vm1  ;;  %vm9117_vm1 = vcmp.gt.f32.partialorder %v9036_v53, %v6864_v59  ;;  %vm9121_vm3 = vcmp.gt.f32.partialorder %v9037_v5, %v6864_v59  ;;  %v3930_v49 = vsel %vm2764_vm13, 1.0, %v9106_v13  ;;  %vm9132_vm8 = vcmp.gt.f32.partialorder %v6671_v52, %v6864_v59 }
 0x3cf   :  { %vm7213_vm9 = vmor %vm9113_vm14, %vm9112_vm0  ;;  %vm9125_vm14 = vcmp.gt.f32.partialorder %v9038_v40, %v6864_v59  ;;  %v2810_v57 = vadd.f32 %v3929_v51, %v2809_v42  ;;  %v3931_v6 = vsel %vm7204_vm4, 1.0, %v9106_v13  ;;  %v2984_v53 = vand.u32 63, %v5902_v25 }
 0x3d0   :  { %vm7223_vm15 = vmor %vm9117_vm1, %vm9116_vm12  ;;  %vm9128_vm1 = vnez %v9089_v11  ;;  %v7524_v5 = vshra.s32 %v5276_v63, 7 }
 0x3d1   :  { %vm7232_vm0 = vmor %vm9121_vm3, %vm9120_vm2  ;;  %vm9129_vm2 = vcmp.gt.f32.partialorder %v6739_v29, %v6864_v59  ;;  %v2811_v4 = vadd.f32 %v3930_v49, %v2810_v57  ;;  %v3933_v12 = vsel %vm7223_vm15, 1.0, %v9106_v13  ;;  %vm9146_vm15 = vcmp.eq.f32.partialorder %v9067_v27, %v7024_v15 }
 0x3d2   :  { %vm7242_vm12 = vmor %vm9125_vm14, %vm9124_vm10  ;;  %vm9135_vm14 = vcmp.gt.f32.partialorder %v6796_v0, %v6864_v59  ;;  %v3932_v0 = vsel %vm7213_vm9, 1.0, %v9106_v13  ;;  %v3934_v28 = vsel %vm7232_vm0, 1.0, %v9106_v13  ;;  %vm9145_vm9 = vcmp.lt.s32.totalorder %v9039_v1, %v5276_v63 }
 0x3d3   :  { %vm7251_vm3 = vmor %vm9129_vm2, %vm9128_vm1  ;;  %v2812_v11 = vadd.f32 %v3931_v6, %v2811_v4  ;;  %vm9150_vm2 = vcmp.eq.f32.partialorder %v9068_v23, %v7024_v15 }
 0x3d4   :  { %vm7261_vm10 = vmor %vm9132_vm8, %vm7137_vm6  ;;  %vm9138_vm6 = vcmp.gt.f32.partialorder %v6782_v33, %v6864_v59  ;;  %v3935_v59 = vsel %vm7242_vm12, 1.0, %v9106_v13  ;;  %v3936_v58 = vsel %vm7251_vm3, 1.0, %v9106_v13  ;;  %vm9149_vm12 = vcmp.lt.s32.totalorder %v9040_v7, %v5276_v63 }
 0x3d5   :  { %vm7270_vm1 = vmor %vm9135_vm14, %vm7159_vm7  ;;  %v2813_v32 = vadd.f32 %v3932_v0, %v2812_v11  ;;  %vm9141_vm7 = vcmp.lt.s32.totalorder %v5902_v25, %v5276_v63  ;;  %v3937_v45 = vsel %vm7261_vm10, 1.0, %v9106_v13  ;;  %vm9153_vm8 = vcmp.lt.s32.totalorder %v9042_v20, %v5276_v63 }
 0x3d6   :  { %vm7282_vm13 = vmor %vm9138_vm6, %vm7178_vm11  ;;  %vm9142_vm11 = vcmp.eq.f32.partialorder %v9066_v22, %v7024_v15  ;;  %v3938_v42 = vsel %vm7270_vm1, 1.0, %v9106_v13  ;;  %vm9156_vm10 = vcmp.lt.s32.totalorder %v9045_v19, %v5276_v63  ;;  %vm9157_vm6 = vcmp.eq.f32.partialorder %v9073_v41, %v7024_v15 }
 0x3d7   :  { %v2814_v36 = vadd.f32 %v3933_v12, %v2813_v32  ;;  %vm7307_vm4 = vmand %vm9142_vm11, %vm9141_vm7  ;;  %vm9161_vm11 = vcmp.eq.f32.partialorder %v9074_v46, %v7024_v15  ;;  %v3939_v57 = vsel %vm7282_vm13, 1.0, %v9106_v13  ;;  %vm9164_vm1 = vcmp.lt.s32.totalorder %v9051_v8, %v5276_v63 }
 0x3d8   :  { %vm7317_vm0 = vmand %vm9146_vm15, %vm9145_vm9  ;;  %vm9165_vm15 = vcmp.eq.f32.partialorder %v9075_v54, %v7024_v15  ;;  %vm9172_vm13 = vcmp.gt.f32.partialorder %v9066_v22, %v7024_v15 }
 0x3d9   :  { %v2815_v33 = vadd.f32 %v3934_v28, %v2814_v36  ;;  %vm7330_vm3 = vmand %vm9150_vm2, %vm9149_vm12  ;;  %vm9168_vm2 = vcmp.lt.s32.totalorder %v9054_v18, %v5276_v63 }
 0x3da   :  { %vm7340_vm14 = vmand %vm2883_vm5, %vm9153_vm8  ;;  %vm9160_vm5 = vcmp.lt.s32.totalorder %v9048_v48, %v5276_v63  ;;  %vm9169_vm8 = vcmp.eq.f32.partialorder %v9076_v21, %v7024_v15 }
 0x3db   :  { %v2816_v35 = vadd.f32 %v3935_v59, %v2815_v33  ;;  %vm7353_vm7 = vmand %vm9157_vm6, %vm9156_vm10  ;;  %v9212_v59 = vmov 0 }
 0x3dc   :  { %vm7363_vm9 = vmand %vm9161_vm11, %vm9160_vm5  ;;  %vm9173_vm5 = vcmp.gt.f32.partialorder %v9067_v27, %v7024_v15 }
 0x3dd   :  { %v2817_v37 = vadd.f32 %v3936_v58, %v2816_v35  ;;  %vm7376_vm12 = vmand %vm9165_vm15, %vm9164_vm1  ;;  %vm9174_vm1 = vcmp.gt.f32.partialorder %v9068_v23, %v7024_v15  ;;  %v2994_v58 = vand.u32 63, %v6200_v56 }
 0x3de   :  { %vm7386_vm10 = vmand %vm9169_vm8, %vm9168_vm2 }
 0x3df   :  { %v2818_v24 = vadd.f32 %v3937_v45, %v2817_v37  ;;  %vm2912_vm6 = vmor %vm9172_vm13, %vm7307_vm4  ;;  %vm9175_vm4 = vcmp.gt.f32.partialorder %v9069_v47, %v7024_v15  ;;  %v9218_v45 = vmov 0 }
 0x3e0   :  { %vm2913_vm11 = vmor %vm9173_vm5, %vm7317_vm0  ;;  %v3940_v29 = vsel %vm2912_vm6, 1.0, %v9106_v13  ;;  %vm9176_vm0 = vcmp.gt.f32.partialorder %v9073_v41, %v7024_v15 }
 0x3e1   :  { %v2819_v51 = vadd.f32 %v3938_v42, %v2818_v24  ;;  %vm2914_vm15 = vmor %vm9174_vm1, %vm7330_vm3  ;;  %v3941_v6 = vsel %vm2913_vm11, 1.0, %v9106_v13  ;;  %vm9177_vm3 = vcmp.gt.f32.partialorder %v9074_v46, %v7024_v15  ;;  %vm2890_vm11 = vcmp.eq.f32.partialorder %v6663_v44, %v7024_v15 }
 0x3e2   :  { %vm2915_vm2 = vmor %vm9175_vm4, %vm7340_vm14  ;;  %v2960_v22 = vadd.f32 %v3941_v6, %v3940_v29  ;;  %v3942_v27 = vsel %vm2914_vm15, 1.0, %v9106_v13  ;;  %vm9178_vm14 = vcmp.gt.f32.partialorder %v9075_v54, %v7024_v15  ;;  %vm9184_vm1 = vcmp.lt.s32.totalorder %v6154_v61, %v5276_v63 }
 0x3e3   :  { %v2820_v49 = vadd.f32 %v3939_v57, %v2819_v51  ;;  %vm2916_vm8 = vmor %vm9176_vm0, %vm7353_vm7  ;;  %v3943_v41 = vsel %vm2915_vm2, 1.0, %v9106_v13  ;;  %vm9181_vm7 = vcmp.gt.f32.partialorder %v9076_v21, %v7024_v15  ;;  %vm2873_vm4 = vcmp.gt.f32.partialorder %v6610_v31, %v7024_v15 }
 0x3e4   :  { %vm2917_vm13 = vmor %vm9177_vm3, %vm7363_vm9  ;;  %v2961_v11 = vadd.f32 %v3942_v27, %v2960_v22  ;;  %vm2888_vm9 = vcmp.eq.f32.partialorder %v6565_v14, %v7024_v15  ;;  %v3944_v54 = vsel %vm2916_vm8, 1.0, %v9106_v13  ;;  %vm2891_vm2 = vcmp.eq.f32.partialorder %v6801_v10, %v7024_v15 }
 0x3e5   :  { %v2821_v4 = vrot.slane %v2820_v49, 4  ;;  %vm7428_vm6 = vmor %vm9178_vm14, %vm7376_vm12  ;;  %vm2889_vm12 = vcmp.eq.f32.partialorder %v6610_v31, %v7024_v15  ;;  %v3945_v21 = vsel %vm2917_vm13, 1.0, %v9106_v13  ;;  %vm9185_vm0 = vcmp.lt.s32.totalorder %v6162_v3, %v5276_v63 }
 0x3e6   :  { %vm7438_vm5 = vmor %vm9181_vm7, %vm7386_vm10  ;;  %v2962_v32 = vadd.f32 %v3943_v41, %v2961_v11  ;;  %vm2872_vm10 = vcmp.gt.f32.partialorder %v6565_v14, %v7024_v15  ;;  %vm9188_vm13 = vcmp.lt.s32.totalorder %v6200_v56, %v5276_v63  ;;  %v3946_v30 = vsel %vm7428_vm6, 1.0, %v9106_v13 }
 0x3e7   :  { %v2822_v52 = vadd.f32 %v2821_v4, %v2820_v49  ;;  %vm2904_vm15 = vmand %vm2888_vm9, %vm9184_vm1  ;;  %vm2892_vm7 = vcmp.eq.f32.partialorder %v6773_v16, %v7024_v15  ;;  %vm9191_vm1 = vcmp.lt.s32.totalorder %v6221_v9, %v5276_v63  ;;  %v3947_v55 = vsel %vm7438_vm5, 1.0, %v9106_v13 }
 0x3e8   :  { %v2963_v36 = vadd.f32 %v3944_v54, %v2962_v32  ;;  %vm7462_vm8 = vmand %vm2889_vm12, %vm9185_vm0  ;;  %vm2874_vm12 = vcmp.gt.f32.partialorder %v6663_v44, %v7024_v15  ;;  %vm2893_vm6 = vcmp.eq.f32.partialorder %v6849_v39, %v7024_v15  ;;  %vm2876_vm5 = vcmp.gt.f32.partialorder %v6773_v16, %v7024_v15 }
 0x3e9   :  { %v2823_v23 = vrot.slane %v2822_v52, 2  ;;  %vm7469_vm14 = vmand %vm2890_vm11, %vm9188_vm13  ;;  %v3000_v57 = vshra.s32 %v5902_v25, 6  ;;  %vm2894_vm13 = vcmp.eq.f32.partialorder %v6847_v62, %v7024_v15  ;;  %v9202_v4 = vmov 0 }
 0x3ea   :  { %v2964_v33 = vadd.f32 %v3945_v21, %v2963_v36  ;;  %vm2920_vm9 = vmor %vm2872_vm10, %vm2904_vm15  ;;  %vm2875_vm15 = vcmp.gt.f32.partialorder %v6801_v10, %v7024_v15  ;;  %v9204_v29 = vmov 0  ;;  %v8795_v22 = vmov 1.0  }
 0x3eb   :  { %v2824_v0 = vadd.f32 %v2823_v23, %v2822_v52  ;;  %vm7483_vm11 = vmand %vm2891_vm2, %vm9191_vm1  ;;  %vm9194_vm2 = vcmp.lt.s32.totalorder %v6660_v50, %v5276_v63  ;;  %v3948_v42 = vsel %vm2920_vm9, 1.0, %v9106_v13  ;;  %v2985_v27 = vand.u32 63, %v9039_v1 }
 0x3ec   :  { %v2965_v37 = vadd.f32 %v3946_v30, %v2964_v33  ;;  %vm2921_vm10 = vmor %vm2873_vm4, %vm7462_vm8  ;;  %vm9197_vm8 = vcmp.lt.s32.totalorder %v6627_v34, %v5276_v63  ;;  %v3001_v23 = vshra.s32 %v9039_v1, 6  ;;  %v2992_v32 = vand.u32 63, %v6154_v61 }
 0x3ed   :  { %v2825_v12 = vrot.slane %v2824_v0, 1  ;;  %vm7502_vm0 = vmand %vm2892_vm7, %vm9194_vm2  ;;  %v3949_v51 = vsel %vm2921_vm10, 1.0, %v9106_v13  ;;  %vm2877_vm7 = vcmp.gt.f32.partialorder %v6849_v39, %v7024_v15  ;;  %vm2878_vm10 = vcmp.gt.f32.partialorder %v6847_v62, %v7024_v15 }
 0x3ee   :  { %v2966_v44 = vadd.f32 %v3947_v55, %v2965_v37  ;;  %vm2922_vm4 = vmor %vm2874_vm12, %vm7469_vm14  ;;  %vm7542_vm12 = vcmp.eq.s32.totalorder %v3000_v57, %v7524_v5  ;;  %v9208_v39 = vmov 0  ;;  %v3008_v54 = vshra.s32 %v6154_v61, 6 }
 0x3ef   :  { %v2826_v28 = vadd.f32 %v2825_v12, %v2824_v0  ;;  %vm2923_vm14 = vmor %vm2875_vm15, %vm7483_vm11  ;;  %v3950_v40 = vsel %vm2922_vm4, 1.0, %v9106_v13  ;;  %v9203_v4 = vsel %vm7542_vm12, 4294967295, %v9202_v4  ;;  %vm2895_vm11 = vcmp.eq.f32.partialorder %v6803_v17, %v7024_v15 }
 0x3f0   :  { %v2967_v31 = vadd.f32 %v3948_v42, %v2966_v44  ;;  %vm7534_vm9 = vmor %vm2876_vm5, %vm7502_vm0  ;;  %vm9206_vm15 = vcmp.lt.s32.totalorder %v6724_v43, %v5276_v63  ;;  %v3951_v52 = vsel %vm2923_vm14, 1.0, %v9106_v13  ;;  %vm2879_vm5 = vcmp.gt.f32.partialorder %v6803_v17, %v7024_v15 }
 0x3f1   :  { %vm4164_vm3 = vcmp.lt.s32.totalorder %v2826_v28, 0  ;;  %v4165_v14 = vceil.f32 %v2826_v28  ;;  %v4166_v35 = vfloor.f32 %v2826_v28  ;;  %vm2910_vm2 = vmand %vm2894_vm13, %vm9206_vm15  ;;  %vm9207_vm4 = vcmp.lt.s32.totalorder %v6713_v60, %v5276_v63 }
 0x3f2   :  { %v2968_v16 = vadd.f32 %v3949_v51, %v2967_v31  ;;  %v3952_v11 = vsel %vm7534_vm9, 1.0, %v9106_v13  ;;  %vm2926_vm13 = vmor %vm2878_vm10, %vm2910_vm2  ;;  %v9210_v17 = vmov 0  ;;  %v8759_v36 = vand.u32 63, %v9040_v7 }
 0x3f3   :  { %v4167_v38 = vsel %vm4164_vm3, %v4165_v14, %v4166_v35  ;;  %vm7516_vm3 = vmand %vm2893_vm6, %vm9197_vm8  ;;  %v3954_v0 = vsel %vm2926_vm13, 1.0, %v9106_v13  ;;  %v8760_v21 = vshra.s32 %v9040_v7, 6  ;;  %v2993_v28 = vand.u32 63, %v6162_v3 }
 0x3f4   :  { %v4168_v24 = vcvt.f32.s32 %v4167_v38  ;;  %v2969_v6 = vadd.f32 %v3950_v40, %v2968_v16  ;;  %vm2925_vm0 = vmor %vm2877_vm7, %vm7516_vm3  ;;  %vm7590_vm3 = vcmp.eq.s32.totalorder %v3001_v23, %v7524_v5  ;;  %v3009_v14 = vshra.s32 %v6162_v3, 6 }
 0x3f5   :  { %vm2911_vm8 = vmand %vm2895_vm11, %vm9207_vm4  ;;  %v3953_v41 = vsel %vm2925_vm0, 1.0, %v9106_v13  ;;  %v9209_v39 = vsel %vm7590_vm3, 4294967295, %v9208_v39  ;;  %vm7621_vm11 = vcmp.eq.s32.totalorder %v3008_v54, %v7524_v5  ;;  %v9216_v35 = vmov 0 }
 0x3f6   :  { %v7507_v26 = vperm.slane %v4168_v24, 0  ;;  %v2970_v62 = vadd.f32 %v3951_v52, %v2969_v6  ;;  %vm2927_vm7 = vmor %vm2879_vm5, %vm2911_vm8  ;;  %v9213_v59 = vsel %vm7621_vm11, 4294967295, %v9212_v59  ;;  %v3010_v30 = vshra.s32 %v6200_v56, 6 }
 0x3f7   :  { %v3955_v12 = vsel %vm2927_vm7, 1.0, %v9106_v13  ;;  %v9214_v13 = vmov 0  ;;  %v8784_v37 = vand.u32 63, %v6221_v9  ;;  %vm7650_vm0 = vcmp.eq.s32.totalorder %v8760_v21, %v7524_v5 }
 0x3f8   :  { %vm7549_vm1 = vcmp.eq.s32.totalorder %v2984_v53, %v7507_v26  ;;  %v2971_v47 = vadd.f32 %v3952_v11, %v2970_v62  ;;  %vm7597_vm14 = vcmp.eq.s32.totalorder %v2985_v27, %v7507_v26  ;;  %vm7628_vm10 = vcmp.eq.s32.totalorder %v2992_v32, %v7507_v26 }
 0x3f9   :  { %v9205_v29 = vsel %vm7549_vm1, 4294967295, %v9204_v29  ;;  %vm8752_vm6 = vmand %vm7549_vm1, %vm7542_vm12  ;;  %v9211_v17 = vsel %vm7597_vm14, 4294967295, %v9210_v17  ;;  %v9215_v13 = vsel %vm7628_vm10, 4294967295, %v9214_v13  ;;  %vm7640_vm2 = vcmp.eq.s32.totalorder %v2993_v28, %v7507_v26 }
 0x3fa   :  { %3988 = vmatmul.msk.f32.vlgmr.msra.gmra.mxu2 %vm8752_vm6, %v8795_v22  ;;  %v2972_v15 = vadd.f32 %v3953_v41, %v2971_v47  ;;  %vm8751_vm9 = vmand %vm7597_vm14, %vm7590_vm3  ;;  %v9217_v35 = vsel %vm7640_vm2, 4294967295, %v9216_v35  ;;  %v9219_v45 = vsel %vm7650_vm0, 4294967295, %v9218_v45  ;;  %vm7657_vm5 = vcmp.eq.s32.totalorder %v8759_v36, %v7507_v26 }
 0x3fb   :  { %v9220_v55 = vmov 0  ;;  %vm7664_vm4 = vcmp.eq.s32.totalorder %v3009_v14, %v7524_v5  ;;  %v9222_v24 = vmov 0  ;;  %vm7675_vm13 = vcmp.eq.s32.totalorder %v3010_v30, %v7524_v5  ;;  %vm8753_vm8 = vmand %vm7657_vm5, %vm7650_vm0 }
 0x3fc   :  { %v2973_v46 = vadd.f32 %v3954_v0, %v2972_v15  ;;  %v9221_v55 = vsel %vm7657_vm5, 4294967295, %v9220_v55  ;;  %v9223_v24 = vsel %vm7664_vm4, 4294967295, %v9222_v24  ;;  %v9225_v2 = vsel %vm7675_vm13, 4294967295, %v9224_v2 }
 0x3fd   :  { %vm7682_vm7 = vcmp.eq.s32.totalorder %v2994_v58, %v7507_v26  ;;  %v9226_v42 = vmov 0  ;;  %v8769_v31 = vand.u32 63, %v9042_v20  ;;  %v3011_v10 = vshra.s32 %v6221_v9, 6 }
 0x3fe   :  { %v2974_v33 = vadd.f32 %v3955_v12, %v2973_v46  ;;  %v9227_v42 = vsel %vm7682_vm7, 4294967295, %v9226_v42  ;;  %vm7695_vm6 = vcmp.eq.s32.totalorder %v8784_v37, %v7507_v26  ;;  %v9228_v51 = vmov 0 }
 0x3ff   :  { %v9229_v51 = vsel %vm7695_vm6, 4294967295, %v9228_v51  ;;  %v8780_v16 = vand.u32 63, %v6660_v50  ;;  %v8781_v40 = vshra.s32 %v6660_v50, 6  ;;  %v8763_v6 = vand.u32 63, %v6627_v34 }
 0x400   :  { %v2975_v38 = vrot.slane %v2974_v33, 4  ;;  %v8764_v52 = vshra.s32 %v6627_v34, 6  ;;  %v8772_v62 = vshra.s32 %v9042_v20, 6  ;;  %v9230_v11 = vmov 0 }
 0x401   :  { %vm7724_vm15 = vcmp.eq.s32.totalorder %v8780_v16, %v7507_v26  ;;  %v9232_v47 = vmov 0  ;;  %v8761_v41 = vand.u32 63, %v6724_v43  ;;  %vm7736_vm0 = vcmp.eq.s32.totalorder %v8781_v40, %v7524_v5 }
 0x402   :  { %3989 = vmatmul.msk.f32.gmra.mxu2 %vm8751_vm9, %v8795_v22  ;;  %v2976_v44 = vadd.f32 %v2975_v38, %v2974_v33  ;;  %vm7717_vm9 = vcmp.eq.s32.totalorder %v3011_v10, %v7524_v5  ;;  %v9233_v47 = vsel %vm7724_vm15, 4294967295, %v9232_v47  ;;  %v9234_v0 = vmov 0 }
 0x403   :  { %v9231_v11 = vsel %vm7717_vm9, 4294967295, %v9230_v11  ;;  %v9235_v0 = vsel %vm7736_vm0, 4294967295, %v9234_v0  ;;  %vm7743_vm5 = vcmp.eq.s32.totalorder %v8764_v52, %v7524_v5  ;;  %v9236_v46 = vmov 0 }
 0x404   :  { %v2977_v49 = vrot.slane %v2976_v44, 2  ;;  %v9237_v46 = vsel %vm7743_vm5, 4294967295, %v9236_v46  ;;  %vm7750_vm3 = vcmp.eq.s32.totalorder %v8763_v6, %v7507_v26  ;;  %v9238_v12 = vmov 0 }
 0x405   :  { %v9239_v12 = vsel %vm7750_vm3, 4294967295, %v9238_v12  ;;  %v8779_v33 = vshra.s32 %v6724_v43, 6  ;;  %vm7762_vm14 = vcmp.eq.s32.totalorder %v8761_v41, %v7507_v26  ;;  %v9240_v38 = vmov 0 }
 0x406   :  { %v2978_v15 = vadd.f32 %v2977_v49, %v2976_v44  ;;  %v9241_v38 = vsel %vm7762_vm14, 4294967295, %v9240_v38  ;;  %v8778_v49 = vand.u32 63, %v6713_v60  ;;  %v8775_v36 = vshra.s32 %v6713_v60, 6 }
 0x407   :  { %v2983_v21 = vadd.s32 128, %v5276_v63  ;;  %v9242_v41 = vmov 0  ;;  %vm7783_vm1 = vcmp.eq.s32.totalorder %v8769_v31, %v7507_v26  ;;  %v9244_v6 = vmov 0 }
 0x408   :  { %v2979_v44 = vrot.slane %v2978_v15, 1  ;;  %v9245_v6 = vsel %vm7783_vm1, 4294967295, %v9244_v6  ;;  %vm7790_vm12 = vcmp.eq.s32.totalorder %v8779_v33, %v7524_v5  ;;  %v9246_v52 = vmov 0 }
 0x409   :  { %v9247_v52 = vsel %vm7790_vm12, 4294967295, %v9246_v52  ;;  %vm7801_vm3 = vcmp.eq.s32.totalorder %v8775_v36, %v7524_v5  ;;  %v9248_v31 = vmov 0  ;;  %vm7808_vm0 = vcmp.eq.s32.totalorder %v8778_v49, %v7507_v26 }
 0x40a   :  { %3990 = vmatmul.msk.f32.gmra.mxu2 %vm8753_vm8, %v8795_v22  ;;  %vm7776_vm8 = vcmp.eq.s32.totalorder %v8772_v62, %v7524_v5  ;;  %v2980_v63 = vadd.f32 %v2979_v44, %v2978_v15  ;;  %v9249_v31 = vsel %vm7801_vm3, 4294967295, %v9248_v31  ;;  %v9250_v62 = vmov 0 }
 0x40b   :  { %v9243_v41 = vsel %vm7776_vm8, 4294967295, %v9242_v41  ;;  %v9251_v62 = vsel %vm7808_vm0, 4294967295, %v9250_v62  ;;  %v8791_v15 = vand.u32 63, %v9045_v19  ;;  %vm8785_vm14 = vmand %vm7783_vm1, %vm7776_vm8  ;;  %v8793_v49 = vshra.s32 %v9045_v19, 6 }
 0x40c   :  { %vm4169_vm12 = vcmp.lt.s32.totalorder %v2980_v63, 0  ;;  %v4170_v44 = vceil.f32 %v2980_v63  ;;  %v4171_v36 = vfloor.f32 %v2980_v63  ;;  %v7822_v33 = vshra.s32 %v2983_v21, 7 }
 0x40d   :  { %vm7833_vm5 = vcmp.eq.s32.totalorder %v8793_v49, %v7524_v5  ;;  %v9252_v63 = vmov 0  ;;  %vm7840_vm3 = vcmp.eq.s32.totalorder %v8791_v15, %v7507_v26  ;;  %v9255_v21 = vmov 0 }
 0x40e   :  { %v4172_v16 = vsel %vm4169_vm12, %v4170_v44, %v4171_v36  ;;  %v9253_v63 = vsel %vm7833_vm5, 4294967295, %v9252_v63  ;;  %v9256_v21 = vsel %vm7840_vm3, 4294967295, %v9255_v21  ;;  %vm7849_vm12 = vcmp.eq.s32.totalorder %v3000_v57, %v7822_v33  ;;  %vm8792_vm8 = vmand %vm7840_vm3, %vm7833_vm5 }
 0x40f   :  { %v4173_v40 = vcvt.f32.s32 %v4172_v16  ;;  %9254 = vst [vmem:[#allocation2_spill] sm:$0xff] %v9253_v63  ;;  %v9257_v36 = vmov 0  ;;  %v9259_v16 = vmov 0  ;;  %v3005_v44 = vshra.s32 %v9048_v48, 6 }
 0x410   :  { %v9258_v36 = vsel %vm7849_vm12, 4294967295, %v9257_v36  ;;  %v8823_v25 = vand.u32 63, %v9051_v8  ;;  %v9261_v57 = vmov 0  ;;  %v9264_v15 = vmov 0 }
 0x411   :  { %v7844_v37 = vperm.slane %v4173_v40, 0  ;;  %v8798_v40 = vand.u32 63, %v9048_v48  ;;  %vm7885_vm0 = vcmp.eq.s32.totalorder %v3005_v44, %v7524_v5  ;;  %v9267_v49 = vmov 0 }
 0x412   :  { %3991 = vmatmul.msk.f32.gmra.mxu2 %vm8785_vm14, %v8795_v22  ;;  %v9262_v57 = vsel %vm7885_vm0, 4294967295, %v9261_v57  ;;  %v9278_v1 = vmov 0  ;;  %vm7943_vm6 = vcmp.eq.s32.totalorder %v3009_v14, %v7822_v33  ;;  %v9284_v61 = vmov 0 }
 0x413   :  { %vm7856_vm14 = vcmp.eq.s32.totalorder %v2984_v53, %v7844_v37  ;;  %v3006_v53 = vshra.s32 %v9051_v8, 6  ;;  %9263 = vst [vmem:[#allocation4_spill] sm:$0xff] %v9262_v57  ;;  %vm7906_vm5 = vcmp.eq.s32.totalorder %v2985_v27, %v7844_v37  ;;  %vm7932_vm15 = vcmp.eq.s32.totalorder %v2992_v32, %v7844_v37 }
 0x414   :  { %v9260_v16 = vsel %vm7856_vm14, 4294967295, %v9259_v16  ;;  %vm8790_vm1 = vmand %vm7856_vm14, %vm7849_vm12  ;;  %vm7918_vm12 = vcmp.eq.s32.totalorder %v8823_v25, %v7507_v26  ;;  %vm7925_vm14 = vcmp.eq.s32.totalorder %v3008_v54, %v7822_v33  ;;  %v9280_v27 = vmov 0 }
 0x415   :  { %4004 = vmatmul.msk.f32.vlgmr.msra.gmra.mxu3 %vm8790_vm1, %v8795_v22  ;;  %vm7892_vm1 = vcmp.eq.s32.totalorder %v8798_v40, %v7507_v26  ;;  %vm7911_vm3 = vcmp.eq.s32.totalorder %v3006_v53, %v7524_v5  ;;  %v9273_v40 = vmov 0  ;;  %v9279_v1 = vsel %vm7925_vm14, 4294967295, %v9278_v1 }
 0x416   :  { %v9265_v15 = vsel %vm7892_vm1, 4294967295, %v9264_v15  ;;  %v9274_v40 = vsel %vm7911_vm3, 4294967295, %v9273_v40  ;;  %v9281_v27 = vsel %vm7932_vm15, 4294967295, %v9280_v27  ;;  %v9282_v54 = vmov 0  ;;  %vm9297_vm2 = vmand %vm7892_vm1, %vm7885_vm0 }
 0x417   :  { %9266 = vst [vmem:[#allocation23_spill] sm:$0xff] %v9265_v15  ;;  %v9283_v54 = vsel %vm7943_vm6, 4294967295, %v9282_v54  ;;  %vm7950_vm13 = vcmp.eq.s32.totalorder %v2993_v28, %v7844_v37  ;;  %vm7961_vm9 = vcmp.eq.s32.totalorder %v3010_v30, %v7822_v33  ;;  %v9286_v32 = vmov 0 }
 0x418   :  { %9275 = vst [vmem:[#allocation6_spill] sm:$0xff] %v9274_v40  ;;  %v9285_v61 = vsel %vm7950_vm13, 4294967295, %v9284_v61  ;;  %v9287_v32 = vsel %vm7961_vm9, 4294967295, %v9286_v32  ;;  %vm7968_vm4 = vcmp.eq.s32.totalorder %v2994_v58, %v7844_v37  ;;  %v9288_v3 = vmov 0  ;;  %vm9328_vm9 = vmand %vm7918_vm12, %vm7911_vm3 }
 0x419   :  { %v9289_v3 = vsel %vm7968_vm4, 4294967295, %v9288_v3  ;;  %vm7983_vm11 = vcmp.eq.s32.totalorder %v3011_v10, %v7822_v33  ;;  %v9290_v28 = vmov 0  ;;  %v9292_v56 = vand.u32 63, %v6221_v9 }
 0x41a   :  { %3992 = vmatmul.msk.f32.gmra.mxu2 %vm8792_vm8, %v8795_v22  ;;  %vm7899_vm8 = vcmp.eq.s32.totalorder %v3001_v23, %v7822_v33  ;;  %v9270_v22 = vmov 0  ;;  %v9276_v23 = vmov 0  ;;  %v9291_v28 = vsel %vm7983_vm11, 4294967295, %v9290_v28 }
 0x41b   :  { %v9268_v49 = vsel %vm7899_vm8, 4294967295, %v9267_v49  ;;  %v9271_v22 = vsel %vm7906_vm5, 4294967295, %v9270_v22  ;;  %v9277_v23 = vsel %vm7918_vm12, 4294967295, %v9276_v23  ;;  %vm7990_vm10 = vcmp.eq.s32.totalorder %v9292_v56, %v7844_v37  ;;  %vm9296_vm7 = vmand %vm7906_vm5, %vm7899_vm8 }
 0x41c   :  { %9269 = vst [vmem:[#allocation8_spill] sm:$0xff] %v9268_v49  ;;  %v9293_v14 = vmov 0  ;;  %v9295_v58 = vmov 1.0   ;;  %v9298_v9 = vshra.s32 %v6660_v50, 6  ;;  %v9299_v30 = vmov 0 }
 0x41d   :  { %9272 = vst [vmem:[#allocation11_spill] sm:$0xff] %v9271_v22  ;;  %v9294_v14 = vsel %vm7990_vm10, 4294967295, %v9293_v14  ;;  %4005 = vmatmul.msk.f32.gmra.mxu3 %vm9296_vm7, %v9295_v58  ;;  %v9301_v10 = vand.u32 63, %v6660_v50  ;;  %v9302_v56 = vmov 0  ;;  %v9304_v25 = vshra.s32 %v6627_v34, 6 }
 0x41e   :  { %vm8013_vm15 = vcmp.eq.s32.totalorder %v9298_v9, %v7822_v33  ;;  %v9305_v9 = vmov 0  ;;  %v9307_v57 = vand.u32 63, %v6627_v34  ;;  %v9313_v15 = vand.u32 63, %v6724_v43 }
 0x41f   :  { %v9300_v30 = vsel %vm8013_vm15, 4294967295, %v9299_v30  ;;  %vm8020_vm7 = vcmp.eq.s32.totalorder %v9301_v10, %v7844_v37  ;;  %vm8031_vm14 = vcmp.eq.s32.totalorder %v9304_v25, %v7822_v33  ;;  %v9310_v10 = vshra.s32 %v6724_v43, 6 }
 0x420   :  { %v9303_v56 = vsel %vm8020_vm7, 4294967295, %v9302_v56  ;;  %v9306_v9 = vsel %vm8031_vm14, 4294967295, %v9305_v9  ;;  %vm8038_vm0 = vcmp.eq.s32.totalorder %v9307_v57, %v7844_v37  ;;  %v9311_v25 = vmov 0 }
 0x421   :  { %vm8056_vm8 = vcmp.eq.s32.totalorder %v9313_v15, %v7844_v37  ;;  %v9314_v34 = vmov 0  ;;  %v9316_v57 = vshra.s32 %v6713_v60, 6  ;;  %v9319_v49 = vand.u32 63, %v6713_v60 }
 0x422   :  { %3993 = vmatmul.msk.f32.gmra.mxu2 %vm9297_vm2, %v9295_v58  ;;  %vm8049_vm2 = vcmp.eq.s32.totalorder %v9310_v10, %v7822_v33  ;;  %v9315_v34 = vsel %vm8056_vm8, 4294967295, %v9314_v34  ;;  %v9317_v10 = vmov 0  ;;  %v9320_v43 = vmov 0 }
 0x423   :  { %v9312_v25 = vsel %vm8049_vm2, 4294967295, %v9311_v25  ;;  %vm8067_vm1 = vcmp.eq.s32.totalorder %v9316_v57, %v7822_v33  ;;  %vm8074_vm11 = vcmp.eq.s32.totalorder %v9319_v49, %v7844_v37  ;;  %v9322_v15 = vshra.s32 %v9040_v7, 6 }
 0x424   :  { %v9318_v10 = vsel %vm8067_vm1, 4294967295, %v9317_v10  ;;  %v9321_v43 = vsel %vm8074_vm11, 4294967295, %v9320_v43  ;;  %v9323_v22 = vmov 0  ;;  %v9325_v57 = vand.u32 63, %v9040_v7 }
 0x425   :  { %vm8081_vm10 = vcmp.eq.s32.totalorder %v9322_v15, %v7822_v33  ;;  %v9326_v63 = vmov 0  ;;  %v2991_v60 = vand.u32 63, %v9054_v18  ;;  %v3007_v7 = vshra.s32 %v9054_v18, 6 }
 0x426   :  { %v9324_v22 = vsel %vm8081_vm10, 4294967295, %v9323_v22  ;;  %vm8088_vm5 = vcmp.eq.s32.totalorder %v9325_v57, %v7844_v37  ;;  %v9329_v49 = vmov 0  ;;  %v9331_v18 = vmov 0 }
 0x427   :  { %v9327_v63 = vsel %vm8088_vm5, 4294967295, %v9326_v63  ;;  %vm8845_vm4 = vmand %vm8088_vm5, %vm8081_vm10  ;;  %vm8123_vm7 = vcmp.eq.s32.totalorder %v3007_v7, %v7524_v5  ;;  %vm8128_vm15 = vcmp.eq.s32.totalorder %v2991_v60, %v7507_v26  ;;  %v9333_v15 = vshra.s32 %v9042_v20, 6 }
 0x428   :  { %4006 = vmatmul.msk.f32.gmra.mxu3 %vm8845_vm4, %v9295_v58  ;;  %v9330_v49 = vsel %vm8123_vm7, 4294967295, %v9329_v49  ;;  %v9332_v18 = vsel %vm8128_vm15, 4294967295, %v9331_v18  ;;  %v9334_v57 = vmov 0  ;;  %v9336_v40 = vand.u32 63, %v9042_v20  ;;  %vm8852_vm3 = vmand %vm8128_vm15, %vm8123_vm7 }
 0x429   :  { %vm8135_vm4 = vcmp.eq.s32.totalorder %v9333_v15, %v7822_v33  ;;  %v9337_v5 = vmov 0  ;;  %v9339_v20 = vshra.s32 %v9045_v19, 6  ;;  %v9340_v26 = vmov 0 }
 0x42a   :  { %3994 = vmatmul.msk.f32.gmra.mxu2 %vm9328_vm9, %v9295_v58  ;;  %v9335_v57 = vsel %vm8135_vm4, 4294967295, %v9334_v57  ;;  %vm8142_vm9 = vcmp.eq.s32.totalorder %v9336_v40, %v7844_v37  ;;  %v9342_v40 = vand.u32 63, %v9045_v19  ;;  %v9343_v15 = vmov 0 }
 0x42b   :  { %v9338_v5 = vsel %vm8142_vm9, 4294967295, %v9337_v5  ;;  %vm8851_vm12 = vmand %vm8142_vm9, %vm8135_vm4  ;;  %vm8169_vm10 = vcmp.eq.s32.totalorder %v9339_v20, %v7822_v33  ;;  %vm9346_vm7 = vnez %v9213_v59  ;;  %vm8197_vm4 = vcmp.eq.s32.totalorder %v3005_v44, %v7822_v33 }
 0x42c   :  { %v9341_v26 = vsel %vm8169_vm10, 4294967295, %v9340_v26  ;;  %vm8176_vm5 = vcmp.eq.s32.totalorder %v9342_v40, %v7844_v37  ;;  %v9348_v19 = vmov 0  ;;  %v9350_v20 = vand.u32 63, %v9048_v48 }
 0x42d   :  { %v9344_v15 = vsel %vm8176_vm5, 4294967295, %v9343_v15  ;;  %v9349_v19 = vsel %vm8197_vm4, 4294967295, %v9348_v19  ;;  %v9351_v40 = vmov 0  ;;  %v9356_v48 = vmov 0 }
 0x42e   :  { %vm8204_vm9 = vcmp.eq.s32.totalorder %v9350_v20, %v7844_v37  ;;  %v9358_v44 = vand.u32 63, %v9051_v8  ;;  %v9359_v20 = vmov 0  ;;  %v9364_v8 = vmov 0 }
 0x42f   :  { %v9352_v40 = vsel %vm8204_vm9, 4294967295, %v9351_v40  ;;  %vm9374_vm11 = vnez %v9233_v47 }
 0x430   :  { %4007 = vmatmul.msk.f32.gmra.mxu3 %vm8851_vm12, %v9295_v58  ;;  %vm8857_vm12 = vmand %vm8176_vm5, %vm8169_vm10  ;;  %vm8225_vm10 = vcmp.eq.s32.totalorder %v3006_v53, %v7822_v33  ;;  %vm8232_vm5 = vcmp.eq.s32.totalorder %v9358_v44, %v7844_v37  ;;  %v9434_v44 = vld [vmem:[#allocation6_spill] sm:$0xff] }
 0x431   :  { %v9357_v48 = vsel %vm8225_vm10, 4294967295, %v9356_v48  ;;  %v9360_v20 = vsel %vm8232_vm5, 4294967295, %v9359_v20 }
 0x432   :  { %3995 = vmatmul.msk.f32.gmra.mxu2 %vm8852_vm3, %v9295_v58  ;;  %vm9345_vm3 = vnez %v9215_v13 }
 0x433   :  { %vm9347_vm15 = vmand %vm9345_vm3, %vm9346_vm7  ;;  %vm9354_vm7 = vnez %v9223_v24 }
 0x438   :  { %4008 = vmatmul.msk.f32.gmra.mxu3 %vm8857_vm12, %v9295_v58  ;;  %vm8860_vm12 = vmand %vm8204_vm9, %vm8197_vm4  ;;  %vm8253_vm4 = vcmp.eq.s32.totalorder %v3007_v7, %v7822_v33  ;;  %vm8258_vm9 = vcmp.eq.s32.totalorder %v2991_v60, %v7844_v37  ;;  %v9422_v33 = vld [vmem:[#allocation8_spill] sm:$0xff] }
 0x439   :  { %v9365_v8 = vsel %vm8253_vm4, 4294967295, %v9364_v8 }
 0x43a   :  { %3996 = vmatmul.msk.f32.gmra.mxu2 %vm9347_vm15, %v9295_v58  ;;  %vm9353_vm15 = vnez %v9217_v35 }
 0x43b   :  { %vm9355_vm3 = vmand %vm9353_vm15, %vm9354_vm7  ;;  %vm9362_vm7 = vnez %v9225_v2 }
 0x440   :  { %4009 = vmatmul.msk.f32.gmra.mxu3 %vm8860_vm12, %v9295_v58  ;;  %vm8863_vm12 = vmand %vm8232_vm5, %vm8225_vm10  ;;  %vm9371_vm10 = vnez %v9281_v27  ;;  %vm9372_vm5 = vnez %v9279_v1 }
 0x441   :  { %vm9373_vm1 = vmand %vm9371_vm10, %vm9372_vm5  ;;  %vm9379_vm5 = vnez %v9237_v46  ;;  %vm9381_vm10 = vnez %v9289_v3 }
 0x442   :  { %3997 = vmatmul.msk.f32.gmra.mxu2 %vm9355_vm3, %v9295_v58  ;;  %vm9361_vm3 = vnez %v9227_v42 }
 0x443   :  { %vm9363_vm15 = vmand %vm9361_vm3, %vm9362_vm7  ;;  %vm9369_vm7 = vnez %v9231_v11 }
 0x448   :  { %4010 = vmatmul.msk.f32.gmra.mxu3 %vm8863_vm12, %v9295_v58  ;;  %vm8871_vm12 = vmand %vm8258_vm9, %vm8253_vm4  ;;  %vm9375_vm4 = vnez %v9235_v0 }
 0x44a   :  { %3998 = vmatmul.msk.f32.gmra.mxu2 %vm9363_vm15, %v9295_v58  ;;  %vm9368_vm15 = vnez %v9229_v51 }
 0x44b   :  { %vm9370_vm3 = vmand %vm9368_vm15, %vm9369_vm7  ;;  %vm9378_vm7 = vnez %v9239_v12 }
 0x450   :  { %4011 = vmatmul.msk.f32.gmra.mxu3 %vm8871_vm12, %v9295_v58  ;;  %vm9376_vm12 = vmand %vm9374_vm11, %vm9375_vm4  ;;  %vm9382_vm4 = vnez %v9287_v32  ;;  %vm9384_vm11 = vnez %v9241_v38 }
 0x452   :  { %3999 = vmatmul.msk.f32.gmra.mxu2 %vm9370_vm3, %v9295_v58  ;;  %vm9377_vm3 = vmand %vm7950_vm13, %vm7943_vm6  ;;  %vm9385_vm6 = vnez %v9247_v52  ;;  %vm9387_vm13 = vnez %v9294_v14 }
 0x458   :  { %4012 = vmatmul.msk.f32.gmra.mxu3 %vm9373_vm1, %v9295_v58  ;;  %vm9380_vm1 = vmand %vm9378_vm7, %vm9379_vm5  ;;  %vm9388_vm5 = vnez %v9291_v28  ;;  %vm9390_vm7 = vnez %v9251_v62 }
 0x45a   :  { %4000 = vmatmul.msk.f32.gmra.mxu2 %vm9376_vm12, %v9295_v58  ;;  %vm9383_vm12 = vmand %vm9381_vm10, %vm9382_vm4  ;;  %vm9391_vm4 = vnez %v9249_v31  ;;  %vm9393_vm10 = vnez %v9303_v56 }
 0x460   :  { %4013 = vmatmul.msk.f32.gmra.mxu3 %vm9377_vm3, %v9295_v58  ;;  %vm9386_vm3 = vmand %vm9384_vm11, %vm9385_vm6  ;;  %vm9394_vm6 = vnez %v9300_v30  ;;  %vm9396_vm11 = vnez %v9205_v29 }
 0x462   :  { %4001 = vmatmul.msk.f32.gmra.mxu2 %vm9380_vm1, %v9295_v58  ;;  %vm9389_vm1 = vmand %vm9387_vm13, %vm9388_vm5  ;;  %vm9397_vm5 = vnez %v9203_v4 }
 0x468   :  { %4014 = vmatmul.msk.f32.gmra.mxu3 %vm9383_vm12, %v9295_v58  ;;  %vm9392_vm12 = vmand %vm9390_vm7, %vm9391_vm4  ;;  %vm9400_vm4 = vnez %v9211_v17  ;;  %v9417_v17 = vld [vmem:[#allocation2_spill] sm:$0xff] }
 0x46a   :  { %4002 = vmatmul.msk.f32.gmra.mxu2 %vm9386_vm3, %v9295_v58  ;;  %vm9395_vm3 = vmand %vm9393_vm10, %vm9394_vm6 }
 0x470   :  { %4015 = vmatmul.msk.f32.gmra.mxu3 %vm9389_vm1, %v9295_v58  ;;  %vm9398_vm1 = vmand %vm9396_vm11, %vm9397_vm5  ;;  %vm9404_vm5 = vnez %v9221_v55 }
 0x471   :  { %vm9403_vm11 = vmand %vm8056_vm8, %vm8049_vm2  ;;  %vm9416_vm8 = vnez %v9256_v21  ;;  %v9425_v21 = vld [vmem:[#allocation23_spill] sm:$0xff] }
 0x472   :  { %4003 = vmatmul.msk.f32.gmra.mxu2 %vm9392_vm12, %v9295_v58  ;;  %vm9399_vm12 = vmand %vm8038_vm0, %vm8031_vm14  ;;  %vm9410_vm14 = vnez %v9245_v6 }
 0x478   :  { %4016 = vmatmul.msk.f32.gmra.mxu3 %vm9395_vm3, %v9295_v58  ;;  %vm9401_vm3 = vnez %v9209_v39 }
 0x479   :  { %vm9402_vm6 = vmand %vm9400_vm4, %vm9401_vm3  ;;  %vm9407_vm4 = vnez %v9321_v43 }
 0x47a   :  { %4020 = vmatmul.msk.f32.vlgmr.msrb.gmra.mxu2 %vm9398_vm1, %v9295_v58  ;;  %vm9405_vm1 = vnez %v9219_v45 }
 0x47d   :  { %v3197_v37 = vpop.f32.mrf.mxu2 }
 0x480   :  { %4017 = vmatmul.msk.f32.gmra.mxu3 %vm9399_vm12, %v9295_v58  ;;  %vm9406_vm12 = vmand %vm9404_vm5, %vm9405_vm1  ;;  %vm9413_vm5 = vnez %v9260_v16  ;;  %vm9414_vm1 = vnez %v9258_v36  ;;  %v9427_v36 = vld [vmem:[#allocation4_spill] sm:$0xff] }
 0x482   :  { %4021 = vmatmul.msk.f32.gmra.mxu2 %vm9402_vm6, %v9295_v58  ;;  %vm9408_vm6 = vnez %v9318_v10 }
 0x483   :  { %vm9409_vm3 = vmand %vm9407_vm4, %vm9408_vm6 }
 0x485   :  { %v3200_v29 = vpop.f32.mrf.mxu2 }
 0x488   :  { %4018 = vmatmul.msk.f32.gmra.mxu3 %vm9403_vm11, %v9295_v58  ;;  %vm9411_vm11 = vnez %v9243_v41  ;;  %v9420_v41 = vld [vmem:[#allocation11_spill] sm:$0xff] }
 0x489   :  { %vm9412_vm2 = vmand %vm9410_vm14, %vm9411_vm11  ;;  %vm9421_vm14 = vnez %v9420_v41 }
 0x48a   :  { %4022 = vmatmul.msk.f32.gmra.mxu2 %vm9406_vm12, %v9295_v58  ;;  %vm9415_vm12 = vmand %vm9413_vm5, %vm9414_vm1  ;;  %vm9426_vm5 = vnez %v9425_v21  ;;  %vm9430_vm1 = vnez %v9327_v63 }
 0x48d   :  { %v3203_v4 = vpop.f32.mrf.mxu2 }
 0x490   :  { %4019 = vmatmul.msk.f32.gmra.mxu3 %vm9409_vm3, %v9295_v58  ;;  %vm9418_vm3 = vnez %v9417_v17 }
 0x491   :  { %vm9419_vm6 = vmand %vm9416_vm8, %vm9418_vm3  ;;  %vm9428_vm8 = vnez %v9427_v36 }
 0x492   :  { %4023 = vmatmul.msk.f32.gmra.mxu2 %vm9412_vm2, %v9295_v58  ;;  %vm9423_vm2 = vnez %v9422_v33 }
 0x493   :  { %vm9424_vm11 = vmand %vm9421_vm14, %vm9423_vm2  ;;  %vm9433_vm14 = vnez %v9277_v23  ;;  %vm9435_vm2 = vnez %v9434_v44 }
 0x495   :  { %v3206_v39 = vpop.f32.mrf.mxu2 }
 0x498   :  { %4036 = vmatmul.msk.f32.vlgmr.msrb.gmra.mxu3 %vm9415_vm12, %v9295_v58  ;;  %v3262_v45 = vpop.f32.mrf.mxu3  ;;  %vm9431_vm12 = vnez %v9324_v22 }
 0x499   :  { %v3263_v6 = vadd.f32 %v3262_v45, %v3197_v37  ;;  %vm9432_vm3 = vmand %vm9430_vm1, %vm9431_vm12  ;;  %vm9440_vm1 = vnez %v9332_v18  ;;  %vm9441_vm12 = vnez %v9330_v49 }
 0x49a   :  { %4024 = vmatmul.msk.f32.gmra.mxu2 %vm9419_vm6, %v9295_v58  ;;  %vm9429_vm6 = vmand %vm9426_vm5, %vm9428_vm8  ;;  %vm9437_vm5 = vnez %v9338_v5  ;;  %vm9438_vm8 = vnez %v9335_v57 }
 0x49b   :  { %3440 = vst [vmem:[%s8643_s5] sm:$0xff] %v3263_v6 }
 0x49d   :  { %v3209_v55 = vpop.f32.mrf.mxu2 }
 0x4a0   :  { %4037 = vmatmul.msk.f32.gmra.mxu3 %vm9424_vm11, %v9295_v58  ;;  %v3265_v16 = vpop.f32.mrf.mxu3  ;;  %vm9436_vm11 = vmand %vm9433_vm14, %vm9435_vm2  ;;  %vm9443_vm14 = vnez %v9344_v15  ;;  %vm9444_vm2 = vnez %v9341_v26 }
 0x4a1   :  { %v3266_v7 = vadd.f32 %v3265_v16, %v3200_v29 }
 0x4a2   :  { %4025 = vmatmul.msk.f32.gmra.mxu2 %vm9429_vm6, %v9295_v58  ;;  %vm9439_vm6 = vmand %vm9437_vm5, %vm9438_vm8  ;;  %vm9446_vm5 = vnez %v9215_v13  ;;  %vm9447_vm8 = vnez %v9213_v59 }
 0x4a3   :  { %3442 = vst [vmem:[%s8643_s5 + $0x10] sm:$0xff] %v3266_v7 }
 0x4a5   :  { %v3212_v60 = vpop.f32.mrf.mxu2 }
 0x4a8   :  { %4038 = vmatmul.msk.f32.gmra.mxu3 %vm9432_vm3, %v9295_v58  ;;  %vm9442_vm3 = vmand %vm9440_vm1, %vm9441_vm12  ;;  %vm9449_vm1 = vnez %v9352_v40  ;;  %vm9450_vm12 = vnez %v9349_v19 }
 0x4aa   :  { %4026 = vmatmul.msk.f32.gmra.mxu2 %vm9436_vm11, %v9295_v58  ;;  %vm9445_vm11 = vmand %vm9443_vm14, %vm9444_vm2  ;;  %vm9452_vm14 = vnez %v9217_v35  ;;  %vm9453_vm2 = vnez %v9223_v24 }
 0x4ab   :  { %v3268_v37 = vpop.f32.mrf.mxu3 }
 0x4ac   :  { %v3269_v17 = vadd.f32 %v3268_v37, %v3203_v4 }
 0x4ad   :  { %v3215_v29 = vpop.f32.mrf.mxu2 }
 0x4ae   :  { %3444 = vst [vmem:[%s8643_s5 + $0x20] sm:$0xff] %v3269_v17 }
 0x4b0   :  { %4039 = vmatmul.msk.f32.gmra.mxu3 %vm9439_vm6, %v9295_v58  ;;  %vm9448_vm6 = vmand %vm9446_vm5, %vm9447_vm8  ;;  %vm9455_vm5 = vnez %v9360_v20  ;;  %vm9456_vm8 = vnez %v9357_v48 }
 0x4b2   :  { %4027 = vmatmul.msk.f32.gmra.mxu2 %vm9442_vm3, %v9295_v58  ;;  %vm9451_vm3 = vmand %vm9449_vm1, %vm9450_vm12  ;;  %vm9458_vm1 = vnez %v9227_v42  ;;  %vm9459_vm12 = vnez %v9225_v2 }
 0x4b3   :  { %v3271_v22 = vpop.f32.mrf.mxu3 }
 0x4b4   :  { %v3272_v23 = vadd.f32 %v3271_v22, %v3206_v39 }
 0x4b5   :  { %v3218_v63 = vpop.f32.mrf.mxu2 }
 0x4b6   :  { %3446 = vst [vmem:[%s8643_s5 + $0x30] sm:$0xff] %v3272_v23 }
 0x4b8   :  { %4040 = vmatmul.msk.f32.gmra.mxu3 %vm9445_vm11, %v9295_v58  ;;  %vm9454_vm11 = vmand %vm9452_vm14, %vm9453_vm2  ;;  %vm9461_vm14 = vnez %v9365_v8 }
 0x4b9   :  { %vm9462_vm2 = vmand %vm8258_vm9, %vm9461_vm14  ;;  %vm9466_vm9 = vnez %v9279_v1  ;;  %vm9472_vm14 = vnez %v9283_v54 }
 0x4ba   :  { %4028 = vmatmul.msk.f32.gmra.mxu2 %vm9448_vm6, %v9295_v58  ;;  %vm9457_vm6 = vmand %vm9455_vm5, %vm9456_vm8  ;;  %vm9465_vm8 = vnez %v9281_v27 }
 0x4bb   :  { %v3274_v49 = vpop.f32.mrf.mxu3 }
 0x4bc   :  { %v3275_v57 = vadd.f32 %v3274_v49, %v3209_v55 }
 0x4bd   :  { %v3221_v18 = vpop.f32.mrf.mxu2 }
 0x4be   :  { %3448 = vst [vmem:[%s8643_s5 + $0x40] sm:$0xff] %v3275_v57 }
 0x4c0   :  { %4041 = vmatmul.msk.f32.gmra.mxu3 %vm9451_vm3, %v9295_v58  ;;  %vm9460_vm3 = vmand %vm9458_vm1, %vm9459_vm12  ;;  %vm9468_vm1 = vnez %v9233_v47 }
 0x4c2   :  { %4029 = vmatmul.msk.f32.gmra.mxu2 %vm9454_vm11, %v9295_v58  ;;  %vm9463_vm11 = vnez %v9231_v11 }
 0x4c3   :  { %v3277_v59 = vpop.f32.mrf.mxu3  ;;  %vm9464_vm5 = vmand %vm9368_vm15, %vm9463_vm11  ;;  %vm9469_vm15 = vnez %v9235_v0  ;;  %vm9474_vm11 = vnez %v9239_v12 }
 0x4c4   :  { %v3278_v5 = vadd.f32 %v3277_v59, %v3212_v60  ;;  %vm9470_vm12 = vmand %vm9468_vm1, %vm9469_vm15  ;;  %vm9480_vm15 = vnez %v9241_v38 }
 0x4c5   :  { %v3224_v13 = vpop.f32.mrf.mxu2 }
 0x4c6   :  { %3450 = vst [vmem:[%s8643_s5 + $0x50] sm:$0xff] %v3278_v5 }
 0x4c8   :  { %4042 = vmatmul.msk.f32.gmra.mxu3 %vm9457_vm6, %v9295_v58  ;;  %vm9467_vm6 = vmand %vm9465_vm8, %vm9466_vm9  ;;  %vm9477_vm9 = vnez %v9289_v3 }
 0x4ca   :  { %4030 = vmatmul.msk.f32.gmra.mxu2 %vm9460_vm3, %v9295_v58  ;;  %vm9471_vm3 = vnez %v9285_v61 }
 0x4cb   :  { %v3280_v35 = vpop.f32.mrf.mxu3 }
 0x4cc   :  { %v3281_v26 = vadd.f32 %v3280_v35, %v3215_v29 }
 0x4cd   :  { %v3227_v24 = vpop.f32.mrf.mxu2 }
 0x4ce   :  { %3452 = vst [vmem:[%s8643_s5 + $0x60] sm:$0xff] %v3281_v26 }
 0x4d0   :  { %4043 = vmatmul.msk.f32.gmra.mxu3 %vm9462_vm2, %v9295_v58  ;;  %vm9473_vm2 = vmand %vm9471_vm3, %vm9472_vm14  ;;  %vm9483_vm14 = vnez %v9291_v28 }
 0x4d2   :  { %4031 = vmatmul.msk.f32.gmra.mxu2 %vm9464_vm5, %v9295_v58  ;;  %vm9475_vm5 = vnez %v9237_v46 }
 0x4d3   :  { %v3283_v2 = vpop.f32.mrf.mxu3  ;;  %vm9476_vm8 = vmand %vm9474_vm11, %vm9475_vm5  ;;  %vm9485_vm11 = vnez %v9249_v31 }
 0x4d4   :  { %v3284_v15 = vadd.f32 %v3283_v2, %v3218_v63  ;;  %vm9486_vm5 = vmand %vm9390_vm7, %vm9485_vm11  ;;  %vm9489_vm7 = vnez %v9306_v9 }
 0x4d5   :  { %v3230_v42 = vpop.f32.mrf.mxu2 }
 0x4d6   :  { %3454 = vst [vmem:[%s8643_s5 + $0x70] sm:$0xff] %v3284_v15 }
 0x4d8   :  { %4044 = vmatmul.msk.f32.gmra.mxu3 %vm9467_vm6, %v9295_v58  ;;  %vm9478_vm6 = vnez %v9287_v32 }
 0x4d9   :  { %vm9479_vm1 = vmand %vm9477_vm9, %vm9478_vm6  ;;  %vm9492_vm6 = vnez %v9312_v25 }
 0x4da   :  { %4032 = vmatmul.msk.f32.gmra.mxu2 %vm9470_vm12, %v9295_v58  ;;  %vm9481_vm12 = vnez %v9247_v52  ;;  %vm9490_vm9 = vmand %vm8038_vm0, %vm9489_vm7  ;;  %vm9494_vm0 = vnez %v9318_v10 }
 0x4db   :  { %v3286_v51 = vpop.f32.mrf.mxu3  ;;  %vm9482_vm3 = vmand %vm9480_vm15, %vm9481_vm12 }
 0x4dc   :  { %v3287_v19 = vadd.f32 %v3286_v51, %v3221_v18  ;;  %vm9495_vm15 = vmand %vm9407_vm4, %vm9494_vm0 }
 0x4dd   :  { %v3233_v11 = vpop.f32.mrf.mxu2 }
 0x4de   :  { %3456 = vst [vmem:[%s8643_s5 + $0x80] sm:$0xff] %v3287_v19 }
 0x4e0   :  { %4045 = vmatmul.msk.f32.gmra.mxu3 %vm9473_vm2, %v9295_v58  ;;  %vm9484_vm2 = vmand %vm9387_vm13, %vm9483_vm14  ;;  %vm9487_vm13 = vnez %v9300_v30 }
 0x4e2   :  { %4033 = vmatmul.msk.f32.gmra.mxu2 %vm9476_vm8, %v9295_v58  ;;  %vm9488_vm8 = vmand %vm9393_vm10, %vm9487_vm13  ;;  %vm9491_vm10 = vnez %v9315_v34 }
 0x4e3   :  { %v3289_v47 = vpop.f32.mrf.mxu3 }
 0x4e4   :  { %v3290_v1 = vadd.f32 %v3289_v47, %v3224_v13 }
 0x4e5   :  { %v3236_v0 = vpop.f32.mrf.mxu2 }
 0x4e6   :  { %3458 = vst [vmem:[%s8643_s5 + $0x90] sm:$0xff] %v3290_v1 }
 0x4e8   :  { %4046 = vmatmul.msk.f32.gmra.mxu3 %vm9479_vm1, %v9295_v58  ;;  %vm9493_vm1 = vmand %vm9491_vm10, %vm9492_vm6 }
 0x4ea   :  { %4034 = vmatmul.msk.f32.gmra.mxu2 %vm9482_vm3, %v9295_v58 }
 0x4eb   :  { %v3292_v46 = vpop.f32.mrf.mxu3 }
 0x4ec   :  { %v3293_v27 = vadd.f32 %v3292_v46, %v3227_v24 }
 0x4ed   :  { %v3239_v12 = vpop.f32.mrf.mxu2 }
 0x4ee   :  { %3460 = vst [vmem:[%s8643_s5 + $0xa0] sm:$0xff] %v3293_v27 }
 0x4f0   :  { %4047 = vmatmul.msk.f32.gmra.mxu3 %vm9484_vm2, %v9295_v58 }
 0x4f2   :  { %4035 = vmatmul.msk.f32.gmra.mxu2 %vm9486_vm5, %v9295_v58 }
 0x4f3   :  { %v3295_v52 = vpop.f32.mrf.mxu3 }
 0x4f4   :  { %v3296_v54 = vadd.f32 %v3295_v52, %v3230_v42 }
 0x4f5   :  { %v3242_v38 = vpop.f32.mrf.mxu2 }
 0x4f6   :  { %3462 = vst [vmem:[%s8643_s5 + $0xb0] sm:$0xff] %v3296_v54 }
 0x4f8   :  { %4048 = vmatmul.msk.f32.gmra.mxu3 %vm9488_vm8, %v9295_v58 }
 0x4fb   :  { %v3298_v61 = vpop.f32.mrf.mxu3 }
 0x4fc   :  { %v3299_v62 = vadd.f32 %v3298_v61, %v3233_v11 }
 0x4fd   :  { %v3327_v32 = vpop.f32.mrf.mxu2 }
 0x4fe   :  { %3464 = vst [vmem:[%s8643_s5 + $0xc0] sm:$0xff] %v3299_v62 }
 0x500   :  { %4049 = vmatmul.msk.f32.gmra.mxu3 %vm9490_vm9, %v9295_v58 }
 0x503   :  { %v3301_v31 = vpop.f32.mrf.mxu3 }
 0x504   :  { %v3302_v3 = vadd.f32 %v3301_v31, %v3236_v0 }
 0x505   :  { %v3330_v28 = vpop.f32.mrf.mxu2 }
 0x506   :  { %3466 = vst [vmem:[%s8643_s5 + $0xd0] sm:$0xff] %v3302_v3 }
 0x508   :  { %4050 = vmatmul.msk.f32.gmra.mxu3 %vm9493_vm1, %v9295_v58 }
 0x50b   :  { %v3304_v14 = vpop.f32.mrf.mxu3 }
 0x50c   :  { %v3305_v30 = vadd.f32 %v3304_v14, %v3239_v12 }
 0x50d   :  { %v3333_v56 = vpop.f32.mrf.mxu2 }
 0x50e   :  { %3468 = vst [vmem:[%s8643_s5 + $0xe0] sm:$0xff] %v3305_v30 }
 0x510   :  { %4051 = vmatmul.msk.f32.gmra.mxu3 %vm9495_vm15, %v9295_v58 }
 0x513   :  { %v3307_v9 = vpop.f32.mrf.mxu3 }
 0x514   :  { %v3308_v50 = vadd.f32 %v3307_v9, %v3242_v38 }
 0x515   :  { %v3336_v34 = vpop.f32.mrf.mxu2 }
 0x516   :  { %3470 = vst [vmem:[%s8643_s5 + $0xf0] sm:$0xff] %v3308_v50 }
 0x51b   :  { %v3392_v25 = vpop.f32.mrf.mxu3 }
 0x51c   :  { %v3393_v40 = vadd.f32 %v3392_v25, %v3327_v32 }
 0x51d   :  { %v3339_v20 = vpop.f32.mrf.mxu2 }
 0x51e   :  { %3441 = vst [vmem:[%s8643_s5 + $0x8] sm:$0xff] %v3393_v40 }
 0x523   :  { %v3395_v48 = vpop.f32.mrf.mxu3 }
 0x524   :  { %v3396_v43 = vadd.f32 %v3395_v48, %v3330_v28 }
 0x525   :  { %v3342_v8 = vpop.f32.mrf.mxu2 }
 0x526   :  { %3443 = vst [vmem:[%s8643_s5 + $0x18] sm:$0xff] %v3396_v43 }
 0x52b   :  { %v3398_v58 = vpop.f32.mrf.mxu3 }
 0x52c   :  { %v3399_v10 = vadd.f32 %v3398_v58, %v3333_v56 }
 0x52d   :  { %v3345_v39 = vpop.f32.mrf.mxu2 }
 0x52e   :  { %3445 = vst [vmem:[%s8643_s5 + $0x28] sm:$0xff] %v3399_v10 }
 0x533   :  { %v3401_v53 = vpop.f32.mrf.mxu3 }
 0x534   :  { %v3402_v4 = vadd.f32 %v3401_v53, %v3336_v34 }
 0x535   :  { %v3348_v41 = vpop.f32.mrf.mxu2 }
 0x536   :  { %3447 = vst [vmem:[%s8643_s5 + $0x38] sm:$0xff] %v3402_v4 }
 0x53b   :  { %v3404_v45 = vpop.f32.mrf.mxu3 }
 0x53c   :  { %v3405_v55 = vadd.f32 %v3404_v45, %v3339_v20 }
 0x53d   :  { %v3351_v16 = vpop.f32.mrf.mxu2 }
 0x53e   :  { %3449 = vst [vmem:[%s8643_s5 + $0x48] sm:$0xff] %v3405_v55 }
 0x543   :  { %v3407_v6 = vpop.f32.mrf.mxu3 }
 0x544   :  { %v3408_v33 = vadd.f32 %v3407_v6, %v3342_v8 }
 0x545   :  { %v3354_v44 = vpop.f32.mrf.mxu2 }
 0x546   :  { %3451 = vst [vmem:[%s8643_s5 + $0x58] sm:$0xff] %v3408_v33 }
 0x54b   :  { %v3410_v21 = vpop.f32.mrf.mxu3 }
 0x54c   :  { %v3411_v36 = vadd.f32 %v3410_v21, %v3345_v39 }
 0x54d   :  { %v3357_v17 = vpop.f32.mrf.mxu2 }
 0x54e   :  { %3453 = vst [vmem:[%s8643_s5 + $0x68] sm:$0xff] %v3411_v36 }
 0x553   :  { %v3413_v60 = vpop.f32.mrf.mxu3 }
 0x554   :  { %v3414_v7 = vadd.f32 %v3413_v60, %v3348_v41 }
 0x555   :  { %v3360_v23 = vpop.f32.mrf.mxu2 }
 0x556   :  { %3455 = vst [vmem:[%s8643_s5 + $0x78] sm:$0xff] %v3414_v7 }
 0x55b   :  { %v3416_v37 = vpop.f32.mrf.mxu3 }
 0x55c   :  { %v3417_v29 = vadd.f32 %v3416_v37, %v3351_v16 }
 0x55d   :  { %v3363_v13 = vpop.f32.mrf.mxu2 }
 0x55e   :  { %3457 = vst [vmem:[%s8643_s5 + $0x88] sm:$0xff] %v3417_v29 }
 0x563   :  { %v3419_v22 = vpop.f32.mrf.mxu3 }
 0x564   :  { %v3420_v63 = vadd.f32 %v3419_v22, %v3354_v44 }
 0x565   :  { %v3366_v24 = vpop.f32.mrf.mxu2 }
 0x566   :  { %3459 = vst [vmem:[%s8643_s5 + $0x98] sm:$0xff] %v3420_v63 }
 0x56b   :  { %v3422_v49 = vpop.f32.mrf.mxu3 }
 0x56c   :  { %v3423_v18 = vadd.f32 %v3422_v49, %v3357_v17 }
 0x56d   :  { %v3369_v42 = vpop.f32.mrf.mxu2 }
 0x56e   :  { %3461 = vst [vmem:[%s8643_s5 + $0xa8] sm:$0xff] %v3423_v18 }
 0x573   :  { %v3425_v57 = vpop.f32.mrf.mxu3 }
 0x574   :  { %v3426_v59 = vadd.f32 %v3425_v57, %v3360_v23 }
 0x575   :  { %v3372_v11 = vpop.f32.mrf.mxu2 }
 0x576   :  { %3463 = vst [vmem:[%s8643_s5 + $0xb8] sm:$0xff] %v3426_v59 }
 0x57b   :  { %v3428_v5 = vpop.f32.mrf.mxu3 }
 0x57c   :  { %v3429_v35 = vadd.f32 %v3428_v5, %v3363_v13 }
 0x57e   :  { %3465 = vst [vmem:[%s8643_s5 + $0xc8] sm:$0xff] %v3429_v35 }
 0x583   :  { %v3431_v26 = vpop.f32.mrf.mxu3 }
 0x584   :  { %v3432_v2 = vadd.f32 %v3431_v26, %v3366_v24 }
 0x586   :  { %3467 = vst [vmem:[%s8643_s5 + $0xd8] sm:$0xff] %v3432_v2 }
 0x58b   :  { %v3434_v15 = vpop.f32.mrf.mxu3 }
 0x58c   :  { %v3435_v51 = vadd.f32 %v3434_v15, %v3369_v42 }
 0x58e   :  { %3469 = vst [vmem:[%s8643_s5 + $0xe8] sm:$0xff] %v3435_v51 }
 0x593   :  { %v3437_v19 = vpop.f32.mrf.mxu3 }
 0x594   :  { %v3438_v47 = vadd.f32 %v3437_v19, %v3372_v11 }
 0x596   :  { %3471 = vst [vmem:[%s8643_s5 + $0xf8] sm:$0xff] %v3438_v47 }

</bundles_post_ra>
